<compile_context>
chip_gen: v7x
topology: tpu7x:2x2x1
jax: 0.10.0
libtpu: 0.0.40
codegen_flags: <defaults>
</compile_context>

<pallas_src>
import jax
import jax.numpy as jnp
from jax import lax
from jax.experimental import pallas as pl
from jax.experimental.pallas import tpu as pltpu


def _round_up(x, m):
    return ((x + m - 1) // m) * m


def _vmem_capacity_bytes():
    try:
        info = pltpu.get_tpu_info()
        for name in ("vmem_capacity_bytes", "vmem_size_bytes", "vmem_bytes"):
            v = getattr(info, name, None)
            if v:
                return int(v)
    except Exception:
        pass
    return 64 * 1024 * 1024            # conservative default (v7x per-core VMEM)


_VMEM_CAP = _vmem_capacity_bytes()
_VMEM_LIMIT = max(32 * 1024 * 1024,
                  min(int(_VMEM_CAP * 0.72), 100 * 1024 * 1024))
# v7x (64 MiB VMEM, 2 TensorCores) wants >=2 row-grid steps per core so the
# "parallel" axis can shard; single-core 128 MiB parts only need >=2 total.
_MIN_GRID_STEPS = 4 if _VMEM_CAP <= 72 * 1024 * 1024 else 2


# --------------------------- Pallas kernels ---------------------------

def _mlp_max_kernel(feat_ref, cnt_ref, w1_ref, w2_ref, w3_ref, vec_ref,
                    out_ref, acc_ref):
    """Shared MLP (Linear -> ReLU [-> folded BN]) x3 on one (tm, kc, C0) chunk of
    per-edge features, masked max-pooled into a (tm, C3) running-max accumulator.
    The last layer's BN affine is applied once, post-pool, on the last K chunk.

    vec_ref rows: 0=b1, 1=b2, 2=b3, 3=s3, 4=t3 (each zero-padded to C3 lanes).
    """
    kstep = pl.program_id(1)
    nk = pl.num_programs(1)
    tm, kc, c0 = feat_ref.shape
    c1 = w1_ref.shape[1]
    c2 = w2_ref.shape[1]
    c3 = w3_ref.shape[1]

    @pl.when(kstep == 0)
    def _():
        # mask-multiply pooling: all pooled values are >= 0, so 0 is a valid
        # identity for the running max (every real center has >= 1 neighbor).
        acc_ref[...] = jnp.zeros_like(acc_ref)

    b1 = vec_ref[0:1, :c1]
    b2 = vec_ref[1:2, :c2]
    b3 = vec_ref[2:3, :c3]

    h = feat_ref[...].reshape(tm * kc, c0)                       # bf16 MXU operand
    z = jnp.dot(h, w1_ref[...], preferred_element_type=jnp.float32) + b1
    h = jnp.maximum(z, 0.0).astype(jnp.bfloat16)
    z = jnp.dot(h, w2_ref[...], preferred_element_type=jnp.float32) + b2
    h = jnp.maximum(z, 0.0).astype(jnp.bfloat16)
    z = jnp.dot(h, w3_ref[...], preferred_element_type=jnp.float32) + b3
    h = jnp.maximum(z, 0.0)                                      # f32, >= 0

    # neighbor validity (global neighbor index vs. per-center count)
    k0 = kstep * kc
    idx = (k0 + lax.broadcasted_iota(jnp.int32, (tm, kc), 1)).astype(jnp.float32)
    valid = (idx < cnt_ref[...]).astype(jnp.float32)             # (tm, kc)
    h = h.reshape(tm, kc, c3) * valid[:, :, None]                # zero masked slots
    acc_ref[...] = jnp.maximum(acc_ref[...], jnp.max(h, axis=1))

    @pl.when(kstep == nk - 1)
    def _():
        s3 = vec_ref[3:4, :c3]
        t3 = vec_ref[4:5, :c3]
        # eval-mode BN of the last layer applied after the pool (exact for s3 > 0).
        out_ref[...] = acc_ref[...] * s3 + t3


def _head_kernel(x_ref, w1, w2, w3, w4, vec_ref, out_ref):
    """lin1..lin3 with ReLU, lin4, then log_softmax over the (padded) class dim.
    vec_ref rows: 0=b1, 1=b2, 2=b3, 3=b4 (padded classes carry -1e30 so exp()->0).
    """
    c1, c2, c3, c4 = w1.shape[1], w2.shape[1], w3.shape[1], w4.shape[1]
    h = x_ref[...]                                               # bf16 (rows, C)
    z = jnp.dot(h, w1[...], preferred_element_type=jnp.float32) + vec_ref[0:1, :c1]
    h = jnp.maximum(z, 0.0).astype(jnp.bfloat16)
    z = jnp.dot(h, w2[...], preferred_element_type=jnp.float32) + vec_ref[1:2, :c2]
    h = jnp.maximum(z, 0.0).astype(jnp.bfloat16)
    z = jnp.dot(h, w3[...], preferred_element_type=jnp.float32) + vec_ref[2:3, :c3]
    h = jnp.maximum(z, 0.0).astype(jnp.bfloat16)
    logits = jnp.dot(h, w4[...], preferred_element_type=jnp.float32) + vec_ref[3:4, :c4]
    m = jnp.max(logits, axis=-1, keepdims=True)
    lse = jnp.log(jnp.sum(jnp.exp(logits - m), axis=-1, keepdims=True)) + m
    out_ref[...] = logits - lse


# --------------------------- tiling plan ---------------------------

def _plan_tiles(M, K, c0, c1, c2, c3):
    """Pick (tm, kc): row tile and neighbor-chunk size.

    kc bounds the widest per-chunk f32 intermediate (the (tm*kc, c3) activation);
    tm then grows to fill a budget derived from the actual chip's VMEM capacity,
    while keeping the row grid with >= _MIN_GRID_STEPS steps whenever M allows.
    """
    # neighbor chunk: divisor of K, multiple of 16 (bf16 sublane pack) when
    # possible, sized so kc * c3 * 4B stays ~<= 192 KiB per center row.
    kc = K
    kc_max = max(8, (192 * 1024) // (4 * c3))
    if K > kc_max:
        for step in (16, 8):
            cands = [c for c in range(step, K, step) if K % c == 0 and c <= kc_max]
            if cands:
                kc = max(cands)
                break

    # per-grid-step VMEM estimate (bytes)
    weights = 2 * (2 * (c0 * c1 + c1 * c2 + c2 * c3) + 4 * 8 * c3)   # dbl-buffered
    per_row = (2 * 2 * kc * c0            # bf16 feat block, double-buffered
               + 2 * 4 * c3 + 4 * c3      # f32 out block (dbl) + acc scratch
               + kc * (2 * c1 + 6 * c2 + 10 * c3))  # live intermediates (rough)
    budget = int(_VMEM_LIMIT * 0.55) - weights
    tm_cap = max(8, (budget // max(per_row, 1)) // 8 * 8)
    tm_steps = (M // _MIN_GRID_STEPS) // 8 * 8
    if tm_steps < 8:                      # M too small to split; single/few steps
        tm_steps = _round_up(max(M, 1), 8)
    tm = max(8, min(512, tm_cap, tm_steps))
    return tm, kc


# --------------------------- Pallas wrappers ---------------------------

def mlp_maxpool(feat, counts, p):
    """feat: (M, K, C0_pad8) float, counts: (M, 1) f32 -> (M, C3_pad128) f32.
    Padded output channels are exactly zero."""
    M, K, c0 = feat.shape
    assert c0 == p["w1"].shape[0]
    c1, c2, c3 = p["w1"].shape[1], p["w2"].shape[1], p["w3"].shape[1]
    tm, kc = _plan_tiles(M, K, c0, c1, c2, c3)

    feat = feat.astype(jnp.bfloat16)
    Mp = _round_up(M, tm)
    if Mp != M:
        feat = jnp.pad(feat, ((0, Mp - M), (0, 0), (0, 0)))
        counts = jnp.pad(counts, ((0, Mp - M), (0, 0)))   # count=0 -> masked rows

    grid = (Mp // tm, K // kc)
    in_specs = [
        pl.BlockSpec((tm, kc, c0), lambda i, k: (i, k, 0)),
        pl.BlockSpec((tm, 1), lambda i, k: (i, 0)),
        pl.BlockSpec(p["w1"].shape, lambda i, k: (0, 0)),
        pl.BlockSpec(p["w2"].shape, lambda i, k: (0, 0)),
        pl.BlockSpec(p["w3"].shape, lambda i, k: (0, 0)),
        pl.BlockSpec(p["vec"].shape, lambda i, k: (0, 0)),
    ]
    out = pl.pallas_call(
        _mlp_max_kernel,
        out_shape=jax.ShapeDtypeStruct((Mp, c3), jnp.float32),
        grid=grid,
        in_specs=in_specs,
        out_specs=pl.BlockSpec((tm, c3), lambda i, k: (i, 0)),
        scratch_shapes=[pltpu.VMEM((tm, c3), jnp.float32)],
        compiler_params=pltpu.CompilerParams(
            dimension_semantics=("parallel", "arbitrary"),
            vmem_limit_bytes=_VMEM_LIMIT),
    )(feat, counts, p["w1"], p["w2"], p["w3"], p["vec"])
    return out[:M]


def head_forward(x, hp):
    """x: (B, C) -> (B, n_out) log-probabilities (rows/classes padded internally)."""
    B, C = x.shape
    n_pad = hp["w4"].shape[1]
    tr = min(256, _round_up(B, 8))
    rows = _round_up(B, tr)
    xp = jnp.pad(x, ((0, rows - B), (0, 0))).astype(jnp.bfloat16)
    flat = [hp["w1"], hp["w2"], hp["w3"], hp["w4"], hp["vec"]]
    in_specs = [pl.BlockSpec((tr, C), lambda i: (i, 0))]
    in_specs += [pl.BlockSpec(w.shape, lambda i: (0, 0)) for w in flat]
    out = pl.pallas_call(
        _head_kernel,
        out_shape=jax.ShapeDtypeStruct((rows, n_pad), jnp.float32),
        grid=(rows // tr,),
        in_specs=in_specs,
        out_specs=pl.BlockSpec((tr, n_pad), lambda i: (i, 0)),
        compiler_params=pltpu.CompilerParams(
            dimension_semantics=("parallel",),
            vmem_limit_bytes=_VMEM_LIMIT),
    )(xp, *flat)
    return out[:B, :hp["n_out"]]


# --------------------------- JAX glue (graph construction) ---------------------------

def _fps(pos, n_samples):
    """Farthest point sampling on one point cloud (N, 3) -> (n_samples,) indices."""
    # TODO(synk): torch_geometric.fps uses a random start point; we start at index 0.
    d0 = jnp.sum((pos - pos[0]) ** 2, axis=-1)
    sel0 = jnp.zeros((n_samples,), jnp.int32)

    def body(i, state):
        sel, dists = state
        nxt = jnp.argmax(dists).astype(jnp.int32)
        sel = sel.at[i].set(nxt)
        d = jnp.sum((pos - pos[nxt]) ** 2, axis=-1)
        return sel, jnp.minimum(dists, d)

    sel, _ = lax.fori_loop(1, n_samples, body, (sel0, d0))
    return sel


def _radius_neighbors(pos, centers, r, k):
    """For each center: indices of the k nearest points of `pos` within radius r,
    plus the number of valid (within-radius) neighbors."""
    d2 = jnp.sum((centers[:, None, :] - pos[None, :, :]) ** 2, axis=-1)   # (S, N)
    within = d2 <= r * r
    d2m = jnp.where(within, d2, jnp.inf)
    _, idx = lax.top_k(-d2m, k)                  # valid neighbors come first
    counts = jnp.minimum(jnp.sum(within, axis=-1), k)   # >=1 (center is its own nbr)
    return idx, counts


def sa_module(x, c_real, pos, ratio, r, p, max_neighbors=64):
    """SAModule: fps + radius graph + PointConv(shared MLP, max-aggregate)."""
    # TODO(synk): at realistic N, fuse the neighbor gather into the kernel via
    # PrefetchScalarGridSpec scalar-prefetched nbr_idx + manual make_async_copy
    # from HBM-resident x/pos (memory_space=pl.ANY) instead of materializing the
    # (B*S, K, C) edge tensor in HBM.
    B, N, _ = x.shape
    S = max(1, int(round(N * ratio)))
    K = min(max_neighbors, N)
    idx = jax.vmap(lambda pp: _fps(pp, S))(pos)                           # (B, S)
    centers = jax.vmap(lambda pp, ii: pp[ii])(pos, idx)                   # (B, S, 3)
    nbr_idx, counts = jax.vmap(
        lambda pp, cc: _radius_neighbors(pp, cc, r, K))(pos, centers)     # (B, S, K)
    # gather in bf16 so the HBM edge tensor is half-width from the start
    x_real = x[..., :c_real].astype(jnp.bfloat16)
    pos16 = pos.astype(jnp.bfloat16)
    x_j = jax.vmap(lambda xb, ib: xb[ib])(x_real, nbr_idx)                # (B,S,K,c_real)
    pos_j = jax.vmap(lambda pb, ib: pb[ib])(pos16, nbr_idx)               # (B,S,K,3)
    rel = pos_j - centers.astype(jnp.bfloat16)[:, :, None, :]
    c_in = c_real + 3
    c0p = p["w1"].shape[0]                                                # c_in rounded to 8
    feat = jnp.concatenate([x_j, rel], axis=-1)
    if c0p > c_in:
        feat = jnp.pad(feat, ((0, 0), (0, 0), (0, 0), (0, c0p - c_in)))
    feat = feat.reshape(B * S, K, c0p)
    cnt = counts.reshape(B * S, 1).astype(jnp.float32)
    out = mlp_maxpool(feat, cnt, p)                                       # (B*S, C3_pad)
    return out.reshape(B, S, -1), p["c_out"], centers


def global_sa_module(x, c_real, pos, p):
    """GlobalSAModule: MLP on cat([x, pos]) then global max pool per graph."""
    B, N, _ = x.shape
    c_in = c_real + 3
    c0p = p["w1"].shape[0]
    feat = jnp.concatenate([x[..., :c_real], pos], axis=-1).astype(jnp.bfloat16)
    if c0p > c_in:
        feat = jnp.pad(feat, ((0, 0), (0, 0), (0, c0p - c_in)))
    cnt = jnp.full((B, 1), float(N), jnp.float32)
    return mlp_maxpool(feat, cnt, p)                                      # (B, 1024)


def net_forward(params, x, pos, y):
    c = x.shape[-1]
    h, c, p1 = sa_module(x, c, pos, 0.5, 0.2, params["sa1"])
    h, c, p2 = sa_module(h, c, p1, 0.5, 0.2, params["sa1a"])
    h, c, p3 = sa_module(h, c, p2, 0.25, 0.4, params["sa2"])
    g = global_sa_module(h, c, p3, params["sa3"])                         # (B, 1024)
    ng = params["num_global"]
    if ng > 0:
        g = jnp.concatenate([g, y[:, 1:ng + 1]], axis=1)
    return head_forward(g, params["head"])


# --------------------------- parameter init / folding / padding ---------------------------

def init_mlp_raw(key, channels):
    """Raw per-layer params for MLP([c0, c1, c2, c3]): (W, b, gamma, beta)."""
    layers = []
    for i in range(1, len(channels)):
        key, kw, kb, kg, kbe = jax.random.split(key, 5)
        cin, cout = channels[i - 1], channels[i]
        w = jax.random.normal(kw, (cin, cout), jnp.float32) / jnp.sqrt(cin)
        b = 0.01 * jax.random.normal(kb, (cout,), jnp.float32)
        gamma = 1.0 + 0.1 * jax.random.uniform(kg, (cout,), jnp.float32)   # > 0
        beta = 0.1 * jax.random.normal(kbe, (cout,), jnp.float32)
        layers.append((w, b, gamma, beta))
    return layers, key


def _fold_and_pad_mlp(raw_layers, c_in):
    """Fold eval-mode BatchNorm into the MLP; keep input channels at round-to-8
    (not 128!) and pad only output widths to multiples of 128.

    Reference layer: Linear -> ReLU -> BatchNorm:  a_i = ReLU(h @ W_i + b_i);
    h_out = a_i * s_i + t_i.  s1/t1 fold into (W2, b2), s2/t2 into (W3, b3);
    (s3, t3) is applied after the max-pool (exact because init keeps gamma > 0).
    """
    # TODO(synk): BN folded in eval mode with running_mean=0, running_var=1;
    # trained checkpoints need their real running statistics folded here, and
    # s3 > 0 is required for the post-pool affine to be exact.
    (W1, b1, g1, be1), (W2, b2, g2, be2), (W3, b3, g3, be3) = raw_layers
    eps = 1e-5
    s1, t1 = g1 / jnp.sqrt(1.0 + eps), be1
    s2, t2 = g2 / jnp.sqrt(1.0 + eps), be2
    s3, t3 = g3 / jnp.sqrt(1.0 + eps), be3
    W2f, b2f = s1[:, None] * W2, b2 + t1 @ W2
    W3f, b3f = s2[:, None] * W3, b3 + t2 @ W3

    c0p = _round_up(c_in, 8)
    c1p = _round_up(W1.shape[1], 128)
    c2p = _round_up(W2.shape[1], 128)
    c3p = _round_up(W3.shape[1], 128)

    def pad_w(W, rp, cp):
        return jnp.pad(W, ((0, rp - W.shape[0]), (0, cp - W.shape[1])))

    vec = jnp.zeros((8, c3p), jnp.float32)
    vec = vec.at[0, :b1.shape[0]].set(b1)
    vec = vec.at[1, :b2f.shape[0]].set(b2f)
    vec = vec.at[2, :b3f.shape[0]].set(b3f)
    vec = vec.at[3, :s3.shape[0]].set(s3)
    vec = vec.at[4, :t3.shape[0]].set(t3)

    return dict(
        w1=pad_w(W1, c0p, c1p).astype(jnp.bfloat16),
        w2=pad_w(W2f, c1p, c2p).astype(jnp.bfloat16),
        w3=pad_w(W3f, c2p, c3p).astype(jnp.bfloat16),
        vec=vec,
        c_out=int(W3.shape[1]),
    )


def init_head_raw(key, c_in, num_classes):
    dims = [(c_in, 512), (512, 256), (256, 128), (128, num_classes)]
    lins = []
    for cin, cout in dims:
        key, kw, kb = jax.random.split(key, 3)
        w = jax.random.normal(kw, (cin, cout), jnp.float32) / jnp.sqrt(cin)
        b = 0.01 * jax.random.normal(kb, (cout,), jnp.float32)
        lins.append((w, b))
    return lins, key


def _pad_head(lins):
    (w1, b1), (w2, b2), (w3, b3), (w4, b4) = lins
    n_out = int(w4.shape[1])
    n_pad = _round_up(n_out, 128)                   # 2 -> 128
    w4p = jnp.pad(w4, ((0, 0), (0, n_pad - n_out)))
    # padded classes get a very negative bias so exp(.) underflows to 0 exactly
    b4p = jnp.concatenate([b4, jnp.full((n_pad - n_out,), -1e30, jnp.float32)])
    cmax = max(b1.shape[0], b2.shape[0], b3.shape[0], n_pad)
    vec = jnp.zeros((8, cmax), jnp.float32)
    vec = vec.at[0, :b1.shape[0]].set(b1)
    vec = vec.at[1, :b2.shape[0]].set(b2)
    vec = vec.at[2, :b3.shape[0]].set(b3)
    vec = vec.at[3, :n_pad].set(b4p)
    bf = lambda a: a.astype(jnp.bfloat16)
    return dict(w1=bf(w1), w2=bf(w2), w3=bf(w3), w4=bf(w4p), vec=vec, n_out=n_out)


# --------------------------- main ---------------------------

if __name__ == "__main__":
    NUM_LOCAL, NUM_GLOBAL = 1, 2
    B, N = 2, 64

    key = jax.random.PRNGKey(0)
    raw1, key = init_mlp_raw(key, [3 + NUM_LOCAL, 64, 64, 96])
    raw1a, key = init_mlp_raw(key, [96 + 3, 96, 96, 128])
    raw2, key = init_mlp_raw(key, [128 + 3, 128, 128, 256])
    raw3, key = init_mlp_raw(key, [256 + 3, 256, 512, 1024])
    head_raw, key = init_head_raw(key, 1024 + NUM_GLOBAL, 2)

    params = {
        "sa1":  _fold_and_pad_mlp(raw1,  3 + NUM_LOCAL),    # 4   -> 8 input chans
        "sa1a": _fold_and_pad_mlp(raw1a, 96 + 3),           # 99  -> 104
        "sa2":  _fold_and_pad_mlp(raw2,  128 + 3),          # 131 -> 136
        "sa3":  _fold_and_pad_mlp(raw3,  256 + 3),          # 259 -> 264
        "head": _pad_head(head_raw),
        "num_global": NUM_GLOBAL,
    }

    key, kx, kp, ky = jax.random.split(key, 4)
    x = jax.random.normal(kx, (B, N, NUM_LOCAL), jnp.float32)    # local point features
    pos = jax.random.uniform(kp, (B, N, 3), jnp.float32)         # xyz positions
    y = jax.random.normal(ky, (B, 1 + NUM_GLOBAL), jnp.float32)  # data.y (global features)

    out = net_forward(params, x, pos, y)
    out = jax.block_until_ready(out)
    assert out.shape == (B, 2)
    assert bool(jnp.all(jnp.isfinite(out)))
    print("KERNEL_OK")
</pallas_src>

<mosaic_0001>
module attributes {stable_mosaic.version = 11 : i64} {
  func.func @_mlp_max_kernel(%arg0: i32, %arg1: i32, %arg2: memref<16x64x8xbf16, #tpu.memory_space<vmem>>, %arg3: memref<16x1xf32, #tpu.memory_space<vmem>>, %arg4: memref<8x128xbf16, #tpu.memory_space<vmem>>, %arg5: memref<128x128xbf16, #tpu.memory_space<vmem>>, %arg6: memref<128x128xbf16, #tpu.memory_space<vmem>>, %arg7: memref<8x128xf32, #tpu.memory_space<vmem>>, %arg8: memref<16x128xf32, #tpu.memory_space<vmem>>, %arg9: memref<16x128xf32, #tpu.memory_space<vmem>>) attributes {dimension_semantics = [#tpu.dimension_semantics<parallel>, #tpu.dimension_semantics<arbitrary>], iteration_bounds = array<i64: 4, 1>, scalar_prefetch = 0 : i64, scratch_operands = 1 : i64, tpu.core_type = #tpu.core_type<tc>, window_params = [{transform_indices = @transform_0, window_bounds = array<i64: 16, 64, 8>}, {transform_indices = @transform_1, window_bounds = array<i64: 16, 1>}, {pipeline_mode = #tpu.pipeline_mode<synchronous>, transform_indices = @transform_2, window_bounds = array<i64: 8, 128>}, {pipeline_mode = #tpu.pipeline_mode<synchronous>, transform_indices = @transform_3, window_bounds = array<i64: 128, 128>}, {pipeline_mode = #tpu.pipeline_mode<synchronous>, transform_indices = @transform_4, window_bounds = array<i64: 128, 128>}, {pipeline_mode = #tpu.pipeline_mode<synchronous>, transform_indices = @transform_5, window_bounds = array<i64: 8, 128>}, {transform_indices = @transform_6, window_bounds = array<i64: 16, 128>}]} {
    %c0_i32 = arith.constant 0 : i32
    %0 = arith.cmpi eq, %arg1, %c0_i32 : i32
    %1 = arith.extui %0 : i1 to i32
    %c0_i32_0 = arith.constant 0 : i32
    %2 = arith.cmpi ne, %1, %c0_i32_0 : i32
    scf.if %2 {
      %cst_27 = arith.constant 0.000000e+00 : f32
      %49 = vector.broadcast %cst_27 : f32 to vector<16x128xf32>
      %c0_28 = arith.constant 0 : index
      %c0_29 = arith.constant 0 : index
      %50 = vector.load %arg9[%c0_28, %c0_29] : memref<16x128xf32, #tpu.memory_space<vmem>>, vector<16x128xf32>
      tpu.vector_store %arg9[%c0_28, %c0_29], %49 {strides = array<i32>} : memref<16x128xf32, #tpu.memory_space<vmem>>, vector<16x128xf32>,
    } else {
    }
    %c0 = arith.constant 0 : index
    %c0_1 = arith.constant 0 : index
    %3 = vector.load %arg7[%c0, %c0_1] : memref<8x128xf32, #tpu.memory_space<vmem>>, vector<1x128xf32>
    %c1 = arith.constant 1 : index
    %c0_2 = arith.constant 0 : index
    %4 = vector.load %arg7[%c1, %c0_2] : memref<8x128xf32, #tpu.memory_space<vmem>>, vector<1x128xf32>
    %c2 = arith.constant 2 : index
    %c0_3 = arith.constant 0 : index
    %5 = vector.load %arg7[%c2, %c0_3] : memref<8x128xf32, #tpu.memory_space<vmem>>, vector<1x128xf32>
    %c0_4 = arith.constant 0 : index
    %c0_5 = arith.constant 0 : index
    %c0_6 = arith.constant 0 : index
    %6 = vector.load %arg2[%c0_4, %c0_5, %c0_6] : memref<16x64x8xbf16, #tpu.memory_space<vmem>>, vector<16x64x8xbf16>
    %7 = vector.shape_cast %6 : vector<16x64x8xbf16> to vector<1024x8xbf16>
    %c0_7 = arith.constant 0 : index
    %c0_8 = arith.constant 0 : index
    %8 = vector.load %arg4[%c0_7, %c0_8] : memref<8x128xbf16, #tpu.memory_space<vmem>>, vector<8x128xbf16>
    %cst = arith.constant dense<0.000000e+00> : vector<1024x128xf32>
    %9 = tpu.matmul %7, %8, %cst {dimension_numbers = #tpu.dot_dimension_numbers<[1], [0], [0], [1], [0, 0, 1, 1], [], []>} : vector<1024x8xbf16>, vector<8x128xbf16>, vector<1024x128xf32> -> vector<1024x128xf32>
    %10 = vector.broadcast %3 : vector<1x128xf32> to vector<1024x128xf32>
    %11 = arith.addf %9, %10 : vector<1024x128xf32>
    %cst_9 = arith.constant 0.000000e+00 : f32
    %12 = vector.broadcast %cst_9 : f32 to vector<1024x128xf32>
    %13 = arith.maximumf %11, %12 : vector<1024x128xf32>
    %14 = arith.truncf %13 : vector<1024x128xf32> to vector<1024x128xbf16>
    %c0_10 = arith.constant 0 : index
    %c0_11 = arith.constant 0 : index
    %15 = vector.load %arg5[%c0_10, %c0_11] : memref<128x128xbf16, #tpu.memory_space<vmem>>, vector<128x128xbf16>
    %cst_12 = arith.constant dense<0.000000e+00> : vector<1024x128xf32>
    %16 = tpu.matmul %14, %15, %cst_12 {dimension_numbers = #tpu.dot_dimension_numbers<[1], [0], [0], [1], [0, 0, 1, 1], [], []>} : vector<1024x128xbf16>, vector<128x128xbf16>, vector<1024x128xf32> -> vector<1024x128xf32>
    %17 = vector.broadcast %4 : vector<1x128xf32> to vector<1024x128xf32>
    %18 = arith.addf %16, %17 : vector<1024x128xf32>
    %cst_13 = arith.constant 0.000000e+00 : f32
    %19 = vector.broadcast %cst_13 : f32 to vector<1024x128xf32>
    %20 = arith.maximumf %18, %19 : vector<1024x128xf32>
    %21 = arith.truncf %20 : vector<1024x128xf32> to vector<1024x128xbf16>
    %c0_14 = arith.constant 0 : index
    %c0_15 = arith.constant 0 : index
    %22 = vector.load %arg6[%c0_14, %c0_15] : memref<128x128xbf16, #tpu.memory_space<vmem>>, vector<128x128xbf16>
    %cst_16 = arith.constant dense<0.000000e+00> : vector<1024x128xf32>
    %23 = tpu.matmul %21, %22, %cst_16 {dimension_numbers = #tpu.dot_dimension_numbers<[1], [0], [0], [1], [0, 0, 1, 1], [], []>} : vector<1024x128xbf16>, vector<128x128xbf16>, vector<1024x128xf32> -> vector<1024x128xf32>
    %24 = vector.broadcast %5 : vector<1x128xf32> to vector<1024x128xf32>
    %25 = arith.addf %23, %24 : vector<1024x128xf32>
    %cst_17 = arith.constant 0.000000e+00 : f32
    %26 = vector.broadcast %cst_17 : f32 to vector<1024x128xf32>
    %27 = arith.maximumf %25, %26 : vector<1024x128xf32>
    %c64_i32 = arith.constant 64 : i32
    %28 = arith.muli %arg1, %c64_i32 : i32
    %29 = tpu.iota {dimensions = array<i32: 1>} : vector<16x64xi32>
    %30 = vector.broadcast %28 : i32 to vector<16x64xi32>
    %31 = arith.addi %30, %29 : vector<16x64xi32>
    %32 = arith.sitofp %31 : vector<16x64xi32> to vector<16x64xf32>
    %c0_18 = arith.constant 0 : index
    %c0_19 = arith.constant 0 : index
    %33 = vector.load %arg3[%c0_18, %c0_19] : memref<16x1xf32, #tpu.memory_space<vmem>>, vector<16x1xf32>
    %34 = vector.broadcast %33 : vector<16x1xf32> to vector<16x64xf32>
    %35 = arith.cmpf olt, %32, %34 : vector<16x64xf32>
    %36 = arith.extui %35 : vector<16x64xi1> to vector<16x64xi32>
    %37 = arith.sitofp %36 : vector<16x64xi32> to vector<16x64xf32>
    %38 = vector.shape_cast %27 : vector<1024x128xf32> to vector<16x64x128xf32>
    %39 = vector.shape_cast %37 : vector<16x64xf32> to vector<16x64x1xf32>
    %40 = vector.broadcast %39 : vector<16x64x1xf32> to vector<16x64x128xf32>
    %41 = arith.mulf %38, %40 : vector<16x64x128xf32>
    %c0_20 = arith.constant 0 : index
    %c0_21 = arith.constant 0 : index
    %42 = vector.load %arg9[%c0_20, %c0_21] : memref<16x128xf32, #tpu.memory_space<vmem>>, vector<16x128xf32>
    %cst_22 = arith.constant dense<0xFF800000> : vector<16x128xf32>
    %43 = vector.multi_reduction <maximumf>, %41, %cst_22 [1] : vector<16x64x128xf32> to vector<16x128xf32>
    %44 = arith.maximumf %42, %43 : vector<16x128xf32>
    %c0_23 = arith.constant 0 : index
    %c0_24 = arith.constant 0 : index
    %45 = vector.load %arg9[%c0_23, %c0_24] : memref<16x128xf32, #tpu.memory_space<vmem>>, vector<16x128xf32>
    tpu.vector_store %arg9[%c0_23, %c0_24], %44 {strides = array<i32>} : memref<16x128xf32, #tpu.memory_space<vmem>>, vector<16x128xf32>,
    %c0_i32_25 = arith.constant 0 : i32
    %46 = arith.cmpi eq, %arg1, %c0_i32_25 : i32
    %47 = arith.extui %46 : i1 to i32
    %c0_i32_26 = arith.constant 0 : i32
    %48 = arith.cmpi ne, %47, %c0_i32_26 : i32
    scf.if %48 {
      %c3 = arith.constant 3 : index
      %c0_27 = arith.constant 0 : index
      %49 = vector.load %arg7[%c3, %c0_27] : memref<8x128xf32, #tpu.memory_space<vmem>>, vector<1x128xf32>
      %c4 = arith.constant 4 : index
      %c0_28 = arith.constant 0 : index
      %50 = vector.load %arg7[%c4, %c0_28] : memref<8x128xf32, #tpu.memory_space<vmem>>, vector<1x128xf32>
      %c0_29 = arith.constant 0 : index
      %c0_30 = arith.constant 0 : index
      %51 = vector.load %arg9[%c0_29, %c0_30] : memref<16x128xf32, #tpu.memory_space<vmem>>, vector<16x128xf32>
      %52 = vector.broadcast %49 : vector<1x128xf32> to vector<16x128xf32>
      %53 = arith.mulf %51, %52 : vector<16x128xf32>
      %54 = vector.broadcast %50 : vector<1x128xf32> to vector<16x128xf32>
      %55 = arith.addf %53, %54 : vector<16x128xf32>
      %c0_31 = arith.constant 0 : index
      %c0_32 = arith.constant 0 : index
      %56 = vector.load %arg8[%c0_31, %c0_32] : memref<16x128xf32, #tpu.memory_space<vmem>>, vector<16x128xf32>
      tpu.vector_store %arg8[%c0_31, %c0_32], %55 {strides = array<i32>} : memref<16x128xf32, #tpu.memory_space<vmem>>, vector<16x128xf32>,
    } else {
    }
    return
  }
  func.func @transform_0(%arg0: i32, %arg1: i32) -> (i32, i32, i32) {
    %c0_i32 = arith.constant 0 : i32
    %c0_i32_0 = arith.constant 0 : i32
    return %arg0, %arg1, %c0_i32 : i32, i32, i32
  }
  func.func @transform_1(%arg0: i32, %arg1: i32) -> (i32, i32) {
    %c0_i32 = arith.constant 0 : i32
    %c0_i32_0 = arith.constant 0 : i32
    return %arg0, %c0_i32 : i32, i32
  }
  func.func @transform_2(%arg0: i32, %arg1: i32) -> (i32, i32) {
    %c0_i32 = arith.constant 0 : i32
    %c0_i32_0 = arith.constant 0 : i32
    %c0_i32_1 = arith.constant 0 : i32
    return %c0_i32, %c0_i32_0 : i32, i32
  }
  func.func @transform_3(%arg0: i32, %arg1: i32) -> (i32, i32) {
    %c0_i32 = arith.constant 0 : i32
    %c0_i32_0 = arith.constant 0 : i32
    %c0_i32_1 = arith.constant 0 : i32
    return %c0_i32, %c0_i32_0 : i32, i32
  }
  func.func @transform_4(%arg0: i32, %arg1: i32) -> (i32, i32) {
    %c0_i32 = arith.constant 0 : i32
    %c0_i32_0 = arith.constant 0 : i32
    %c0_i32_1 = arith.constant 0 : i32
    return %c0_i32, %c0_i32_0 : i32, i32
  }
  func.func @transform_5(%arg0: i32, %arg1: i32) -> (i32, i32) {
    %c0_i32 = arith.constant 0 : i32
    %c0_i32_0 = arith.constant 0 : i32
    %c0_i32_1 = arith.constant 0 : i32
    return %c0_i32, %c0_i32_0 : i32, i32
  }
  func.func @transform_6(%arg0: i32, %arg1: i32) -> (i32, i32) {
    %c0_i32 = arith.constant 0 : i32
    %c0_i32_0 = arith.constant 0 : i32
    return %arg0, %c0_i32 : i32, i32
  }
}

</mosaic_0001>

<bundles_post_ra>
// kernel: tpu_custom_call.1
= control target key start
LH: loop header
LB: loop body
LE: loop exit
PB: predicated region body
PF: predicated region fallthrough
CT: control target
= control target key end

     0   :  { %11 = vsyncpa [#allocation4], 0  ;;  %s6799_s0 = inlined_call_operand.vmem [shape: bf16[64,64,8], index: 0, kind: input, shape index: {}]   ;;  %s6800_s1 = inlined_call_operand.vmem [shape: f32[64,1], index: 1, kind: input, shape index: {}]   ;;  %s6801_s2 = inlined_call_operand.vmem [shape: bf16[8,128], index: 2, kind: input, shape index: {}]   ;;  %s6802_s3 = inlined_call_operand.vmem [shape: bf16[128,128], index: 3, kind: input, shape index: {}]   ;;  %s6803_s4 = inlined_call_operand.vmem [shape: bf16[128,128], index: 4, kind: input, shape index: {}]   ;;  %s6804_s5 = inlined_call_operand.vmem [shape: f32[8,128], index: 5, kind: input, shape index: {}]   ;;  %s6805_s6 = inlined_call_operand.hbm [shape: f32[64,128], index: 6, kind: output, shape index: {}]  }
   0x1   :  { %13 = vsyncpa [#allocation4 + $0x1], 0  ;;  %s5400_s21 = smov 0   ;;  %s5402_s22 = smov 0  }
   0x2   :  { %s5404_s23 = smov 0   ;;  %s5406_s24 = smov 0  }
   0x3   :  { %s5408_s25 = smov 0   ;;  %s5410_s26 = smov 0  }
   0x4 LB: > { %s4337_s27 = sadd.s32 4294967295, %s5358_s26   ;;  %s4338_s28 = sadd.s32 4294967294, %s5358_s26   ;;  %s5358_s26 = sphi %s5410_s26, %s19_s26   ;;  %s5354_s25 = sphi %s5408_s25, %s6856_s25   ;;  %s5350_s24 = sphi %s5406_s24, %s6855_s24   ;;  %s5346_s23 = sphi %s5404_s23, %s6854_s23   ;;  %s5342_s22 = sphi %s5402_s22, %s6853_s22   ;;  %s5338_s21 = sphi %s5400_s21, %s6852_s21  }
   0x5   : > { %s31_s29 = sadd.s32 1, %s5354_s25  ;;  %s176_s30 = sadd.s32 1, %s5346_s23 }
   0x6   : > { %p33_p0 = scmp.ge.s32.totalorder %s31_s29, 4  ;;  %p186_p1 = scmp.ne.s32.totalorder %s5346_s23, %s5342_s22 }
   0x7   : > { %p187_p2 = scmp.eq.s32.totalorder %s4337_s27, 3  ;;  %p192_p3 = scmp.ne.s32.totalorder %s5342_s22, %s5338_s21 }
   0x8   : > { %s6858_s29 = smov (%p33_p0, %s31_s29), 0  ;;  %p193_p5 = scmp.eq.s32.totalorder %s4338_s28, 3 }
   0x9   : > { %p5440_p4 = por %p187_p2, %p186_p1  ;;  %s173_s8 = ssub.s32 %s5354_s25, %s6858_s29 }
   0xa   : > { %p4341_p6 = scmp.ge.s32.totalorder %s5358_s26, 1  ;;  %p174_p7 = scmp.eq.s32.totalorder %s173_s8, 0 }
   0xb   : > { %p5447_p8 = por %p193_p5, %p192_p3  ;;  %p247_p9 = scmp.lt.s32.totalorder %s5358_s26, 5 }
   0xc   : > { %s5453_s10 = scalar_select %p174_p7, %s5346_s23, %s176_s30  }
   0xd   : > { %p248_p10 = pnand %p4341_p6, %p247_p9 }
   0xf   : > { %251 = sbr.rel (%p248_p10) target bundleno = 983 (0x3d7), region = 44 }
  0x16   : > { %v444_v0 = vld [vmem:[%s6801_s2] sm:$0xf]  ;;  %vm962_vm0 = vcmask 1043456   ;;  %s4343_s13 = sshll.u32 %s5350_s24, 4  ;;  %v5360_v3 = vmov 0   ;;  %vm769_vm1 = vcmask 64512  }
  0x17   : > { %v5223_v1 = vld [vmem:[%s6802_s3] sm:$0xff]   ;;  %5135 = vmatprep.subr.msk.bf16.mxu0 %vm962_vm0, %v444_v0  ;;  %v964_v2 = vsel %vm962_vm0, %v444_v0, 0  ;;  %p289_p11 = scmp.lt.s32.totalorder %s4343_s13, 63  ;;  %5136 = vmatprep.subr.msk.bf16.mxu1 %vm962_vm0, %v444_v0  ;;  %v5232_v13 = vld [vmem:[%s6802_s3 + $0x8] sm:$0xff]   ;;  %v5241_v16 = vld [vmem:[%s6802_s3 + $0x10] sm:$0xff]   ;;  %s4346_s8 = sshll.u32 %s5350_s24, 1 }
  0x18   : > { %4716 = vmatpush3.bf16.msra.mxu0 %v964_v2  ;;  %5134 = vmatpush3.bf16.msra.mxu1 %v964_v2  ;;  %v5246_v22 = vld [vmem:[%s6802_s3 + $0x18] sm:$0xff]   ;;  %p300_p12 = scmp.lt.s32.totalorder %s4346_s8, 7  ;;  %v5251_v23 = vld [vmem:[%s6802_s3 + $0x20] sm:$0xff]   ;;  %v5256_v35 = vld [vmem:[%s6802_s3 + $0x28] sm:$0xff]   ;;  %vm4187_vm4 = vcmask 1041409   ;;  %vm4189_vm5 = vcmask 1042434  }
  0x19   : > { %s6860_s13 = smov (!%p289_p11, %s4343_s13), 63  ;;  %4845 = vmatprep.subr.bf16.mxu1 %v5223_v1  ;;  %5196 = vset.pattern.permute.xlu0 %v5360_v3  ;;  %v5261_v38 = vld [vmem:[%s6802_s3 + $0x30] sm:$0xff]   ;;  %v5266_v43 = vld [vmem:[%s6802_s3 + $0x38] sm:$0xff]   ;;  %vm4191_vm6 = vcmask 1043459   ;;  %vm4193_vm7 = vcmask 1044484   ;;  %vm4195_vm8 = vcmask 1045509  }
  0x1a   : > { %s4504_s16 = sshll.u32 %s6860_s13, 5  ;;  %s6862_s8 = smov (!%p300_p12, %s4346_s8), 7  ;;  %vm4197_vm9 = vcmask 1046534   ;;  %vm4199_vm10 = vcmask 1047559  }
  0x1b   : > { %s5465_s19 = scalar_lea.vmem %s6799_s0, %s4504_s16  ;;  %s4347_s15 = sshll.u32 %s6862_s8, 3 }
  0x1c   : > { %v5197_v4 = vld [vmem:[%s5465_s19] sm:$0xff]   ;;  %v5198_v5 = vld [vmem:[%s5465_s19 + $0x8] sm:$0xff]   ;;  %v5199_v6 = vld [vmem:[%s5465_s19 + $0x10] sm:$0xff]   ;;  %s5526_s18 = scalar_lea.vmem %s6800_s1, %s4347_s15  ;;  %s5362_s11 = smov [#allocation3]  }
  0x1d   : > { %4717 = vmatprep.mubr.msk.bf16.mxu0 %vm769_vm1, %v5197_v4  ;;  %v5200_v7 = vld [vmem:[%s5465_s19 + $0x18] sm:$0xff]   ;;  %v5201_v8 = vld [vmem:[%s5465_s19 + $0x20] sm:$0xff]   ;;  %v5202_v9 = vld [vmem:[%s5465_s19 + $0x28] sm:$0xff]   ;;  %s5284_s12 = sshll.u32 %s5362_s11, 4  ;;  %s5285_s12 = int_to_ptr.vmem [resolvable:$false] %s5284_s12 }
  0x1e   : > { %4718 = vmatmul.mubr.msk.bf16.vlgmr.msra.gmra.mrb[0].mxu0 %vm769_vm1, %v5198_v5  ;;  %v5203_v10 = vld [vmem:[%s5465_s19 + $0x30] sm:$0xff]   ;;  %v5204_v11 = vld [vmem:[%s5465_s19 + $0x38] sm:$0xff]   ;;  %v5205_v12 = vld [vmem:[%s5465_s19 + $0x40] sm:$0xff]   ;;  %s5286_s13 = scalar_lea.vmem %s5285_s12, 512 }
  0x1f   : > { %4721 = vmatprep.mubr.msk.bf16.mxu0 %vm769_vm1, %v5199_v6  ;;  %v5221_v14 = vld [vmem:[%s5465_s19 + $0x100] sm:$0xff]   ;;  %v5222_v15 = vld [vmem:[%s5465_s19 + $0x108] sm:$0xff]   ;;  %v5226_v17 = vld [vmem:[%s5465_s19 + $0x110] sm:$0xff]  }
  0x20   : > { %4781 = vmatprep.mubr.msk.bf16.mxu1 %vm769_vm1, %v5221_v14  ;;  %v5206_v18 = vld [vmem:[%s5465_s19 + $0x48] sm:$0xff]   ;;  %v5207_v19 = vld [vmem:[%s5465_s19 + $0x50] sm:$0xff]   ;;  %v5227_v20 = vld [vmem:[%s5465_s19 + $0x118] sm:$0xff]  }
  0x21   : > { %4782 = vmatmul.mubr.msk.bf16.vlgmr.msra.gmra.mrb[0].mxu1 %vm769_vm1, %v5222_v15  ;;  %v5230_v21 = vld [vmem:[%s5465_s19 + $0x120] sm:$0xff]   ;;  %v5208_v24 = vld [vmem:[%s5465_s19 + $0x58] sm:$0xff]   ;;  %v5231_v26 = vld [vmem:[%s5465_s19 + $0x128] sm:$0xff]  }
  0x22   : > { %4846 = vmatpush3.bf16.msra.mxu1 %v5223_v1  ;;  %4785 = vmatprep.mubr.msk.bf16.mxu1 %vm769_vm1, %v5226_v17  ;;  %v5209_v25 = vld [vmem:[%s5465_s19 + $0x60] sm:$0xff]   ;;  %v5235_v27 = vld [vmem:[%s5465_s19 + $0x130] sm:$0xff]   ;;  %v5210_v28 = vld [vmem:[%s5465_s19 + $0x68] sm:$0xff]  }
  0x23   : > { %4847 = vmatprep.subr.bf16.mxu1 %v5232_v13  ;;  %v5211_v29 = vld [vmem:[%s5465_s19 + $0x70] sm:$0xff]   ;;  %v5236_v30 = vld [vmem:[%s5465_s19 + $0x138] sm:$0xff]   ;;  %v5239_v31 = vld [vmem:[%s5465_s19 + $0x140] sm:$0xff]  }
  0x24   : > { %v3255_v32 = vld [vmem:[%s5526_s18] sm:$0xff]  ;;  %v5212_v33 = vld [vmem:[%s5465_s19 + $0x78] sm:$0xff]   ;;  %v5240_v36 = vld [vmem:[%s5465_s19 + $0x148] sm:$0xff]  }
  0x25   : > { %3259 = vperm.xlu0 %5196, %v3255_v32   ;;  %v5213_v34 = vld [vmem:[%s5465_s19 + $0x80] sm:$0xff]   ;;  %v5242_v37 = vld [vmem:[%s5465_s19 + $0x150] sm:$0xff]   ;;  %v5214_v39 = vld [vmem:[%s5465_s19 + $0x88] sm:$0xff]  }
  0x26   : > { %4722 = vmatmul.mubr.msk.bf16.gmra.mrb[4].mxu0 %vm769_vm1, %v5200_v7  ;;  %4848 = vmatpush3.bf16.msra.mxu1 %v5232_v13  ;;  %v5215_v40 = vld [vmem:[%s5465_s19 + $0x90] sm:$0xff]   ;;  %v5243_v41 = vld [vmem:[%s5465_s19 + $0x158] sm:$0xff]   ;;  %v5244_v42 = vld [vmem:[%s5465_s19 + $0x160] sm:$0xff]   ;;  %v3250_v13 = vlaneseq }
  0x27   : > { %4725 = vmatprep.mubr.msk.bf16.mxu0 %vm769_vm1, %v5201_v8  ;;  %4849 = vmatprep.subr.bf16.mxu1 %v5241_v16  ;;  %v5216_v44 = vld [vmem:[%s5465_s19 + $0x98] sm:$0xff]   ;;  %v5245_v45 = vld [vmem:[%s5465_s19 + $0x168] sm:$0xff]   ;;  %v5217_v46 = vld [vmem:[%s5465_s19 + $0xa0] sm:$0xff]  }
  0x28   : > { %v5247_v47 = vld [vmem:[%s5465_s19 + $0x170] sm:$0xff]   ;;  %v5218_v48 = vld [vmem:[%s5465_s19 + $0xa8] sm:$0xff]   ;;  %v5248_v49 = vld [vmem:[%s5465_s19 + $0x178] sm:$0xff]   ;;  %v5624_v14 = vand.u32 127, %v3250_v13  ;;  %v5626_v15 = vshrl.u32 %v3250_v13, 7 }
  0x29   : > { %4786 = vmatmul.mubr.msk.bf16.gmra.mrb[4].mxu1 %vm769_vm1, %v5227_v20  ;;  %v5219_v50 = vld [vmem:[%s5465_s19 + $0xb0] sm:$0xff]   ;;  %v5249_v51 = vld [vmem:[%s5465_s19 + $0x180] sm:$0xff]   ;;  %v5220_v52 = vld [vmem:[%s5465_s19 + $0xb8] sm:$0xff]  }
  0x2a   : > { %4789 = vmatprep.mubr.msk.bf16.mxu1 %vm769_vm1, %v5230_v21  ;;  %4850 = vmatpush3.bf16.msra.mxu1 %v5241_v16  ;;  %v5250_v53 = vld [vmem:[%s5465_s19 + $0x188] sm:$0xff]   ;;  %v5224_v54 = vld [vmem:[%s5465_s19 + $0xc0] sm:$0xff]   ;;  %v5252_v55 = vld [vmem:[%s5465_s19 + $0x190] sm:$0xff]   ;;  %v3254_v16 = vcvt.s32.f32 %v5624_v14  ;;  %v3275_v17 = vsub.s32 0, %v5626_v15 }
  0x2b   : > { %4851 = vmatprep.subr.bf16.mxu1 %v5246_v22  ;;  %v5225_v56 = vld [vmem:[%s5465_s19 + $0xc8] sm:$0xff]   ;;  %v5253_v57 = vld [vmem:[%s5465_s19 + $0x198] sm:$0xff]   ;;  %v5228_v58 = vld [vmem:[%s5465_s19 + $0xd0] sm:$0xff]  }
  0x2c   : > { %v5254_v59 = vld [vmem:[%s5465_s19 + $0x1a0] sm:$0xff]   ;;  %v5229_v60 = vld [vmem:[%s5465_s19 + $0xd8] sm:$0xff]   ;;  %v5255_v61 = vld [vmem:[%s5465_s19 + $0x1a8] sm:$0xff]  }
  0x2d   : > { %v5233_v62 = vld [vmem:[%s5465_s19 + $0xe0] sm:$0xff]   ;;  %v5257_v63 = vld [vmem:[%s5465_s19 + $0x1b0] sm:$0xff]   ;;  %v5234_v0 = vld [vmem:[%s5465_s19 + $0xe8] sm:$0xff]  }
  0x2e   : > { %4726 = vmatmul.mubr.msk.bf16.gmra.mrb[8].mxu0 %vm769_vm1, %v5202_v9  ;;  %4852 = vmatpush3.bf16.msra.mxu1 %v5246_v22  ;;  %v5258_v1 = vld [vmem:[%s5465_s19 + $0x1b8] sm:$0xff]   ;;  %v5237_v2 = vld [vmem:[%s5465_s19 + $0xf0] sm:$0xff]   ;;  %v5259_v3 = vld [vmem:[%s5465_s19 + $0x1c0] sm:$0xff]   ;;  %v3310_v22 = vsub.s32 1, %v5626_v15 }
  0x2f   : > { %4729 = vmatprep.mubr.msk.bf16.mxu0 %vm769_vm1, %v5203_v10  ;;  %4853 = vmatprep.subr.bf16.mxu1 %v5251_v23  ;;  %v5238_v4 = vld [vmem:[%s5465_s19 + $0xf8] sm:$0xff]   ;;  %v5260_v5 = vld [vmem:[%s5465_s19 + $0x1c8] sm:$0xff]   ;;  %v5262_v6 = vld [vmem:[%s5465_s19 + $0x1d0] sm:$0xff]  }
  0x30   : > { %v5263_v7 = vld [vmem:[%s5465_s19 + $0x1d8] sm:$0xff]   ;;  %v5264_v8 = vld [vmem:[%s5465_s19 + $0x1e0] sm:$0xff]   ;;  %v5265_v9 = vld [vmem:[%s5465_s19 + $0x1e8] sm:$0xff]  }
  0x31   : > { %4790 = vmatmul.mubr.msk.bf16.gmra.mrb[8].mxu1 %vm769_vm1, %v5231_v26  ;;  %v5267_v10 = vld [vmem:[%s5465_s19 + $0x1f0] sm:$0xff]  }
  0x32   : > { %4793 = vmatprep.mubr.msk.bf16.mxu1 %vm769_vm1, %v5235_v27  ;;  %4854 = vmatpush3.bf16.msra.mxu1 %v5251_v23  ;;  %v5270_v27 = vld [vmem:[%s6803_s4 + $0x8] sm:$0xff]  }
  0x33   : > { %4855 = vmatprep.subr.bf16.mxu1 %v5256_v35 }
  0x36   : > { %4730 = vmatmul.mubr.msk.bf16.gmra.mrb[12].mxu0 %vm769_vm1, %v5204_v11  ;;  %4856 = vmatpush3.bf16.msra.mxu1 %v5256_v35  ;;  %v5268_v11 = vld [vmem:[%s5465_s19 + $0x1f8] sm:$0xff]   ;;  %s284_s19 = sand.u32 1, %s5342_s22  }
  0x37   : > { %4733 = vmatprep.mubr.msk.bf16.mxu0 %vm769_vm1, %v5205_v12  ;;  %4857 = vmatprep.subr.bf16.mxu1 %v5261_v38  ;;  %v3256_v12 = vld [vmem:[%s5526_s18 + $0x8] sm:$0xff]  ;;  %s4342_s14 = sshll.u32 %s284_s19, 4  ;;  %s4505_s18 = sshll.u32 %s5350_s24, 8 }
  0x38   : > { %3264 = vperm.xlu0 %5196, %v3256_v12   ;;  %v3415_v12 = vsub.s32 4, %v5626_v15  ;;  %s6623_s17 = scalar_lea.vmem [#allocation3], %s4342_s14  ;;  %s6745_s30 = scalar_lea.hbm %s6805_s6, %s4505_s18 }
  0x39   : > { %4794 = vmatmul.mubr.msk.bf16.gmra.mrb[12].mxu1 %vm769_vm1, %v5236_v30  ;;  %s4249_s20 = sshll.u32 %s6623_s17, 4  ;;  %s6753_s8 = scalar_lea.sflag [#allocation4], %s284_s19  ;;  %s6747_s20 = int_to_ptr.vmem [resolvable:$true] %s4249_s20 }
  0x3a   : > { %4797 = vmatprep.mubr.msk.bf16.mxu1 %vm769_vm1, %v5239_v31  ;;  %4858 = vmatpush3.bf16.msra.mxu1 %v5261_v38  ;;  %s5280_s24 = scalar_lea.vmem %s6747_s20, 256  ;;  %p5287_p2 = scmp.lt.s32.totalorder %s6747_s20, %s5285_s12 }
  0x3b   : > { %4859 = vmatprep.subr.bf16.mxu1 %v5266_v43  ;;  %p5281_p13 = scmp.ne.s32.totalorder %s6747_s20, %s5280_s24  ;;  %p5288_p3 = scmp.lt.s32.totalorder %s5286_s13, %s5280_s24 }
  0x3d   : > { %p5282_p0 = pnand %p5281_p13, %p5440_p4  ;;  %p5289_p5 = por %p5288_p3, %p5287_p2 }
  0x3e   : > { %4734 = vmatmul.mubr.msk.bf16.gmra.mrb[16].mxu0 %vm769_vm1, %v5206_v18  ;;  %4860 = vmatpush3.bf16.msra.mxu1 %v5266_v43 }
  0x3f   : > { %4737 = vmatprep.mubr.msk.bf16.mxu0 %vm769_vm1, %v5207_v19  ;;  %v5361_v19 = vmov 0.0   ;;  %p5283_p1 = pneg %p5282_p0 }
  0x41   : > { %4798 = vmatmul.mubr.msk.bf16.gmra.mrb[16].mxu1 %vm769_vm1, %v5240_v36  ;;  %p5290_p6 = pnand %p5289_p5, %p5283_p1 }
  0x42   : > { %4801 = vmatprep.mubr.msk.bf16.mxu1 %vm769_vm1, %v5242_v37  ;;  %v5271_v37 = vld [vmem:[%s6803_s4 + $0x10] sm:$0xff]  }
  0x46   : > { %4738 = vmatmul.mubr.msk.bf16.gmra.mrb[20].mxu0 %vm769_vm1, %v5208_v24  ;;  %v5269_v24 = vld [vmem:[%s6803_s4] sm:$0xff]  }
  0x47   : > { %4741 = vmatprep.mubr.msk.bf16.mxu0 %vm769_vm1, %v5209_v25  ;;  %4989 = vmatprep.subr.bf16.mxu0 %v5269_v24  ;;  %v3345_v25 = vsub.s32 2, %v5626_v15 }
  0x48   : > { %4990 = vmatpush3.bf16.msra.mxu0 %v5269_v24 }
  0x49   : > { %4802 = vmatmul.mubr.msk.bf16.gmra.mrb[20].mxu1 %vm769_vm1, %v5243_v41  ;;  %4991 = vmatprep.subr.bf16.mxu0 %v5270_v27 }
  0x4a   : > { %4805 = vmatprep.mubr.msk.bf16.mxu1 %vm769_vm1, %v5244_v42 }
  0x4c   : > { %4992 = vmatpush3.bf16.msra.mxu0 %v5270_v27 }
  0x4d   : > { %4993 = vmatprep.subr.bf16.mxu0 %v5271_v37 }
  0x4e   : > { %4742 = vmatmul.mubr.msk.bf16.gmra.mrb[24].mxu0 %vm769_vm1, %v5210_v28  ;;  %v5655_v28 = vld [vmem:[%s6804_s5] ss:$0 sm:$0xff] }
  0x4f   : > { %4745 = vmatprep.mubr.msk.bf16.mxu0 %vm769_vm1, %v5211_v29 }
  0x50   : > { %4994 = vmatpush3.bf16.msra.mxu0 %v5271_v37 }
  0x51   : > { %4806 = vmatmul.mubr.msk.bf16.gmra.mrb[24].mxu1 %vm769_vm1, %v5245_v45  ;;  %v3380_v45 = vsub.s32 3, %v5626_v15 }
  0x52   : > { %4809 = vmatprep.mubr.msk.bf16.mxu1 %vm769_vm1, %v5247_v47 }
  0x56   : > { %4746 = vmatmul.mubr.msk.bf16.gmra.mrb[28].mxu0 %vm769_vm1, %v5212_v33 }
  0x57   : > { %4749 = vmatprep.mubr.msk.bf16.mxu0 %vm769_vm1, %v5213_v34 }
  0x59   : > { %4810 = vmatmul.mubr.msk.bf16.gmra.mrb[28].mxu1 %vm769_vm1, %v5248_v49 }
  0x5a   : > { %4813 = vmatprep.mubr.msk.bf16.mxu1 %vm769_vm1, %v5249_v51 }
  0x5e   : > { %4750 = vmatmul.mubr.msk.bf16.gmra.mrb[32].mxu0 %vm769_vm1, %v5214_v39 }
  0x5f   : > { %4753 = vmatprep.mubr.msk.bf16.mxu0 %vm769_vm1, %v5215_v40 }
  0x61   : > { %4814 = vmatmul.mubr.msk.bf16.gmra.mrb[32].mxu1 %vm769_vm1, %v5250_v53 }
  0x62   : > { %4817 = vmatprep.mubr.msk.bf16.mxu1 %vm769_vm1, %v5252_v55 }
  0x66   : > { %4754 = vmatmul.mubr.msk.bf16.gmra.mrb[36].mxu0 %vm769_vm1, %v5216_v44 }
  0x67   : > { %4757 = vmatprep.mubr.msk.bf16.mxu0 %vm769_vm1, %v5217_v46 }
  0x69   : > { %4818 = vmatmul.mubr.msk.bf16.gmra.mrb[36].mxu1 %vm769_vm1, %v5253_v57 }
  0x6a   : > { %4821 = vmatprep.mubr.msk.bf16.mxu1 %vm769_vm1, %v5254_v59 }
  0x6e   : > { %4758 = vmatmul.mubr.msk.bf16.gmra.mrb[40].mxu0 %vm769_vm1, %v5218_v48 }
  0x6f   : > { %4761 = vmatprep.mubr.msk.bf16.mxu0 %vm769_vm1, %v5219_v50 }
  0x71   : > { %4822 = vmatmul.mubr.msk.bf16.gmra.mrb[40].mxu1 %vm769_vm1, %v5255_v61 }
  0x72   : > { %4825 = vmatprep.mubr.msk.bf16.mxu1 %vm769_vm1, %v5257_v63 }
  0x76   : > { %4762 = vmatmul.mubr.msk.bf16.gmra.mrb[44].mxu0 %vm769_vm1, %v5220_v52 }
  0x77   : > { %4765 = vmatprep.mubr.msk.bf16.mxu0 %vm769_vm1, %v5224_v54 }
  0x79   : > { %4826 = vmatmul.mubr.msk.bf16.gmra.mrb[44].mxu1 %vm769_vm1, %v5258_v1 }
  0x7a   : > { %4829 = vmatprep.mubr.msk.bf16.mxu1 %vm769_vm1, %v5259_v3 }
  0x7e   : > { %4766 = vmatmul.mubr.msk.bf16.gmra.mrb[48].mxu0 %vm769_vm1, %v5225_v56 }
  0x7f   : > { %4769 = vmatprep.mubr.msk.bf16.mxu0 %vm769_vm1, %v5228_v58 }
  0x81   : > { %4830 = vmatmul.mubr.msk.bf16.gmra.mrb[48].mxu1 %vm769_vm1, %v5260_v5 }
  0x82   : > { %4833 = vmatprep.mubr.msk.bf16.mxu1 %vm769_vm1, %v5262_v6 }
  0x86   : > { %4770 = vmatmul.mubr.msk.bf16.gmra.mrb[52].mxu0 %vm769_vm1, %v5229_v60 }
  0x87   : > { %4773 = vmatprep.mubr.msk.bf16.mxu0 %vm769_vm1, %v5233_v62 }
  0x89   : > { %4834 = vmatmul.mubr.msk.bf16.gmra.mrb[52].mxu1 %vm769_vm1, %v5263_v7 }
  0x8a   : > { %4837 = vmatprep.mubr.msk.bf16.mxu1 %vm769_vm1, %v5264_v8 }
  0x8e   : > { %4774 = vmatmul.mubr.msk.bf16.gmra.mrb[56].mxu0 %vm769_vm1, %v5234_v0 }
  0x8f   : > { %4777 = vmatprep.mubr.msk.bf16.mxu0 %vm769_vm1, %v5237_v2 }
  0x91   : > { %4838 = vmatmul.mubr.msk.bf16.gmra.mrb[56].mxu1 %vm769_vm1, %v5265_v9 }
  0x92   : > { %4841 = vmatprep.mubr.msk.bf16.mxu1 %vm769_vm1, %v5267_v10 }
  0x96   : > { %4778 = vmatmul.mubr.msk.bf16.gmra.mrb[60].mxu0 %vm769_vm1, %v5238_v4  ;;  %v5272_v4 = vld [vmem:[%s6803_s4 + $0x18] sm:$0xff]  }
  0x97   : > { %4995 = vmatprep.subr.bf16.mxu0 %v5272_v4 }
  0x98   : > { %4996 = vmatpush3.bf16.msra.mxu0 %v5272_v4 }
  0x99   : > { %4842 = vmatmul.mubr.msk.bf16.gmra.mrb[60].mxu1 %vm769_vm1, %v5268_v11 }
  0xa4   : > { %v3260_v18 = vpop.permute.xlu0 %3259 }
  0xa5   : > { %vm3267_vm2 = vcmp.lt.f32.partialorder %v3254_v16, %v3260_v18 }
  0xa6   : > { %v5633_v20 = vsel %vm3267_vm2, 1.0, %v5361_v19 }
  0xa7   : > { %v3276_v21 = vrot.slane %v5633_v20, %v3275_v17  ;;  %v3311_v23 = vrot.slane %v5633_v20, %v3310_v22  ;;  %v3346_v26 = vrot.slane %v5633_v20, %v3345_v25  ;;  %v5672_v53 = vrot.slane %v5633_v20, %v3380_v45 }
  0xa8   : > { %v5697_v37 = vrot.slane %v5633_v20, %v3415_v12 }
  0xa9   : > { %3278 = vbcast.lane.b32.xlu1 %v3276_v21, 256  ;;  %3286 = vbcast.lane.b32.xlu0 %v3276_v21, 272 }
  0xad   : > { %3282 = vbcast.lane.b32.xlu1 %v3276_v21, 264  ;;  %3294 = vbcast.lane.b32.xlu0 %v3276_v21, 288 }
  0xb1   : > { %3290 = vbcast.lane.b32.xlu1 %v3276_v21, 280  ;;  %3302 = vbcast.lane.b32.xlu0 %v3276_v21, 304 }
  0xb5   : > { %3298 = vbcast.lane.b32.xlu1 %v3276_v21, 296  ;;  %3313 = vbcast.lane.b32.xlu0 %v3311_v23, 256 }
  0xb9   : > { %3306 = vbcast.lane.b32.xlu1 %v3276_v21, 312  ;;  %3321 = vbcast.lane.b32.xlu0 %v3311_v23, 272 }
  0xbd   : > { %3317 = vbcast.lane.b32.xlu1 %v3311_v23, 264  ;;  %3329 = vbcast.lane.b32.xlu0 %v3311_v23, 288 }
  0xc1   : > { %3325 = vbcast.lane.b32.xlu1 %v3311_v23, 280  ;;  %3337 = vbcast.lane.b32.xlu0 %v3311_v23, 304 }
  0xc5   : > { %3333 = vbcast.lane.b32.xlu1 %v3311_v23, 296  ;;  %3348 = vbcast.lane.b32.xlu0 %v3346_v26, 256 }
  0xc9   : > { %3341 = vbcast.lane.b32.xlu1 %v3311_v23, 312  ;;  %3356 = vbcast.lane.b32.xlu0 %v3346_v26, 272 }
  0xcd   : > { %3352 = vbcast.lane.b32.xlu1 %v3346_v26, 264  ;;  %3364 = vbcast.lane.b32.xlu0 %v3346_v26, 288 }
  0xd1   : > { %3360 = vbcast.lane.b32.xlu1 %v3346_v26, 280  ;;  %3372 = vbcast.lane.b32.xlu0 %v3346_v26, 304 }
  0xd5   : > { %3368 = vbcast.lane.b32.xlu1 %v3346_v26, 296  ;;  %3383 = vbcast.lane.b32.xlu0 %v5672_v53, 256 }
  0xd9   : > { %3376 = vbcast.lane.b32.xlu1 %v3346_v26, 312  ;;  %3391 = vbcast.lane.b32.xlu0 %v5672_v53, 272 }
  0xdd   : > { %3387 = vbcast.lane.b32.xlu1 %v5672_v53, 264  ;;  %3399 = vbcast.lane.b32.xlu0 %v5672_v53, 288 }
  0xe1   : > { %3395 = vbcast.lane.b32.xlu1 %v5672_v53, 280  ;;  %3407 = vbcast.lane.b32.xlu0 %v5672_v53, 304 }
  0xe5   : > { %3403 = vbcast.lane.b32.xlu1 %v5672_v53, 296  ;;  %3418 = vbcast.lane.b32.xlu0 %v5697_v37, 256 }
  0xe9   : > { %3411 = vbcast.lane.b32.xlu1 %v5672_v53, 312  ;;  %3426 = vbcast.lane.b32.xlu0 %v5697_v37, 272 }
  0xed   : > { %3422 = vbcast.lane.b32.xlu1 %v5697_v37, 264  ;;  %3434 = vbcast.lane.b32.xlu0 %v5697_v37, 288 }
  0xf1   : > { %v4719_v29 = vpop.f32.mrb[0].mxu0  ;;  %3430 = vbcast.lane.b32.xlu1 %v5697_v37, 280  ;;  %3442 = vbcast.lane.b32.xlu0 %v5697_v37, 304 }
  0xf2   : > { %v1009_v30 = vadd.f32 %v4719_v29, %v5655_v28  ;;  %v1000_v31 = vpop.f32.mrb[1].mxu0 }
  0xf3   : > { %v1001_v32 = vadd.f32 %v5655_v28, %v1000_v31  ;;  %v4720_v33 = vpop.f32.mrb[2].mxu0 }
  0xf4   : > { %v1012_v34 = vadd.f32 %v4720_v33, %v5655_v28  ;;  %v1003_v35 = vpop.f32.mrb[3].mxu0  ;;  %v1513_v38 = vmax.f32 %v1009_v30, 0.0  ;;  %v4783_v13 = vpop.f32.mrb[0].mxu1 }
  0xf5   : > { %v1004_v36 = vadd.f32 %v5655_v28, %v1003_v35  ;;  %v1511_v40 = vmax.f32 %v1001_v32, 0.0  ;;  %v1265_v23 = vadd.f32 %v4783_v13, %v5655_v28  ;;  %v1256_v24 = vpop.f32.mrb[1].mxu1  ;;  %3438 = vbcast.lane.b32.xlu1 %v5697_v37, 296 }
  0xf6   : > { %v1514_v39 = vmax.f32 %v1012_v34, 0.0  ;;  %v1257_v29 = vadd.f32 %v5655_v28, %v1256_v24  ;;  %v4784_v30 = vpop.f32.mrb[2].mxu1  ;;  %v3450_v24 = vsub.s32 5, %v5626_v15 }
  0xf7   : > { %v1512_v41 = vmax.f32 %v1004_v36, 0.0  ;;  %v1577_v33 = vmax.f32 %v1265_v23, 0.0  ;;  %v1268_v34 = vadd.f32 %v4784_v30, %v5655_v28  ;;  %v1259_v35 = vpop.f32.mrb[3].mxu1 }
  0xf8   : > { %v1640_v42 = vpack.c.bf16 %v1514_v39, %v1513_v38  ;;  %v1575_v38 = vmax.f32 %v1257_v29, 0.0  ;;  %v1260_v39 = vadd.f32 %v5655_v28, %v1259_v35 }
  0xf9   : > { %v1639_v43 = vpack.c.bf16 %v1512_v41, %v1511_v40  ;;  %v4723_v44 = vpop.f32.mrb[4].mxu0  ;;  %3446 = vbcast.lane.b32.xlu1 %v5697_v37, 312 }
  0xfa   : > { %v1025_v46 = vadd.f32 %v4723_v44, %v5655_v28  ;;  %v1016_v47 = vpop.f32.mrb[5].mxu0 }
  0xfb   : > { %v1017_v48 = vadd.f32 %v5655_v28, %v1016_v47  ;;  %v4724_v49 = vpop.f32.mrb[6].mxu0  ;;  %4861 = vmatprep.mubr.bf16.mxu1 %v1639_v43 }
  0xfc   : > { %v1028_v50 = vadd.f32 %v4724_v49, %v5655_v28  ;;  %v1019_v51 = vpop.f32.mrb[7].mxu0  ;;  %4862 = vmatmul.mubr.bf16.vlgmr.msra.gmra.mrb[64].mxu1 %v1640_v42  ;;  %v1517_v54 = vmax.f32 %v1025_v46, 0.0  ;;  %v1578_v42 = vmax.f32 %v1268_v34, 0.0  ;;  %v1576_v46 = vmax.f32 %v1260_v39, 0.0 }
  0xfd   : > { %v1020_v52 = vadd.f32 %v5655_v28, %v1019_v51  ;;  %v1515_v56 = vmax.f32 %v1017_v48, 0.0 }
  0xfe   : > { %v1518_v55 = vmax.f32 %v1028_v50, 0.0  ;;  %v5701_v48 = vpack.c.bf16 %v1578_v42, %v1577_v33  ;;  %v5704_v51 = vpack.c.bf16 %v1576_v46, %v1575_v38 }
  0xff   : > { %v1516_v57 = vmax.f32 %v1020_v52, 0.0  ;;  %v4787_v52 = vpop.f32.mrb[4].mxu1 }
 0x100   : > { %v1642_v58 = vpack.c.bf16 %v1518_v55, %v1517_v54 }
 0x101   : > { %v1641_v59 = vpack.c.bf16 %v1516_v57, %v1515_v56  ;;  %v4727_v60 = vpop.f32.mrb[8].mxu0  ;;  %v1281_v56 = vadd.f32 %v4787_v52, %v5655_v28  ;;  %v1272_v57 = vpop.f32.mrb[5].mxu1 }
 0x102   : > { %v1041_v61 = vadd.f32 %v4727_v60, %v5655_v28  ;;  %v1032_v62 = vpop.f32.mrb[9].mxu0  ;;  %v1273_v60 = vadd.f32 %v5655_v28, %v1272_v57 }
 0x103   : > { %v1033_v63 = vadd.f32 %v5655_v28, %v1032_v62  ;;  %v4728_v0 = vpop.f32.mrb[10].mxu0  ;;  %4865 = vmatprep.mubr.bf16.mxu1 %v1641_v59 }
 0x104   : > { %v1044_v1 = vadd.f32 %v4728_v0, %v5655_v28  ;;  %v1035_v2 = vpop.f32.mrb[11].mxu0  ;;  %4866 = vmatmul.mubr.bf16.gmra.mrb[68].mxu1 %v1642_v58  ;;  %v1521_v5 = vmax.f32 %v1041_v61, 0.0  ;;  %v4788_v61 = vpop.f32.mrb[6].mxu1  ;;  %v1581_v0 = vmax.f32 %v1281_v56, 0.0  ;;  %v1579_v4 = vmax.f32 %v1273_v60, 0.0 }
 0x105   : > { %v1036_v3 = vadd.f32 %v5655_v28, %v1035_v2  ;;  %v1519_v7 = vmax.f32 %v1033_v63, 0.0  ;;  %v1275_v2 = vpop.f32.mrb[7].mxu1 }
 0x106   : > { %v1522_v6 = vmax.f32 %v1044_v1, 0.0  ;;  %v1284_v1 = vadd.f32 %v4788_v61, %v5655_v28 }
 0x107   : > { %v1520_v8 = vmax.f32 %v1036_v3, 0.0 }
 0x108   : > { %v1644_v9 = vpack.c.bf16 %v1522_v6, %v1521_v5  ;;  %v1276_v5 = vadd.f32 %v5655_v28, %v1275_v2  ;;  %v5273_v6 = vld [vmem:[%s6803_s4 + $0x20] sm:$0xff]  }
 0x109   : > { %v1643_v10 = vpack.c.bf16 %v1520_v8, %v1519_v7  ;;  %v4731_v11 = vpop.f32.mrb[12].mxu0  ;;  %4997 = vmatprep.subr.bf16.mxu0 %v5273_v6 }
 0x10a   : > { %v1057_v18 = vadd.f32 %v4731_v11, %v5655_v28  ;;  %v1048_v21 = vpop.f32.mrb[13].mxu0  ;;  %v1580_v13 = vmax.f32 %v1276_v5, 0.0  ;;  %4998 = vmatpush3.bf16.msra.mxu0 %v5273_v6 }
 0x10b   : > { %v1049_v26 = vadd.f32 %v5655_v28, %v1048_v21  ;;  %v4732_v27 = vpop.f32.mrb[14].mxu0  ;;  %4869 = vmatprep.mubr.bf16.mxu1 %v1643_v10 }
 0x10c   : > { %v1060_v31 = vadd.f32 %v4732_v27, %v5655_v28  ;;  %v1051_v32 = vpop.f32.mrb[15].mxu0  ;;  %4870 = vmatmul.mubr.bf16.gmra.mrb[72].mxu1 %v1644_v9  ;;  %v1525_v40 = vmax.f32 %v1057_v18, 0.0  ;;  %v1582_v9 = vmax.f32 %v1284_v1, 0.0  ;;  %v4791_v27 = vpop.f32.mrb[8].mxu1 }
 0x10d   : > { %v1052_v36 = vadd.f32 %v5655_v28, %v1051_v32  ;;  %v1523_v43 = vmax.f32 %v1049_v26, 0.0  ;;  %v5724_v26 = vpack.c.bf16 %v1580_v13, %v1579_v4  ;;  %v1288_v32 = vpop.f32.mrb[9].mxu1 }
 0x10e   : > { %v1526_v41 = vmax.f32 %v1060_v31, 0.0  ;;  %v5720_v53 = vpack.c.bf16 %v1582_v9, %v1581_v0  ;;  %v1297_v31 = vadd.f32 %v4791_v27, %v5655_v28  ;;  %v1289_v35 = vadd.f32 %v5655_v28, %v1288_v32 }
 0x10f   : > { %v1524_v44 = vmax.f32 %v1052_v36, 0.0  ;;  %v4792_v36 = vpop.f32.mrb[10].mxu1 }
 0x110   : > { %v1646_v47 = vpack.c.bf16 %v1526_v41, %v1525_v40  ;;  %v1585_v40 = vmax.f32 %v1297_v31, 0.0  ;;  %v1300_v41 = vadd.f32 %v4792_v36, %v5655_v28  ;;  %v1291_v42 = vpop.f32.mrb[11].mxu1  ;;  %v1583_v46 = vmax.f32 %v1289_v35, 0.0 }
 0x111   : > { %v1645_v49 = vpack.c.bf16 %v1524_v44, %v1523_v43  ;;  %v4735_v50 = vpop.f32.mrb[16].mxu0  ;;  %v5738_v44 = vrot.slane %v5633_v20, %v3450_v24 }
 0x112   : > { %v1073_v54 = vadd.f32 %v4735_v50, %v5655_v28  ;;  %v1064_v55 = vpop.f32.mrb[17].mxu0  ;;  %v1586_v52 = vmax.f32 %v1300_v41, 0.0 }
 0x113   : > { %v1065_v58 = vadd.f32 %v5655_v28, %v1064_v55  ;;  %v4736_v59 = vpop.f32.mrb[18].mxu0  ;;  %4873 = vmatprep.mubr.bf16.mxu1 %v1645_v49  ;;  %3453 = vbcast.lane.b32.xlu0 %v5738_v44, 256 }
 0x114   : > { %v1076_v62 = vadd.f32 %v4736_v59, %v5655_v28  ;;  %v1067_v63 = vpop.f32.mrb[19].mxu0  ;;  %4874 = vmatmul.mubr.bf16.gmra.mrb[76].mxu1 %v1646_v47  ;;  %v1529_v7 = vmax.f32 %v1073_v54, 0.0  ;;  %v1292_v47 = vadd.f32 %v5655_v28, %v1291_v42  ;;  %3457 = vbcast.lane.b32.xlu1 %v5738_v44, 264 }
 0x115   : > { %v1068_v3 = vadd.f32 %v5655_v28, %v1067_v63  ;;  %v1527_v10 = vmax.f32 %v1065_v58, 0.0  ;;  %v5742_v58 = vpack.c.bf16 %v1586_v52, %v1585_v40 }
 0x116   : > { %v1530_v8 = vmax.f32 %v1076_v62, 0.0  ;;  %v1584_v56 = vmax.f32 %v1292_v47, 0.0  ;;  %v4795_v62 = vpop.f32.mrb[12].mxu1 }
 0x117   : > { %v1528_v11 = vmax.f32 %v1068_v3, 0.0  ;;  %v1313_v1 = vadd.f32 %v4795_v62, %v5655_v28  ;;  %v1304_v2 = vpop.f32.mrb[13].mxu1  ;;  %3461 = vbcast.lane.b32.xlu0 %v5738_v44, 272 }
 0x118   : > { %v1648_v18 = vpack.c.bf16 %v1530_v8, %v1529_v7  ;;  %v5745_v61 = vpack.c.bf16 %v1584_v56, %v1583_v46  ;;  %v1305_v5 = vadd.f32 %v5655_v28, %v1304_v2  ;;  %v4796_v6 = vpop.f32.mrb[14].mxu1  ;;  %3465 = vbcast.lane.b32.xlu1 %v5738_v44, 280 }
 0x119   : > { %v1647_v21 = vpack.c.bf16 %v1528_v11, %v1527_v10  ;;  %v4739_v23 = vpop.f32.mrb[20].mxu0  ;;  %v1589_v9 = vmax.f32 %v1313_v1, 0.0  ;;  %v1316_v10 = vadd.f32 %v4796_v6, %v5655_v28  ;;  %v1307_v11 = vpop.f32.mrb[15].mxu1 }
 0x11a   : > { %v1089_v29 = vadd.f32 %v4739_v23, %v5655_v28  ;;  %v1080_v30 = vpop.f32.mrb[21].mxu0  ;;  %v5274_v23 = vld [vmem:[%s6803_s4 + $0x28] sm:$0xff]   ;;  %v4799_v40 = vpop.f32.mrb[16].mxu1 }
 0x11b   : > { %v1081_v33 = vadd.f32 %v5655_v28, %v1080_v30  ;;  %v4740_v34 = vpop.f32.mrb[22].mxu0  ;;  %4877 = vmatprep.mubr.bf16.mxu1 %v1647_v21  ;;  %v1308_v21 = vadd.f32 %v5655_v28, %v1307_v11  ;;  %v1590_v30 = vmax.f32 %v1316_v10, 0.0  ;;  %4999 = vmatprep.subr.bf16.mxu0 %v5274_v23  ;;  %v1320_v46 = vpop.f32.mrb[17].mxu1 }
 0x11c   : > { %v1092_v38 = vadd.f32 %v4740_v34, %v5655_v28  ;;  %v1083_v39 = vpop.f32.mrb[23].mxu0  ;;  %4878 = vmatmul.mubr.bf16.gmra.mrb[80].mxu1 %v1648_v18  ;;  %v1533_v49 = vmax.f32 %v1089_v29, 0.0  ;;  %v1587_v18 = vmax.f32 %v1305_v5, 0.0  ;;  %5000 = vmatpush3.bf16.msra.mxu0 %v5274_v23  ;;  %v4800_v52 = vpop.f32.mrb[18].mxu1 }
 0x11d   : > { %v1084_v43 = vadd.f32 %v5655_v28, %v1083_v39  ;;  %v1531_v54 = vmax.f32 %v1081_v33, 0.0  ;;  %v1588_v33 = vmax.f32 %v1308_v21, 0.0  ;;  %v5761_v37 = vpack.c.bf16 %v1590_v30, %v1589_v9  ;;  %3469 = vbcast.lane.b32.xlu0 %v5738_v44, 288  ;;  %3473 = vbcast.lane.b32.xlu1 %v5738_v44, 296 }
 0x11e   : > { %v1534_v50 = vmax.f32 %v1092_v38, 0.0  ;;  %v3485_v38 = vsub.s32 6, %v5626_v15 }
 0x11f   : > { %v1532_v55 = vmax.f32 %v1084_v43, 0.0  ;;  %v5765_v39 = vpack.c.bf16 %v1588_v33, %v1587_v18  ;;  %v1329_v43 = vadd.f32 %v4799_v40, %v5655_v28 }
 0x120   : > { %v1650_v57 = vpack.c.bf16 %v1534_v50, %v1533_v49  ;;  %v1321_v50 = vadd.f32 %v5655_v28, %v1320_v46  ;;  %v5779_v62 = vrot.slane %v5633_v20, %v3485_v38  ;;  %v5275_v46 = vld [vmem:[%s6803_s4 + $0x30] sm:$0xff]  }
 0x121   : > { %v1649_v59 = vpack.c.bf16 %v1532_v55, %v1531_v54  ;;  %v4743_v60 = vpop.f32.mrb[24].mxu0  ;;  %v1593_v56 = vmax.f32 %v1329_v43, 0.0  ;;  %3477 = vbcast.lane.b32.xlu0 %v5738_v44, 304  ;;  %3481 = vbcast.lane.b32.xlu1 %v5738_v44, 312 }
 0x122   : > { %v1105_v63 = vadd.f32 %v4743_v60, %v5655_v28  ;;  %v1096_v0 = vpop.f32.mrb[25].mxu0  ;;  %5001 = vmatprep.subr.bf16.mxu0 %v5275_v46 }
 0x123   : > { %v1097_v3 = vadd.f32 %v5655_v28, %v1096_v0  ;;  %v4744_v4 = vpop.f32.mrb[26].mxu0  ;;  %4881 = vmatprep.mubr.bf16.mxu1 %v1649_v59  ;;  %v1323_v59 = vpop.f32.mrb[19].mxu1  ;;  %5002 = vmatpush3.bf16.msra.mxu0 %v5275_v46 }
 0x124   : > { %v1108_v7 = vadd.f32 %v4744_v4, %v5655_v28  ;;  %v1099_v8 = vpop.f32.mrb[27].mxu0  ;;  %4882 = vmatmul.mubr.bf16.gmra.mrb[84].mxu1 %v1650_v57  ;;  %v1537_v27 = vmax.f32 %v1105_v63, 0.0  ;;  %v1332_v57 = vadd.f32 %v4800_v52, %v5655_v28  ;;  %v1591_v63 = vmax.f32 %v1321_v50, 0.0 }
 0x125   : > { %v1100_v13 = vadd.f32 %v5655_v28, %v1099_v8  ;;  %v1535_v31 = vmax.f32 %v1097_v3, 0.0  ;;  %v1324_v0 = vadd.f32 %v5655_v28, %v1323_v59  ;;  %3488 = vbcast.lane.b32.xlu0 %v5779_v62, 256  ;;  %3492 = vbcast.lane.b32.xlu1 %v5779_v62, 264  ;;  %v3520_v59 = vsub.s32 7, %v5626_v15 }
 0x126   : > { %v1538_v29 = vmax.f32 %v1108_v7, 0.0  ;;  %v1594_v3 = vmax.f32 %v1332_v57, 0.0 }
 0x127   : > { %v1536_v32 = vmax.f32 %v1100_v13, 0.0  ;;  %v1592_v6 = vmax.f32 %v1324_v0, 0.0  ;;  %v4803_v13 = vpop.f32.mrb[20].mxu1 }
 0x128   : > { %v1652_v34 = vpack.c.bf16 %v1538_v29, %v1537_v27  ;;  %v5783_v8 = vpack.c.bf16 %v1594_v3, %v1593_v56  ;;  %v1345_v23 = vadd.f32 %v4803_v13, %v5655_v28  ;;  %v1336_v27 = vpop.f32.mrb[21].mxu1 }
 0x129   : > { %v1651_v35 = vpack.c.bf16 %v1536_v32, %v1535_v31  ;;  %v4747_v36 = vpop.f32.mrb[28].mxu0  ;;  %v5786_v11 = vpack.c.bf16 %v1592_v6, %v1591_v63  ;;  %v1337_v31 = vadd.f32 %v5655_v28, %v1336_v27  ;;  %v4804_v32 = vpop.f32.mrb[22].mxu1  ;;  %3496 = vbcast.lane.b32.xlu0 %v5779_v62, 272  ;;  %3500 = vbcast.lane.b32.xlu1 %v5779_v62, 280 }
 0x12a   : > { %v1121_v41 = vadd.f32 %v4747_v36, %v5655_v28  ;;  %v1112_v42 = vpop.f32.mrb[29].mxu0  ;;  %v1348_v36 = vadd.f32 %v4804_v32, %v5655_v28  ;;  %v1339_v40 = vpop.f32.mrb[23].mxu1  ;;  %v5819_v27 = vrot.slane %v5633_v20, %v3520_v59 }
 0x12b   : > { %v1113_v47 = vadd.f32 %v5655_v28, %v1112_v42  ;;  %v4748_v49 = vpop.f32.mrb[30].mxu0  ;;  %4885 = vmatprep.mubr.bf16.mxu1 %v1651_v35  ;;  %v1597_v35 = vmax.f32 %v1345_v23, 0.0  ;;  %v1595_v42 = vmax.f32 %v1337_v31, 0.0  ;;  %v1340_v43 = vadd.f32 %v5655_v28, %v1339_v40  ;;  %v4807_v0 = vpop.f32.mrb[24].mxu1 }
 0x12c   : > { %v1124_v54 = vadd.f32 %v4748_v49, %v5655_v28  ;;  %v1115_v55 = vpop.f32.mrb[31].mxu0  ;;  %4886 = vmatmul.mubr.bf16.gmra.mrb[88].mxu1 %v1652_v34  ;;  %v1541_v1 = vmax.f32 %v1121_v41, 0.0  ;;  %v1598_v50 = vmax.f32 %v1348_v36, 0.0  ;;  %v1361_v3 = vadd.f32 %v4807_v0, %v5655_v28 }
 0x12d   : > { %v1116_v60 = vadd.f32 %v5655_v28, %v1115_v55  ;;  %v1539_v4 = vmax.f32 %v1113_v47, 0.0  ;;  %v1596_v55 = vmax.f32 %v1340_v43, 0.0  ;;  %3504 = vbcast.lane.b32.xlu0 %v5779_v62, 288  ;;  %3508 = vbcast.lane.b32.xlu1 %v5779_v62, 296 }
 0x12e   : > { %v1542_v2 = vmax.f32 %v1124_v54, 0.0  ;;  %v5802_v44 = vpack.c.bf16 %v1598_v50, %v1597_v35 }
 0x12f   : > { %v1540_v5 = vmax.f32 %v1116_v60, 0.0  ;;  %v5806_v63 = vpack.c.bf16 %v1596_v55, %v1595_v42 }
 0x130   : > { %v1654_v7 = vpack.c.bf16 %v1542_v2, %v1541_v1 }
 0x131   : > { %v1653_v9 = vpack.c.bf16 %v1540_v5, %v1539_v4  ;;  %v4751_v10 = vpop.f32.mrb[32].mxu0  ;;  %v1352_v4 = vpop.f32.mrb[25].mxu1  ;;  %3512 = vbcast.lane.b32.xlu0 %v5779_v62, 304  ;;  %3516 = vbcast.lane.b32.xlu1 %v5779_v62, 312 }
 0x132   : > { %v1137_v18 = vadd.f32 %v4751_v10, %v5655_v28  ;;  %v1128_v21 = vpop.f32.mrb[33].mxu0 }
 0x133   : > { %v1129_v29 = vadd.f32 %v5655_v28, %v1128_v21  ;;  %v4752_v30 = vpop.f32.mrb[34].mxu0  ;;  %4889 = vmatprep.mubr.bf16.mxu1 %v1653_v9  ;;  %v4808_v9 = vpop.f32.mrb[26].mxu1 }
 0x134   : > { %v1140_v33 = vadd.f32 %v4752_v30, %v5655_v28  ;;  %v1131_v34 = vpop.f32.mrb[35].mxu0  ;;  %4890 = vmatmul.mubr.bf16.gmra.mrb[92].mxu1 %v1654_v7  ;;  %v1545_v47 = vmax.f32 %v1137_v18, 0.0  ;;  %v1353_v7 = vadd.f32 %v5655_v28, %v1352_v4  ;;  %v1601_v18 = vmax.f32 %v1361_v3, 0.0  ;;  %v1355_v23 = vpop.f32.mrb[27].mxu1 }
 0x135   : > { %v1132_v41 = vadd.f32 %v5655_v28, %v1131_v34  ;;  %v1543_v52 = vmax.f32 %v1129_v29, 0.0  ;;  %v1364_v21 = vadd.f32 %v4808_v9, %v5655_v28  ;;  %v1356_v31 = vadd.f32 %v5655_v28, %v1355_v23  ;;  %3523 = vbcast.lane.b32.xlu0 %v5819_v27, 256  ;;  %v5276_v9 = vld [vmem:[%s6803_s4 + $0x38] sm:$0xff]   ;;  %3527 = vbcast.lane.b32.xlu1 %v5819_v27, 264 }
 0x136   : > { %v1546_v49 = vmax.f32 %v1140_v33, 0.0  ;;  %v1599_v30 = vmax.f32 %v1353_v7, 0.0  ;;  %5003 = vmatprep.subr.bf16.mxu0 %v5276_v9 }
 0x137   : > { %v1544_v54 = vmax.f32 %v1132_v41, 0.0  ;;  %v1602_v34 = vmax.f32 %v1364_v21, 0.0  ;;  %v1600_v40 = vmax.f32 %v1356_v31, 0.0  ;;  %v3265_v21 = vpop.permute.xlu0 %3264  ;;  %5004 = vmatpush3.bf16.msra.mxu0 %v5276_v9 }
 0x138   : > { %v1656_v56 = vpack.c.bf16 %v1546_v49, %v1545_v47  ;;  %v4811_v47 = vpop.f32.mrb[28].mxu1  ;;  %vm3268_vm3 = vcmp.lt.f32.partialorder %v3254_v16, %v3265_v21 }
 0x139   : > { %v1655_v57 = vpack.c.bf16 %v1544_v54, %v1543_v52  ;;  %v4755_v60 = vpop.f32.mrb[36].mxu0  ;;  %v5824_v42 = vpack.c.bf16 %v1602_v34, %v1601_v18  ;;  %v5827_v46 = vpack.c.bf16 %v1600_v40, %v1599_v30  ;;  %v1377_v52 = vadd.f32 %v4811_v47, %v5655_v28  ;;  %v1368_v54 = vpop.f32.mrb[29].mxu1  ;;  %3531 = vbcast.lane.b32.xlu0 %v5819_v27, 272 }
 0x13a   : > { %v1153_v1 = vadd.f32 %v4755_v60, %v5655_v28  ;;  %v1144_v2 = vpop.f32.mrb[37].mxu0  ;;  %v4812_v60 = vpop.f32.mrb[30].mxu1  ;;  %3535 = vbcast.lane.b32.xlu1 %v5819_v27, 280 }
 0x13b   : > { %v1145_v5 = vadd.f32 %v5655_v28, %v1144_v2  ;;  %v4756_v6 = vpop.f32.mrb[38].mxu0  ;;  %4893 = vmatprep.mubr.bf16.mxu1 %v1655_v57  ;;  %v1369_v57 = vadd.f32 %v5655_v28, %v1368_v54  ;;  %v1605_v2 = vmax.f32 %v1377_v52, 0.0  ;;  %v1380_v3 = vadd.f32 %v4812_v60, %v5655_v28  ;;  %v1371_v4 = vpop.f32.mrb[31].mxu1 }
 0x13c   : > { %v1156_v10 = vadd.f32 %v4756_v6, %v5655_v28  ;;  %v1147_v13 = vpop.f32.mrb[39].mxu0  ;;  %4894 = vmatmul.mubr.bf16.gmra.mrb[96].mxu1 %v1656_v56  ;;  %v1549_v32 = vmax.f32 %v1153_v1, 0.0  ;;  %v1372_v7 = vadd.f32 %v5655_v28, %v1371_v4 }
 0x13d   : > { %v1148_v29 = vadd.f32 %v5655_v28, %v1147_v13  ;;  %v1547_v35 = vmax.f32 %v1145_v5, 0.0  ;;  %v1603_v6 = vmax.f32 %v1369_v57, 0.0  ;;  %v1606_v18 = vmax.f32 %v1380_v3, 0.0  ;;  %3539 = vbcast.lane.b32.xlu0 %v5819_v27, 288 }
 0x13e   : > { %v1550_v33 = vmax.f32 %v1156_v10, 0.0  ;;  %v1604_v30 = vmax.f32 %v1372_v7, 0.0  ;;  %3543 = vbcast.lane.b32.xlu1 %v5819_v27, 296 }
 0x13f   : > { %v1548_v36 = vmax.f32 %v1148_v29, 0.0  ;;  %v5845_v31 = vpack.c.bf16 %v1606_v18, %v1605_v2 }
 0x140   : > { %v1658_v41 = vpack.c.bf16 %v1550_v33, %v1549_v32  ;;  %v5848_v34 = vpack.c.bf16 %v1604_v30, %v1603_v6 }
 0x141   : > { %v1657_v20 = vpack.c.bf16 %v1548_v36, %v1547_v35  ;;  %v4759_v43 = vpop.f32.mrb[40].mxu0  ;;  %v4815_v35 = vpop.f32.mrb[32].mxu1  ;;  %3547 = vbcast.lane.b32.xlu0 %v5819_v27, 304 }
 0x142   : > { %v1169_v49 = vadd.f32 %v4759_v43, %v5655_v28  ;;  %v1160_v50 = vpop.f32.mrb[41].mxu0  ;;  %v1393_v14 = vadd.f32 %v4815_v35, %v5655_v28  ;;  %v1384_v16 = vpop.f32.mrb[33].mxu1  ;;  %3551 = vbcast.lane.b32.xlu1 %v5819_v27, 312 }
 0x143   : > { %v1161_v55 = vadd.f32 %v5655_v28, %v1160_v50  ;;  %v4760_v56 = vpop.f32.mrb[42].mxu0  ;;  %4897 = vmatprep.mubr.bf16.mxu1 %v1657_v20  ;;  %v1385_v47 = vadd.f32 %v5655_v28, %v1384_v16 }
 0x144   : > { %v1172_v0 = vadd.f32 %v4760_v56, %v5655_v28  ;;  %v1163_v1 = vpop.f32.mrb[43].mxu0  ;;  %4898 = vmatmul.mubr.bf16.gmra.mrb[100].mxu1 %v1658_v41  ;;  %v1553_v10 = vmax.f32 %v1169_v49, 0.0  ;;  %v5854_v41 = vsel %vm3268_vm3, 1.0, %v5361_v19  ;;  %v4816_v49 = vpop.f32.mrb[34].mxu1  ;;  %v1609_v54 = vmax.f32 %v1393_v14, 0.0 }
 0x145   : > { %v1164_v5 = vadd.f32 %v5655_v28, %v1163_v1  ;;  %v1551_v23 = vmax.f32 %v1161_v55, 0.0  ;;  %v1396_v55 = vadd.f32 %v4816_v49, %v5655_v28  ;;  %v1387_v56 = vpop.f32.mrb[35].mxu1  ;;  %v1607_v57 = vmax.f32 %v1385_v47, 0.0 }
 0x146   : > { %v1554_v13 = vmax.f32 %v1172_v0, 0.0  ;;  %v1388_v60 = vadd.f32 %v5655_v28, %v1387_v56  ;;  %v5866_v0 = vrot.slane %v5854_v41, %v3275_v17  ;;  %v4819_v21 = vpop.f32.mrb[36].mxu1 }
 0x147   : > { %v1552_v29 = vmax.f32 %v1164_v5, 0.0  ;;  %v1610_v3 = vmax.f32 %v1396_v55, 0.0  ;;  %v1400_v30 = vpop.f32.mrb[37].mxu1 }
 0x148   : > { %v1660_v62 = vpack.c.bf16 %v1554_v13, %v1553_v10  ;;  %v1608_v6 = vmax.f32 %v1388_v60, 0.0  ;;  %3558 = vbcast.lane.b32.xlu0 %v5866_v0, 256  ;;  %v4820_v35 = vpop.f32.mrb[38].mxu1  ;;  %3562 = vbcast.lane.b32.xlu1 %v5866_v0, 264 }
 0x149   : > { %v1659_v32 = vpack.c.bf16 %v1552_v29, %v1551_v23  ;;  %v4763_v33 = vpop.f32.mrb[44].mxu0  ;;  %v5869_v9 = vpack.c.bf16 %v1610_v3, %v1609_v54  ;;  %v1409_v29 = vadd.f32 %v4819_v21, %v5655_v28  ;;  %v1412_v16 = vadd.f32 %v4820_v35, %v5655_v28 }
 0x14a   : > { %v1185_v36 = vadd.f32 %v4763_v33, %v5655_v28  ;;  %v1176_v40 = vpop.f32.mrb[45].mxu0  ;;  %v5872_v18 = vpack.c.bf16 %v1608_v6, %v1607_v57  ;;  %v1401_v33 = vadd.f32 %v5655_v28, %v1400_v30 }
 0x14b   : > { %v1177_v20 = vadd.f32 %v5655_v28, %v1176_v40  ;;  %v4764_v43 = vpop.f32.mrb[46].mxu0  ;;  %4901 = vmatprep.mubr.bf16.mxu1 %v1659_v32  ;;  %v1613_v14 = vmax.f32 %v1409_v29, 0.0  ;;  %v1614_v54 = vmax.f32 %v1412_v16, 0.0 }
 0x14c   : > { %v1188_v50 = vadd.f32 %v4764_v43, %v5655_v28  ;;  %v1179_v52 = vpop.f32.mrb[47].mxu0  ;;  %4902 = vmatmul.mubr.bf16.gmra.mrb[104].mxu1 %v1660_v62  ;;  %v1557_v1 = vmax.f32 %v1185_v36, 0.0  ;;  %v1611_v47 = vmax.f32 %v1401_v33, 0.0  ;;  %3566 = vbcast.lane.b32.xlu0 %v5866_v0, 272 }
 0x14d   : > { %v1180_v19 = vadd.f32 %v5655_v28, %v1179_v52  ;;  %v1555_v4 = vmax.f32 %v1177_v20, 0.0  ;;  %v1403_v20 = vpop.f32.mrb[39].mxu1  ;;  %v5885_v60 = vpack.c.bf16 %v1614_v54, %v1613_v14  ;;  %3570 = vbcast.lane.b32.xlu1 %v5866_v0, 280 }
 0x14e   : > { %v1558_v2 = vmax.f32 %v1188_v50, 0.0  ;;  %v1404_v49 = vadd.f32 %v5655_v28, %v1403_v20  ;;  %v4823_v3 = vpop.f32.mrb[40].mxu1 }
 0x14f   : > { %v1556_v5 = vmax.f32 %v1180_v19, 0.0  ;;  %v1425_v6 = vadd.f32 %v4823_v3, %v5655_v28 }
 0x150   : > { %v1662_v7 = vpack.c.bf16 %v1558_v2, %v1557_v1  ;;  %v1612_v19 = vmax.f32 %v1404_v49, 0.0  ;;  %3574 = vbcast.lane.b32.xlu0 %v5866_v0, 288 }
 0x151   : > { %v1661_v10 = vpack.c.bf16 %v1556_v5, %v1555_v4  ;;  %v4767_v13 = vpop.f32.mrb[48].mxu0  ;;  %v1617_v30 = vmax.f32 %v1425_v6, 0.0  ;;  %3578 = vbcast.lane.b32.xlu1 %v5866_v0, 296 }
 0x152   : > { %v1201_v17 = vadd.f32 %v4767_v13, %v5655_v28  ;;  %v1192_v23 = vpop.f32.mrb[49].mxu0  ;;  %v5888_v2 = vpack.c.bf16 %v1612_v19, %v1611_v47 }
 0x153   : > { %v1193_v62 = vadd.f32 %v5655_v28, %v1192_v23  ;;  %v4768_v32 = vpop.f32.mrb[50].mxu0  ;;  %4905 = vmatprep.mubr.bf16.mxu1 %v1661_v10 }
 0x154   : > { %v1204_v36 = vadd.f32 %v4768_v32, %v5655_v28  ;;  %v1195_v40 = vpop.f32.mrb[51].mxu0  ;;  %4906 = vmatmul.mubr.bf16.gmra.mrb[108].mxu1 %v1662_v7  ;;  %v1561_v50 = vmax.f32 %v1201_v17, 0.0  ;;  %v1416_v7 = vpop.f32.mrb[41].mxu1  ;;  %3582 = vbcast.lane.b32.xlu0 %v5866_v0, 304 }
 0x155   : > { %v1196_v43 = vadd.f32 %v5655_v28, %v1195_v40  ;;  %v1559_v55 = vmax.f32 %v1193_v62, 0.0  ;;  %v1417_v21 = vadd.f32 %v5655_v28, %v1416_v7  ;;  %v4824_v17 = vpop.f32.mrb[42].mxu1  ;;  %v5903_v40 = vrot.slane %v5854_v41, %v3310_v22  ;;  %3586 = vbcast.lane.b32.xlu1 %v5866_v0, 312 }
 0x156   : > { %v1562_v52 = vmax.f32 %v1204_v36, 0.0  ;;  %v1428_v62 = vadd.f32 %v4824_v17, %v5655_v28  ;;  %v1419_v32 = vpop.f32.mrb[43].mxu1 }
 0x157   : > { %v1560_v56 = vmax.f32 %v1196_v43, 0.0  ;;  %v1615_v35 = vmax.f32 %v1417_v21, 0.0  ;;  %v1420_v36 = vadd.f32 %v5655_v28, %v1419_v32  ;;  %v4827_v19 = vpop.f32.mrb[44].mxu1 }
 0x158   : > { %v1664_v57 = vpack.c.bf16 %v1562_v52, %v1561_v50  ;;  %v1618_v20 = vmax.f32 %v1428_v62, 0.0  ;;  %3593 = vbcast.lane.b32.xlu0 %v5903_v40, 256 }
 0x159   : > { %v1663_v1 = vpack.c.bf16 %v1560_v56, %v1559_v55  ;;  %v4771_v27 = vpop.f32.mrb[52].mxu0  ;;  %v1616_v49 = vmax.f32 %v1420_v36, 0.0  ;;  %3597 = vbcast.lane.b32.xlu1 %v5903_v40, 264 }
 0x15a   : > { %v1217_v4 = vadd.f32 %v4771_v27, %v5655_v28  ;;  %v1208_v5 = vpop.f32.mrb[53].mxu0  ;;  %v5906_v52 = vpack.c.bf16 %v1618_v20, %v1617_v30  ;;  %v1432_v27 = vpop.f32.mrb[45].mxu1 }
 0x15b   : > { %v1209_v10 = vadd.f32 %v5655_v28, %v1208_v5  ;;  %v4772_v13 = vpop.f32.mrb[54].mxu0  ;;  %4909 = vmatprep.mubr.bf16.mxu1 %v1663_v1  ;;  %v5909_v56 = vpack.c.bf16 %v1616_v49, %v1615_v35  ;;  %v1441_v1 = vadd.f32 %v4827_v19, %v5655_v28  ;;  %v1433_v5 = vadd.f32 %v5655_v28, %v1432_v27  ;;  %v4828_v6 = vpop.f32.mrb[46].mxu1 }
 0x15c   : > { %v1220_v23 = vadd.f32 %v4772_v13, %v5655_v28  ;;  %v1211_v29 = vpop.f32.mrb[55].mxu0  ;;  %4910 = vmatmul.mubr.bf16.gmra.mrb[112].mxu1 %v1664_v57  ;;  %v1565_v14 = vmax.f32 %v1217_v4, 0.0  ;;  %v1444_v21 = vadd.f32 %v4828_v6, %v5655_v28  ;;  %v1435_v17 = vpop.f32.mrb[47].mxu1  ;;  %3601 = vbcast.lane.b32.xlu0 %v5903_v40, 272 }
 0x15d   : > { %v1212_v33 = vadd.f32 %v5655_v28, %v1211_v29  ;;  %v1563_v43 = vmax.f32 %v1209_v10, 0.0  ;;  %v1621_v13 = vmax.f32 %v1441_v1, 0.0  ;;  %v1619_v29 = vmax.f32 %v1433_v5, 0.0  ;;  %v4831_v49 = vpop.f32.mrb[48].mxu1  ;;  %v5934_v1 = vld [vmem:[%s6804_s5] ss:$0 sm:$0xff] }
 0x15e   : > { %v1566_v16 = vmax.f32 %v1220_v23, 0.0  ;;  %v1436_v30 = vadd.f32 %v5655_v28, %v1435_v17  ;;  %v1448_v19 = vpop.f32.mrb[49].mxu1  ;;  %3605 = vbcast.lane.b32.xlu1 %v5903_v40, 280 }
 0x15f   : > { %v1564_v47 = vmax.f32 %v1212_v33, 0.0  ;;  %v1622_v33 = vmax.f32 %v1444_v21, 0.0  ;;  %v1449_v27 = vadd.f32 %v5934_v1, %v1448_v19 }
 0x160   : > { %v1666_v50 = vpack.c.bf16 %v1566_v16, %v1565_v14  ;;  %v1620_v14 = vmax.f32 %v1436_v30, 0.0  ;;  %3609 = vbcast.lane.b32.xlu0 %v5903_v40, 288 }
 0x161   : > { %v1665_v54 = vpack.c.bf16 %v1564_v47, %v1563_v43  ;;  %v4775_v55 = vpop.f32.mrb[56].mxu0  ;;  %v5922_v20 = vpack.c.bf16 %v1622_v33, %v1621_v13  ;;  %v1623_v13 = vmax.f32 %v1449_v27, 0.0  ;;  %v5946_v33 = vrot.slane %v5854_v41, %v3345_v25 }
 0x162   : > { %v1233_v22 = vadd.f32 %v4775_v55, %v5655_v28  ;;  %v1224_v57 = vpop.f32.mrb[57].mxu0  ;;  %v5925_v47 = vpack.c.bf16 %v1620_v14, %v1619_v29  ;;  %v1457_v55 = vadd.f32 %v4831_v49, %v5655_v28  ;;  %3613 = vbcast.lane.b32.xlu1 %v5903_v40, 296  ;;  %v5958_v25 = vrot.slane %v5854_v41, %v3380_v45 }
 0x163   : > { %v1225_v3 = vadd.f32 %v5655_v28, %v1224_v57  ;;  %v4776_v4 = vpop.f32.mrb[58].mxu0  ;;  %4913 = vmatprep.mubr.bf16.mxu1 %v1665_v54 }
 0x164   : > { %v1236_v7 = vadd.f32 %v4776_v4, %v5655_v28  ;;  %v1227_v10 = vpop.f32.mrb[59].mxu0  ;;  %4914 = vmatmul.mubr.bf16.gmra.mrb[116].mxu1 %v1666_v50  ;;  %v1569_v62 = vmax.f32 %v1233_v22, 0.0  ;;  %v1625_v6 = vmax.f32 %v1457_v55, 0.0  ;;  %3617 = vbcast.lane.b32.xlu0 %v5903_v40, 304 }
 0x165   : > { %v1228_v23 = vadd.f32 %v5655_v28, %v1227_v10  ;;  %v1567_v35 = vmax.f32 %v1225_v3, 0.0  ;;  %v4832_v3 = vpop.f32.mrb[50].mxu1 }
 0x166   : > { %v1570_v32 = vmax.f32 %v1236_v7, 0.0  ;;  %v1460_v7 = vadd.f32 %v5934_v1, %v4832_v3  ;;  %v1451_v10 = vpop.f32.mrb[51].mxu1  ;;  %3628 = vbcast.lane.b32.xlu1 %v5946_v33, 256 }
 0x167   : > { %v1568_v36 = vmax.f32 %v1228_v23, 0.0  ;;  %v1452_v21 = vadd.f32 %v5934_v1, %v1451_v10 }
 0x168   : > { %v1668_v16 = vpack.c.bf16 %v1570_v32, %v1569_v62  ;;  %v1626_v29 = vmax.f32 %v1460_v7, 0.0  ;;  %3632 = vbcast.lane.b32.xlu0 %v5946_v33, 264 }
 0x169   : > { %v1667_v43 = vpack.c.bf16 %v1568_v36, %v1567_v35  ;;  %v4779_v0 = vpop.f32.mrb[60].mxu0  ;;  %v1624_v32 = vmax.f32 %v1452_v21, 0.0 }
 0x16a   : > { %v1249_v50 = vadd.f32 %v4779_v0, %v5655_v28  ;;  %v1240_v54 = vpop.f32.mrb[61].mxu0  ;;  %v5948_v36 = vpack.c.bf16 %v1626_v29, %v1625_v6  ;;  %3663 = vbcast.lane.b32.xlu1 %v5958_v25, 256 }
 0x16b   : > { %v1241_v22 = vadd.f32 %v5655_v28, %v1240_v54  ;;  %v4780_v57 = vpop.f32.mrb[62].mxu0  ;;  %4917 = vmatprep.mubr.bf16.mxu1 %v1667_v43  ;;  %v4835_v43 = vpop.f32.mrb[52].mxu1 }
 0x16c   : > { %v1252_v4 = vadd.f32 %v5934_v1, %v4780_v57  ;;  %v1243_v5 = vpop.f32.mrb[63].mxu0  ;;  %4918 = vmatmul.mubr.bf16.gmra.mrb[120].mxu1 %v1668_v16  ;;  %v1573_v17 = vmax.f32 %v1249_v50, 0.0  ;;  %v5951_v16 = vpack.c.bf16 %v1624_v32, %v1623_v13  ;;  %v1473_v0 = vadd.f32 %v5934_v1, %v4835_v43  ;;  %v1464_v49 = vpop.f32.mrb[53].mxu1  ;;  %3667 = vbcast.lane.b32.xlu0 %v5958_v25, 264 }
 0x16d   : > { %v1244_v28 = vadd.f32 %v5934_v1, %v1243_v5  ;;  %v1571_v30 = vmax.f32 %v1241_v22, 0.0  ;;  %v1465_v50 = vadd.f32 %v5934_v1, %v1464_v49  ;;  %v4836_v54 = vpop.f32.mrb[54].mxu1  ;;  %v5967_v57 = vrot.slane %v5854_v41, %v3415_v12 }
 0x16e   : > { %v1574_v23 = vmax.f32 %v1252_v4, 0.0  ;;  %v1629_v55 = vmax.f32 %v1473_v0, 0.0  ;;  %v1476_v19 = vadd.f32 %v5934_v1, %v4836_v54  ;;  %v1467_v22 = vpop.f32.mrb[55].mxu1  ;;  %3636 = vbcast.lane.b32.xlu1 %v5946_v33, 272  ;;  %v5990_v32 = vrot.slane %v5854_v41, %v3450_v24 }
 0x16f   : > { %v1572_v62 = vmax.f32 %v1244_v28, 0.0  ;;  %v1627_v27 = vmax.f32 %v1465_v50, 0.0  ;;  %v1468_v45 = vadd.f32 %v5934_v1, %v1467_v22  ;;  %v4839_v7 = vpop.f32.mrb[56].mxu1 }
 0x170   : > { %v1670_v35 = vpack.c.bf16 %v1574_v23, %v1573_v17  ;;  %v1630_v3 = vmax.f32 %v1476_v19, 0.0  ;;  %3698 = vbcast.lane.b32.xlu0 %v5967_v57, 256  ;;  %v1489_v12 = vadd.f32 %v5934_v1, %v4839_v7  ;;  %v1480_v10 = vpop.f32.mrb[57].mxu1 }
 0x171   : > { %v1669_v14 = vpack.c.bf16 %v1572_v62, %v1571_v30  ;;  %v1628_v4 = vmax.f32 %v1468_v45, 0.0  ;;  %v1481_v28 = vadd.f32 %v5934_v1, %v1480_v10  ;;  %v4840_v13 = vpop.f32.mrb[58].mxu1 }
 0x172   : > { %v5971_v5 = vpack.c.bf16 %v1630_v3, %v1629_v55  ;;  %v1633_v21 = vmax.f32 %v1489_v12, 0.0  ;;  %v1492_v17 = vadd.f32 %v5934_v1, %v4840_v13  ;;  %v1483_v23 = vpop.f32.mrb[59].mxu1  ;;  %3702 = vbcast.lane.b32.xlu1 %v5967_v57, 264 }
 0x173   : > { %4921 = vmatprep.mubr.bf16.mxu1 %v1669_v14  ;;  %v5974_v6 = vpack.c.bf16 %v1628_v4, %v1627_v27  ;;  %v1631_v29 = vmax.f32 %v1481_v28, 0.0  ;;  %v1484_v30 = vadd.f32 %v5934_v1, %v1483_v23  ;;  %v4843_v0 = vpop.f32.mrb[60].mxu1 }
 0x174   : > { %4922 = vmatmul.mubr.bf16.gmra.mrb[124].mxu1 %v1670_v35  ;;  %3671 = vbcast.lane.b32.xlu0 %v5958_v25, 272  ;;  %v1634_v62 = vmax.f32 %v1492_v17, 0.0  ;;  %v1505_v49 = vadd.f32 %v5934_v1, %v4843_v0  ;;  %v1496_v50 = vpop.f32.mrb[61].mxu1 }
 0x175   : > { %4925 = vmatprep.mubr.bf16.mxu1 %v5704_v51  ;;  %v5977_v51 = vpop.permute.xlu1 %3278  ;;  %v1632_v35 = vmax.f32 %v1484_v30, 0.0  ;;  %v1497_v24 = vadd.f32 %v5934_v1, %v1496_v50  ;;  %v4844_v54 = vpop.f32.mrb[62].mxu1 }
 0x176   : > { %v5996_v43 = vpack.c.bf16 %v1634_v62, %v1633_v21  ;;  %v1637_v55 = vmax.f32 %v1505_v49, 0.0  ;;  %v1508_v19 = vadd.f32 %v5934_v1, %v4844_v54  ;;  %v1499_v22 = vpop.f32.mrb[63].mxu1  ;;  %3733 = vbcast.lane.b32.xlu1 %v5990_v32, 256 }
 0x177   : > { %v1635_v45 = vmax.f32 %v1497_v24, 0.0  ;;  %v1500_v3 = vadd.f32 %v5934_v1, %v1499_v22 }
 0x178   : > { %3737 = vbcast.lane.b32.xlu0 %v5990_v32, 264  ;;  %v1638_v7 = vmax.f32 %v1508_v19, 0.0 }
 0x179   : > { %v5994_v14 = vpop.permute.xlu1 %3282  ;;  %v1636_v12 = vmax.f32 %v1500_v3, 0.0 }
 0x17a   : > { %v6019_v10 = vpack.c.bf16 %v1638_v7, %v1637_v55  ;;  %3640 = vbcast.lane.b32.xlu1 %v5946_v33, 280 }
 0x17c   : > { %4926 = vmatmul.mubr.bf16.gmra.mrb[128].mxu1 %v5701_v48  ;;  %v5992_v48 = vpop.permute.xlu0 %3286  ;;  %3706 = vbcast.lane.b32.xlu0 %v5967_v57, 272 }
 0x17d   : > { %4929 = vmatprep.mubr.bf16.mxu1 %v5724_v26  ;;  %v5999_v26 = vpack.c.bf16 %v1632_v35, %v1631_v29  ;;  %v6012_v4 = vpop.permute.xlu1 %3290 }
 0x180   : > { %v6008_v27 = vpop.permute.xlu0 %3294 }
 0x181   : > { %v6028_v28 = vpop.permute.xlu1 %3298 }
 0x184   : > { %4930 = vmatmul.mubr.bf16.gmra.mrb[132].mxu1 %v5720_v53  ;;  %v6017_v53 = vrot.slane %v5854_v41, %v3485_v38  ;;  %v6025_v1 = vpop.permute.xlu0 %3302  ;;  %v6036_v38 = vrot.slane %v5854_v41, %v3520_v59 }
 0x185   : > { %4933 = vmatprep.mubr.bf16.mxu1 %v5745_v61  ;;  %v6022_v61 = vpack.c.bf16 %v1636_v12, %v1635_v45 }
 0x186   : > { %3772 = vbcast.lane.b32.xlu0 %v6017_v53, 264  ;;  %3768 = vbcast.lane.b32.xlu1 %v6017_v53, 256 }
 0x188   : > { %v6039_v13 = vpop.permute.xlu0 %3313 }
 0x18a   : > { %3741 = vbcast.lane.b32.xlu0 %v5990_v32, 272  ;;  %3675 = vbcast.lane.b32.xlu1 %v5958_v25, 280 }
 0x18c   : > { %4934 = vmatmul.mubr.bf16.gmra.mrb[136].mxu1 %v5742_v58  ;;  %v6042_v58 = vpop.permute.xlu1 %3306  ;;  %v6048_v15 = vpop.permute.xlu0 %3321 }
 0x18d   : > { %4937 = vmatprep.mubr.bf16.mxu1 %v5765_v39 }
 0x18e   : > { %3807 = vbcast.lane.b32.xlu0 %v6036_v38, 264  ;;  %3803 = vbcast.lane.b32.xlu1 %v6036_v38, 256 }
 0x190   : > { %v6050_v39 = vpop.permute.xlu1 %3317 }
 0x192   : > { %3710 = vbcast.lane.b32.xlu0 %v5967_v57, 280  ;;  %3644 = vbcast.lane.b32.xlu1 %v5946_v33, 288 }
 0x194   : > { %4938 = vmatmul.mubr.bf16.gmra.mrb[140].mxu1 %v5761_v37  ;;  %v6057_v37 = vpop.permute.xlu0 %3329 }
 0x195   : > { %4941 = vmatprep.mubr.bf16.mxu1 %v5786_v11  ;;  %v6060_v11 = vpop.permute.xlu1 %3325 }
 0x196   : > { %3679 = vbcast.lane.b32.xlu0 %v5958_v25, 288  ;;  %3776 = vbcast.lane.b32.xlu1 %v6017_v53, 272 }
 0x198   : > { %v6064_v59 = vpop.permute.xlu0 %3337 }
 0x199   : > { %v6067_v41 = vpop.permute.xlu1 %3333 }
 0x19a   : > { %3811 = vbcast.lane.b32.xlu0 %v6036_v38, 272  ;;  %3745 = vbcast.lane.b32.xlu1 %v5990_v32, 280 }
 0x19c   : > { %4942 = vmatmul.mubr.bf16.gmra.mrb[144].mxu1 %v5783_v8  ;;  %v6073_v8 = vpop.permute.xlu0 %3348 }
 0x19d   : > { %4945 = vmatprep.mubr.bf16.mxu1 %v5806_v63  ;;  %v6076_v63 = vpop.permute.xlu1 %3341 }
 0x19e   : > { %3714 = vbcast.lane.b32.xlu0 %v5967_v57, 288  ;;  %3648 = vbcast.lane.b32.xlu1 %v5946_v33, 296 }
 0x1a2   : > { %3683 = vbcast.lane.b32.xlu0 %v5958_v25, 296  ;;  %3780 = vbcast.lane.b32.xlu1 %v6017_v53, 280 }
 0x1a4   : > { %4946 = vmatmul.mubr.bf16.gmra.mrb[148].mxu1 %v5802_v44  ;;  %v6082_v44 = vpop.permute.xlu0 %3356 }
 0x1a5   : > { %4949 = vmatprep.mubr.bf16.mxu1 %v5827_v46  ;;  %v6084_v46 = vpop.permute.xlu1 %3352 }
 0x1a6   : > { %3815 = vbcast.lane.b32.xlu0 %v6036_v38, 280  ;;  %3749 = vbcast.lane.b32.xlu1 %v5990_v32, 288 }
 0x1aa   : > { %3718 = vbcast.lane.b32.xlu0 %v5967_v57, 296  ;;  %3652 = vbcast.lane.b32.xlu1 %v5946_v33, 304 }
 0x1ac   : > { %4950 = vmatmul.mubr.bf16.gmra.mrb[152].mxu1 %v5824_v42  ;;  %v6091_v42 = vpop.permute.xlu0 %3364 }
 0x1ad   : > { %4953 = vmatprep.mubr.bf16.mxu1 %v5848_v34  ;;  %v6094_v34 = vpop.permute.xlu1 %3360 }
 0x1ae   : > { %3621 = vbcast.lane.b32.xlu0 %v5903_v40, 312  ;;  %3784 = vbcast.lane.b32.xlu1 %v6017_v53, 288 }
 0x1b0   : > { %v6098_v21 = vpop.permute.xlu0 %3372 }
 0x1b1   : > { %v6101_v40 = vpop.permute.xlu1 %3368 }
 0x1b2   : > { %3753 = vbcast.lane.b32.xlu0 %v5990_v32, 296  ;;  %3687 = vbcast.lane.b32.xlu1 %v5958_v25, 304 }
 0x1b4   : > { %4954 = vmatmul.mubr.bf16.gmra.mrb[156].mxu1 %v5845_v31  ;;  %v6107_v31 = vpop.permute.xlu0 %3383 }
 0x1b5   : > { %4957 = vmatprep.mubr.bf16.mxu1 %v5872_v18  ;;  %v6110_v18 = vpop.permute.xlu1 %3376 }
 0x1b6   : > { %3656 = vbcast.lane.b32.xlu0 %v5946_v33, 312  ;;  %3819 = vbcast.lane.b32.xlu1 %v6036_v38, 288 }
 0x1ba   : > { %3788 = vbcast.lane.b32.xlu0 %v6017_v53, 296  ;;  %3722 = vbcast.lane.b32.xlu1 %v5967_v57, 304 }
 0x1bc   : > { %4958 = vmatmul.mubr.bf16.gmra.mrb[160].mxu1 %v5869_v9  ;;  %v6116_v9 = vpop.permute.xlu0 %3391 }
 0x1bd   : > { %4961 = vmatprep.mubr.bf16.mxu1 %v5888_v2  ;;  %v6118_v2 = vpop.permute.xlu1 %3387 }
 0x1be   : > { %3757 = vbcast.lane.b32.xlu0 %v5990_v32, 304  ;;  %3691 = vbcast.lane.b32.xlu1 %v5958_v25, 312 }
 0x1c1   : > { %v6133_v33 = vpop.permute.xlu1 %3395 }
 0x1c2   : > { %3726 = vbcast.lane.b32.xlu0 %v5967_v57, 312  ;;  %3823 = vbcast.lane.b32.xlu1 %v6036_v38, 296 }
 0x1c4   : > { %4962 = vmatmul.mubr.bf16.gmra.mrb[164].mxu1 %v5885_v60  ;;  %v6128_v60 = vld [vmem:[%s6804_s5 + $0x1] ss:$0 sm:$0xff] }
 0x1c5   : > { %4965 = vmatprep.mubr.bf16.mxu1 %v5909_v56  ;;  %v6130_v56 = vpop.permute.xlu0 %3399  ;;  %v6141_v35 = vpop.permute.xlu1 %3403 }
 0x1c6   : > { %3761 = vbcast.lane.b32.xlu0 %v5990_v32, 312  ;;  %3792 = vbcast.lane.b32.xlu1 %v6017_v53, 304 }
 0x1ca   : > { %3796 = vbcast.lane.b32.xlu0 %v6017_v53, 312  ;;  %3827 = vbcast.lane.b32.xlu1 %v6036_v38, 304 }
 0x1cc   : > { %4966 = vmatmul.mubr.bf16.gmra.mrb[168].mxu1 %v5906_v52 }
 0x1cd   : > { %4969 = vmatprep.mubr.bf16.mxu1 %v5925_v47 }
 0x1ce   : > { %3831 = vbcast.lane.b32.xlu1 %v6036_v38, 312 }
 0x1cf   : > { %v4863_v25 = vpop.f32.mrb[64].mxu1 }
 0x1d0   : > { %v1814_v57 = vadd.f32 %v4863_v25, %v6128_v60  ;;  %v1805_v17 = vpop.f32.mrb[65].mxu1 }
 0x1d1   : > { %v1806_v52 = vadd.f32 %v6128_v60, %v1805_v17  ;;  %v4864_v47 = vpop.f32.mrb[66].mxu1 }
 0x1d2   : > { %v1817_v23 = vadd.f32 %v4864_v47, %v6128_v60  ;;  %v1808_v29 = vpop.f32.mrb[67].mxu1  ;;  %v2318_v62 = vmax.f32 %v1814_v57, 0.0 }
 0x1d3   : > { %v1809_v30 = vadd.f32 %v6128_v60, %v1808_v29  ;;  %v2316_v0 = vmax.f32 %v1806_v52, 0.0 }
 0x1d4   : > { %v2319_v32 = vmax.f32 %v1817_v23, 0.0  ;;  %4970 = vmatmul.mubr.bf16.gmra.mrb[172].mxu1 %v5922_v20 }
 0x1d5   : > { %v2317_v49 = vmax.f32 %v1809_v30, 0.0  ;;  %4973 = vmatprep.mubr.bf16.mxu1 %v5951_v16 }
 0x1d6   : > { %v2445_v50 = vpack.c.bf16 %v2319_v32, %v2318_v62 }
 0x1d7   : > { %v2444_v24 = vpack.c.bf16 %v2317_v49, %v2316_v0  ;;  %v4867_v54 = vpop.f32.mrb[68].mxu1 }
 0x1d8   : > { %v1830_v55 = vadd.f32 %v4867_v54, %v6128_v60  ;;  %v1821_v19 = vpop.f32.mrb[69].mxu1 }
 0x1d9   : > { %v1822_v22 = vadd.f32 %v6128_v60, %v1821_v19  ;;  %v4868_v45 = vpop.f32.mrb[70].mxu1  ;;  %5005 = vmatprep.mubr.bf16.mxu0 %v2444_v24 }
 0x1da   : > { %v1833_v20 = vadd.f32 %v4868_v45, %v6128_v60  ;;  %v1824_v3 = vpop.f32.mrb[71].mxu1  ;;  %5006 = vmatmul.mubr.bf16.vlgmr.msra.gmra.mrb[64].mxu0 %v2445_v50  ;;  %v2322_v53 = vmax.f32 %v1830_v55, 0.0 }
 0x1db   : > { %v1825_v7 = vadd.f32 %v6128_v60, %v1824_v3  ;;  %v2320_v16 = vmax.f32 %v1822_v22, 0.0 }
 0x1dc   : > { %v2323_v12 = vmax.f32 %v1833_v20, 0.0  ;;  %4974 = vmatmul.mubr.bf16.gmra.mrb[176].mxu1 %v5948_v36 }
 0x1dd   : > { %v2321_v38 = vmax.f32 %v1825_v7, 0.0  ;;  %4977 = vmatprep.mubr.bf16.mxu1 %v5974_v6 }
 0x1de   : > { %v2447_v25 = vpack.c.bf16 %v2323_v12, %v2322_v53 }
 0x1df   : > { %v2446_v57 = vpack.c.bf16 %v2321_v38, %v2320_v16  ;;  %v4871_v17 = vpop.f32.mrb[72].mxu1 }
 0x1e0   : > { %v1846_v52 = vadd.f32 %v4871_v17, %v6128_v60  ;;  %v1837_v47 = vpop.f32.mrb[73].mxu1 }
 0x1e1   : > { %v1838_v23 = vadd.f32 %v6128_v60, %v1837_v47  ;;  %v4872_v29 = vpop.f32.mrb[74].mxu1  ;;  %5009 = vmatprep.mubr.bf16.mxu0 %v2446_v57 }
 0x1e2   : > { %v1849_v30 = vadd.f32 %v4872_v29, %v6128_v60  ;;  %v1840_v62 = vpop.f32.mrb[75].mxu1  ;;  %5010 = vmatmul.mubr.bf16.gmra.mrb[68].mxu0 %v2447_v25  ;;  %v2326_v32 = vmax.f32 %v1846_v52, 0.0 }
 0x1e3   : > { %v1841_v36 = vadd.f32 %v6128_v60, %v1840_v62  ;;  %v2324_v6 = vmax.f32 %v1838_v23, 0.0 }
 0x1e4   : > { %v2327_v0 = vmax.f32 %v1849_v30, 0.0  ;;  %4978 = vmatmul.mubr.bf16.gmra.mrb[180].mxu1 %v5971_v5 }
 0x1e5   : > { %v2325_v49 = vmax.f32 %v1841_v36, 0.0  ;;  %4981 = vmatprep.mubr.bf16.mxu1 %v5999_v26 }
 0x1e6   : > { %v2449_v50 = vpack.c.bf16 %v2327_v0, %v2326_v32 }
 0x1e7   : > { %v2448_v24 = vpack.c.bf16 %v2325_v49, %v2324_v6  ;;  %v4875_v54 = vpop.f32.mrb[76].mxu1 }
 0x1e8   : > { %v1862_v55 = vadd.f32 %v4875_v54, %v6128_v60  ;;  %v1853_v19 = vpop.f32.mrb[77].mxu1 }
 0x1e9   : > { %v1854_v22 = vadd.f32 %v6128_v60, %v1853_v19  ;;  %v4876_v45 = vpop.f32.mrb[78].mxu1  ;;  %5013 = vmatprep.mubr.bf16.mxu0 %v2448_v24 }
 0x1ea   : > { %v1865_v20 = vadd.f32 %v4876_v45, %v6128_v60  ;;  %v1856_v3 = vpop.f32.mrb[79].mxu1  ;;  %5014 = vmatmul.mubr.bf16.gmra.mrb[72].mxu0 %v2449_v50  ;;  %v2330_v7 = vmax.f32 %v1862_v55, 0.0 }
 0x1eb   : > { %v1857_v5 = vadd.f32 %v6128_v60, %v1856_v3  ;;  %v2328_v26 = vmax.f32 %v1854_v22, 0.0 }
 0x1ec   : > { %v2331_v53 = vmax.f32 %v1865_v20, 0.0  ;;  %4982 = vmatmul.mubr.bf16.gmra.mrb[184].mxu1 %v5996_v43 }
 0x1ed   : > { %v2329_v12 = vmax.f32 %v1857_v5, 0.0  ;;  %4985 = vmatprep.mubr.bf16.mxu1 %v6022_v61 }
 0x1ee   : > { %v2451_v16 = vpack.c.bf16 %v2331_v53, %v2330_v7 }
 0x1ef   : > { %v2450_v38 = vpack.c.bf16 %v2329_v12, %v2328_v26  ;;  %v4879_v25 = vpop.f32.mrb[80].mxu1 }
 0x1f0   : > { %v1878_v57 = vadd.f32 %v4879_v25, %v6128_v60  ;;  %v1869_v17 = vpop.f32.mrb[81].mxu1 }
 0x1f1   : > { %v1870_v52 = vadd.f32 %v6128_v60, %v1869_v17  ;;  %v4880_v47 = vpop.f32.mrb[82].mxu1  ;;  %5017 = vmatprep.mubr.bf16.mxu0 %v2450_v38 }
 0x1f2   : > { %v1881_v23 = vadd.f32 %v4880_v47, %v6128_v60  ;;  %v1872_v29 = vpop.f32.mrb[83].mxu1  ;;  %5018 = vmatmul.mubr.bf16.gmra.mrb[76].mxu0 %v2451_v16  ;;  %v2334_v30 = vmax.f32 %v1878_v57, 0.0 }
 0x1f3   : > { %v1873_v43 = vadd.f32 %v6128_v60, %v1872_v29  ;;  %v2332_v61 = vmax.f32 %v1870_v52, 0.0 }
 0x1f4   : > { %v2335_v62 = vmax.f32 %v1881_v23, 0.0  ;;  %4986 = vmatmul.mubr.bf16.gmra.mrb[188].mxu1 %v6019_v10 }
 0x1f5   : > { %v2333_v36 = vmax.f32 %v1873_v43, 0.0 }
 0x1f6   : > { %v2453_v32 = vpack.c.bf16 %v2335_v62, %v2334_v30 }
 0x1f7   : > { %v2452_v0 = vpack.c.bf16 %v2333_v36, %v2332_v61  ;;  %v4883_v6 = vpop.f32.mrb[84].mxu1 }
 0x1f8   : > { %v1894_v49 = vadd.f32 %v4883_v6, %v6128_v60  ;;  %v1885_v50 = vpop.f32.mrb[85].mxu1 }
 0x1f9   : > { %v1886_v24 = vadd.f32 %v6128_v60, %v1885_v50  ;;  %v4884_v54 = vpop.f32.mrb[86].mxu1  ;;  %5021 = vmatprep.mubr.bf16.mxu0 %v2452_v0 }
 0x1fa   : > { %v1897_v55 = vadd.f32 %v4884_v54, %v6128_v60  ;;  %v1888_v19 = vpop.f32.mrb[87].mxu1  ;;  %5022 = vmatmul.mubr.bf16.gmra.mrb[80].mxu0 %v2453_v32  ;;  %v2338_v45 = vmax.f32 %v1894_v49, 0.0 }
 0x1fb   : > { %v1889_v22 = vadd.f32 %v6128_v60, %v1888_v19  ;;  %v2336_v20 = vmax.f32 %v1886_v24, 0.0 }
 0x1fc   : > { %v2339_v10 = vmax.f32 %v1897_v55, 0.0 }
 0x1fd   : > { %v2337_v3 = vmax.f32 %v1889_v22, 0.0 }
 0x1fe   : > { %v2455_v5 = vpack.c.bf16 %v2339_v10, %v2338_v45 }
 0x1ff   : > { %v2454_v7 = vpack.c.bf16 %v2337_v3, %v2336_v20  ;;  %v4887_v53 = vpop.f32.mrb[88].mxu1 }
 0x200   : > { %v1910_v26 = vadd.f32 %v4887_v53, %v6128_v60  ;;  %v1901_v12 = vpop.f32.mrb[89].mxu1 }
 0x201   : > { %v1902_v16 = vadd.f32 %v6128_v60, %v1901_v12  ;;  %v4888_v38 = vpop.f32.mrb[90].mxu1  ;;  %5025 = vmatprep.mubr.bf16.mxu0 %v2454_v7 }
 0x202   : > { %v1913_v25 = vadd.f32 %v4888_v38, %v6128_v60  ;;  %v1904_v57 = vpop.f32.mrb[91].mxu1  ;;  %5026 = vmatmul.mubr.bf16.gmra.mrb[84].mxu0 %v2455_v5  ;;  %v2342_v52 = vmax.f32 %v1910_v26, 0.0 }
 0x203   : > { %v1905_v17 = vadd.f32 %v6128_v60, %v1904_v57  ;;  %v2340_v23 = vmax.f32 %v1902_v16, 0.0 }
 0x204   : > { %v2343_v47 = vmax.f32 %v1913_v25, 0.0 }
 0x205   : > { %v2341_v29 = vmax.f32 %v1905_v17, 0.0 }
 0x206   : > { %v2457_v43 = vpack.c.bf16 %v2343_v47, %v2342_v52 }
 0x207   : > { %v2456_v30 = vpack.c.bf16 %v2341_v29, %v2340_v23  ;;  %v4891_v62 = vpop.f32.mrb[92].mxu1 }
 0x208   : > { %v1926_v61 = vadd.f32 %v4891_v62, %v6128_v60  ;;  %v1917_v36 = vpop.f32.mrb[93].mxu1 }
 0x209   : > { %v1918_v32 = vadd.f32 %v6128_v60, %v1917_v36  ;;  %v4892_v0 = vpop.f32.mrb[94].mxu1  ;;  %5029 = vmatprep.mubr.bf16.mxu0 %v2456_v30 }
 0x20a   : > { %v1929_v6 = vadd.f32 %v4892_v0, %v6128_v60  ;;  %v1920_v49 = vpop.f32.mrb[95].mxu1  ;;  %5030 = vmatmul.mubr.bf16.gmra.mrb[88].mxu0 %v2457_v43  ;;  %v2346_v24 = vmax.f32 %v1926_v61, 0.0 }
 0x20b   : > { %v1921_v50 = vadd.f32 %v6128_v60, %v1920_v49  ;;  %v2344_v55 = vmax.f32 %v1918_v32, 0.0 }
 0x20c   : > { %v2347_v54 = vmax.f32 %v1929_v6, 0.0 }
 0x20d   : > { %v2345_v19 = vmax.f32 %v1921_v50, 0.0 }
 0x20e   : > { %v2459_v22 = vpack.c.bf16 %v2347_v54, %v2346_v24 }
 0x20f   : > { %v2458_v45 = vpack.c.bf16 %v2345_v19, %v2344_v55  ;;  %v4895_v10 = vpop.f32.mrb[96].mxu1 }
 0x210   : > { %v1942_v20 = vadd.f32 %v4895_v10, %v6128_v60  ;;  %v1933_v3 = vpop.f32.mrb[97].mxu1 }
 0x211   : > { %v1934_v5 = vadd.f32 %v6128_v60, %v1933_v3  ;;  %v4896_v7 = vpop.f32.mrb[98].mxu1  ;;  %5033 = vmatprep.mubr.bf16.mxu0 %v2458_v45 }
 0x212   : > { %v1945_v53 = vadd.f32 %v4896_v7, %v6128_v60  ;;  %v1936_v26 = vpop.f32.mrb[99].mxu1  ;;  %5034 = vmatmul.mubr.bf16.gmra.mrb[92].mxu0 %v2459_v22  ;;  %v2350_v16 = vmax.f32 %v1942_v20, 0.0 }
 0x213   : > { %v1937_v12 = vadd.f32 %v6128_v60, %v1936_v26  ;;  %v2348_v25 = vmax.f32 %v1934_v5, 0.0 }
 0x214   : > { %v2351_v38 = vmax.f32 %v1945_v53, 0.0 }
 0x215   : > { %v2349_v57 = vmax.f32 %v1937_v12, 0.0 }
 0x216   : > { %v2461_v17 = vpack.c.bf16 %v2351_v38, %v2350_v16 }
 0x217   : > { %v2460_v52 = vpack.c.bf16 %v2349_v57, %v2348_v25  ;;  %v4899_v47 = vpop.f32.mrb[100].mxu1 }
 0x218   : > { %v1958_v23 = vadd.f32 %v4899_v47, %v6128_v60  ;;  %v1949_v29 = vpop.f32.mrb[101].mxu1 }
 0x219   : > { %v1950_v43 = vadd.f32 %v6128_v60, %v1949_v29  ;;  %v4900_v30 = vpop.f32.mrb[102].mxu1  ;;  %5037 = vmatprep.mubr.bf16.mxu0 %v2460_v52 }
 0x21a   : > { %v1961_v62 = vadd.f32 %v4900_v30, %v6128_v60  ;;  %v1952_v61 = vpop.f32.mrb[103].mxu1  ;;  %5038 = vmatmul.mubr.bf16.gmra.mrb[96].mxu0 %v2461_v17  ;;  %v2354_v32 = vmax.f32 %v1958_v23, 0.0 }
 0x21b   : > { %v1953_v36 = vadd.f32 %v6128_v60, %v1952_v61  ;;  %v2352_v6 = vmax.f32 %v1950_v43, 0.0 }
 0x21c   : > { %v2355_v0 = vmax.f32 %v1961_v62, 0.0 }
 0x21d   : > { %v2353_v49 = vmax.f32 %v1953_v36, 0.0 }
 0x21e   : > { %v2463_v50 = vpack.c.bf16 %v2355_v0, %v2354_v32 }
 0x21f   : > { %v2462_v24 = vpack.c.bf16 %v2353_v49, %v2352_v6  ;;  %v4903_v54 = vpop.f32.mrb[104].mxu1 }
 0x220   : > { %v1974_v55 = vadd.f32 %v4903_v54, %v6128_v60  ;;  %v1965_v19 = vpop.f32.mrb[105].mxu1 }
 0x221   : > { %v1966_v22 = vadd.f32 %v6128_v60, %v1965_v19  ;;  %v4904_v45 = vpop.f32.mrb[106].mxu1  ;;  %5041 = vmatprep.mubr.bf16.mxu0 %v2462_v24 }
 0x222   : > { %v1977_v10 = vadd.f32 %v4904_v45, %v6128_v60  ;;  %v1968_v20 = vpop.f32.mrb[107].mxu1  ;;  %5042 = vmatmul.mubr.bf16.gmra.mrb[100].mxu0 %v2463_v50  ;;  %v2358_v5 = vmax.f32 %v1974_v55, 0.0 }
 0x223   : > { %v1969_v3 = vadd.f32 %v6128_v60, %v1968_v20  ;;  %v2356_v53 = vmax.f32 %v1966_v22, 0.0 }
 0x224   : > { %v2359_v7 = vmax.f32 %v1977_v10, 0.0 }
 0x225   : > { %v2357_v26 = vmax.f32 %v1969_v3, 0.0 }
 0x226   : > { %v2465_v12 = vpack.c.bf16 %v2359_v7, %v2358_v5 }
 0x227   : > { %v2464_v16 = vpack.c.bf16 %v2357_v26, %v2356_v53  ;;  %v4907_v38 = vpop.f32.mrb[108].mxu1 }
 0x228   : > { %v1990_v25 = vadd.f32 %v4907_v38, %v6128_v60  ;;  %v1981_v57 = vpop.f32.mrb[109].mxu1 }
 0x229   : > { %v1982_v17 = vadd.f32 %v6128_v60, %v1981_v57  ;;  %v4908_v52 = vpop.f32.mrb[110].mxu1  ;;  %5045 = vmatprep.mubr.bf16.mxu0 %v2464_v16 }
 0x22a   : > { %v1993_v47 = vadd.f32 %v4908_v52, %v6128_v60  ;;  %v1984_v23 = vpop.f32.mrb[111].mxu1  ;;  %5046 = vmatmul.mubr.bf16.gmra.mrb[104].mxu0 %v2465_v12  ;;  %v2362_v43 = vmax.f32 %v1990_v25, 0.0 }
 0x22b   : > { %v1985_v29 = vadd.f32 %v6128_v60, %v1984_v23  ;;  %v2360_v62 = vmax.f32 %v1982_v17, 0.0 }
 0x22c   : > { %v2363_v30 = vmax.f32 %v1993_v47, 0.0 }
 0x22d   : > { %v2361_v61 = vmax.f32 %v1985_v29, 0.0 }
 0x22e   : > { %v2467_v36 = vpack.c.bf16 %v2363_v30, %v2362_v43 }
 0x22f   : > { %v2466_v32 = vpack.c.bf16 %v2361_v61, %v2360_v62  ;;  %v4911_v0 = vpop.f32.mrb[112].mxu1 }
 0x230   : > { %v2006_v6 = vadd.f32 %v4911_v0, %v6128_v60  ;;  %v1997_v49 = vpop.f32.mrb[113].mxu1 }
 0x231   : > { %v1998_v50 = vadd.f32 %v6128_v60, %v1997_v49  ;;  %v4912_v24 = vpop.f32.mrb[114].mxu1  ;;  %5049 = vmatprep.mubr.bf16.mxu0 %v2466_v32 }
 0x232   : > { %v2009_v54 = vadd.f32 %v4912_v24, %v6128_v60  ;;  %v2000_v55 = vpop.f32.mrb[115].mxu1  ;;  %5050 = vmatmul.mubr.bf16.gmra.mrb[108].mxu0 %v2467_v36  ;;  %v2366_v22 = vmax.f32 %v2006_v6, 0.0 }
 0x233   : > { %v2001_v19 = vadd.f32 %v6128_v60, %v2000_v55  ;;  %v2364_v10 = vmax.f32 %v1998_v50, 0.0 }
 0x234   : > { %v2367_v45 = vmax.f32 %v2009_v54, 0.0 }
 0x235   : > { %v2365_v20 = vmax.f32 %v2001_v19, 0.0 }
 0x236   : > { %v2469_v3 = vpack.c.bf16 %v2367_v45, %v2366_v22 }
 0x237   : > { %v2468_v5 = vpack.c.bf16 %v2365_v20, %v2364_v10  ;;  %v4915_v7 = vpop.f32.mrb[116].mxu1 }
 0x238   : > { %v2022_v53 = vadd.f32 %v4915_v7, %v6128_v60  ;;  %v2013_v26 = vpop.f32.mrb[117].mxu1 }
 0x239   : > { %v2014_v12 = vadd.f32 %v6128_v60, %v2013_v26  ;;  %v4916_v16 = vpop.f32.mrb[118].mxu1  ;;  %5053 = vmatprep.mubr.bf16.mxu0 %v2468_v5 }
 0x23a   : > { %v2025_v38 = vadd.f32 %v4916_v16, %v6128_v60  ;;  %v2016_v25 = vpop.f32.mrb[119].mxu1  ;;  %5054 = vmatmul.mubr.bf16.gmra.mrb[112].mxu0 %v2469_v3  ;;  %v2370_v17 = vmax.f32 %v2022_v53, 0.0 }
 0x23b   : > { %v2017_v57 = vadd.f32 %v6128_v60, %v2016_v25  ;;  %v2368_v47 = vmax.f32 %v2014_v12, 0.0 }
 0x23c   : > { %v2371_v52 = vmax.f32 %v2025_v38, 0.0 }
 0x23d   : > { %v2369_v23 = vmax.f32 %v2017_v57, 0.0 }
 0x23e   : > { %v2471_v29 = vpack.c.bf16 %v2371_v52, %v2370_v17 }
 0x23f   : > { %v2470_v43 = vpack.c.bf16 %v2369_v23, %v2368_v47  ;;  %v4919_v30 = vpop.f32.mrb[120].mxu1 }
 0x240   : > { %v2038_v62 = vadd.f32 %v4919_v30, %v6128_v60  ;;  %v2029_v61 = vpop.f32.mrb[121].mxu1 }
 0x241   : > { %v2030_v36 = vadd.f32 %v6128_v60, %v2029_v61  ;;  %v4920_v32 = vpop.f32.mrb[122].mxu1  ;;  %5057 = vmatprep.mubr.bf16.mxu0 %v2470_v43 }
 0x242   : > { %v2041_v0 = vadd.f32 %v4920_v32, %v6128_v60  ;;  %v2032_v6 = vpop.f32.mrb[123].mxu1  ;;  %5058 = vmatmul.mubr.bf16.gmra.mrb[116].mxu0 %v2471_v29  ;;  %v2374_v50 = vmax.f32 %v2038_v62, 0.0 }
 0x243   : > { %v2033_v49 = vadd.f32 %v6128_v60, %v2032_v6  ;;  %v2372_v54 = vmax.f32 %v2030_v36, 0.0  ;;  %v6216_v36 = vpop.permute.xlu0 %3407 }
 0x244   : > { %v2375_v24 = vmax.f32 %v2041_v0, 0.0 }
 0x245   : > { %v2373_v55 = vmax.f32 %v2033_v49, 0.0 }
 0x246   : > { %v2473_v19 = vpack.c.bf16 %v2375_v24, %v2374_v50 }
 0x247   : > { %v2472_v22 = vpack.c.bf16 %v2373_v55, %v2372_v54  ;;  %v4923_v45 = vpop.f32.mrb[124].mxu1 }
 0x248   : > { %v2054_v10 = vadd.f32 %v4923_v45, %v6128_v60  ;;  %v2045_v20 = vpop.f32.mrb[125].mxu1 }
 0x249   : > { %v2046_v3 = vadd.f32 %v6128_v60, %v2045_v20  ;;  %v4924_v5 = vpop.f32.mrb[126].mxu1  ;;  %5061 = vmatprep.mubr.bf16.mxu0 %v2472_v22 }
 0x24a   : > { %v2057_v7 = vadd.f32 %v4924_v5, %v6128_v60  ;;  %v2048_v53 = vpop.f32.mrb[127].mxu1  ;;  %5062 = vmatmul.mubr.bf16.gmra.mrb[120].mxu0 %v2473_v19  ;;  %v2378_v12 = vmax.f32 %v2054_v10, 0.0  ;;  %v6220_v10 = vpop.permute.xlu0 %3418 }
 0x24b   : > { %v2049_v26 = vadd.f32 %v6128_v60, %v2048_v53  ;;  %v2376_v38 = vmax.f32 %v2046_v3, 0.0 }
 0x24c   : > { %v2379_v16 = vmax.f32 %v2057_v7, 0.0 }
 0x24d   : > { %v2377_v25 = vmax.f32 %v2049_v26, 0.0 }
 0x24e   : > { %v2475_v57 = vpack.c.bf16 %v2379_v16, %v2378_v12 }
 0x24f   : > { %v2474_v17 = vpack.c.bf16 %v2377_v25, %v2376_v38  ;;  %v4927_v52 = vpop.f32.mrb[128].mxu1  ;;  %v6224_v38 = vpop.permute.xlu1 %3411 }
 0x250   : > { %v2070_v47 = vadd.f32 %v4927_v52, %v6128_v60  ;;  %v2061_v23 = vpop.f32.mrb[129].mxu1 }
 0x251   : > { %v2062_v29 = vadd.f32 %v6128_v60, %v2061_v23  ;;  %v4928_v43 = vpop.f32.mrb[130].mxu1  ;;  %5065 = vmatprep.mubr.bf16.mxu0 %v2474_v17  ;;  %v6226_v17 = vpop.permute.xlu0 %3426 }
 0x252   : > { %v2073_v30 = vadd.f32 %v4928_v43, %v6128_v60  ;;  %v2064_v62 = vpop.f32.mrb[131].mxu1  ;;  %5066 = vmatmul.mubr.bf16.gmra.mrb[124].mxu0 %v2475_v57  ;;  %v2382_v32 = vmax.f32 %v2070_v47, 0.0 }
 0x253   : > { %v2065_v61 = vadd.f32 %v6128_v60, %v2064_v62  ;;  %v2380_v6 = vmax.f32 %v2062_v29, 0.0 }
 0x254   : > { %v2383_v0 = vmax.f32 %v2073_v30, 0.0 }
 0x255   : > { %v2381_v49 = vmax.f32 %v2065_v61, 0.0 }
 0x256   : > { %v2477_v50 = vpack.c.bf16 %v2383_v0, %v2382_v32  ;;  %v6232_v0 = vpop.permute.xlu1 %3422 }
 0x257   : > { %v2476_v24 = vpack.c.bf16 %v2381_v49, %v2380_v6  ;;  %v4931_v54 = vpop.f32.mrb[132].mxu1 }
 0x258   : > { %v2086_v55 = vadd.f32 %v4931_v54, %v6128_v60  ;;  %v2077_v19 = vpop.f32.mrb[133].mxu1 }
 0x259   : > { %v2078_v22 = vadd.f32 %v6128_v60, %v2077_v19  ;;  %v4932_v45 = vpop.f32.mrb[134].mxu1  ;;  %5069 = vmatprep.mubr.bf16.mxu0 %v2476_v24 }
 0x25a   : > { %v2089_v20 = vadd.f32 %v4932_v45, %v6128_v60  ;;  %v2080_v3 = vpop.f32.mrb[135].mxu1  ;;  %5070 = vmatmul.mubr.bf16.gmra.mrb[128].mxu0 %v2477_v50  ;;  %v2386_v7 = vmax.f32 %v2086_v55, 0.0  ;;  %v6234_v50 = vpop.permute.xlu0 %3434 }
 0x25b   : > { %v2081_v5 = vadd.f32 %v6128_v60, %v2080_v3  ;;  %v2384_v26 = vmax.f32 %v2078_v22, 0.0 }
 0x25c   : > { %v2387_v53 = vmax.f32 %v2089_v20, 0.0 }
 0x25d   : > { %v2385_v12 = vmax.f32 %v2081_v5, 0.0 }
 0x25e   : > { %v2479_v16 = vpack.c.bf16 %v2387_v53, %v2386_v7  ;;  %v6239_v7 = vpop.permute.xlu1 %3430 }
 0x25f   : > { %v2478_v25 = vpack.c.bf16 %v2385_v12, %v2384_v26  ;;  %v4935_v57 = vpop.f32.mrb[136].mxu1  ;;  %v6242_v26 = vpop.permute.xlu0 %3442 }
 0x260   : > { %v2102_v52 = vadd.f32 %v4935_v57, %v6128_v60  ;;  %v2093_v47 = vpop.f32.mrb[137].mxu1 }
 0x261   : > { %v2094_v23 = vadd.f32 %v6128_v60, %v2093_v47  ;;  %v4936_v29 = vpop.f32.mrb[138].mxu1  ;;  %5073 = vmatprep.mubr.bf16.mxu0 %v2478_v25 }
 0x262   : > { %v2105_v43 = vadd.f32 %v4936_v29, %v6128_v60  ;;  %v2096_v30 = vpop.f32.mrb[139].mxu1  ;;  %5074 = vmatmul.mubr.bf16.gmra.mrb[132].mxu0 %v2479_v16  ;;  %v2390_v61 = vmax.f32 %v2102_v52, 0.0 }
 0x263   : > { %v2097_v62 = vadd.f32 %v6128_v60, %v2096_v30  ;;  %v2388_v6 = vmax.f32 %v2094_v23, 0.0  ;;  %v6245_v30 = vpop.permute.xlu1 %3438 }
 0x264   : > { %v2391_v32 = vmax.f32 %v2105_v43, 0.0 }
 0x265   : > { %v2389_v49 = vmax.f32 %v2097_v62, 0.0 }
 0x266   : > { %v2481_v24 = vpack.c.bf16 %v2391_v32, %v2390_v61  ;;  %v6248_v32 = vpop.permute.xlu0 %3453 }
 0x267   : > { %v2480_v54 = vpack.c.bf16 %v2389_v49, %v2388_v6  ;;  %v4939_v55 = vpop.f32.mrb[140].mxu1  ;;  %6808 = vst [vmem:[#allocation6_spill] sm:$0xff] %v6248_v32 }
 0x268   : > { %v2118_v19 = vadd.f32 %v4939_v55, %v6128_v60  ;;  %v2109_v22 = vpop.f32.mrb[141].mxu1 }
 0x269   : > { %v2110_v45 = vadd.f32 %v6128_v60, %v2109_v22  ;;  %v4940_v20 = vpop.f32.mrb[142].mxu1  ;;  %5077 = vmatprep.mubr.bf16.mxu0 %v2480_v54 }
 0x26a   : > { %v2121_v3 = vadd.f32 %v4940_v20, %v6128_v60  ;;  %v2112_v5 = vpop.f32.mrb[143].mxu1  ;;  %5078 = vmatmul.mubr.bf16.gmra.mrb[136].mxu0 %v2481_v24  ;;  %v2394_v12 = vmax.f32 %v2118_v19, 0.0  ;;  %v6252_v20 = vpop.permute.xlu1 %3446 }
 0x26b   : > { %v2113_v53 = vadd.f32 %v6128_v60, %v2112_v5  ;;  %v2392_v25 = vmax.f32 %v2110_v45, 0.0  ;;  %6809 = vst [vmem:[#allocation7_spill] sm:$0xff] %v6252_v20 }
 0x26c   : > { %v2395_v16 = vmax.f32 %v2121_v3, 0.0 }
 0x26d   : > { %v2393_v57 = vmax.f32 %v2113_v53, 0.0  ;;  %v6254_v53 = vpop.permute.xlu0 %3461 }
 0x26e   : > { %v2483_v52 = vpack.c.bf16 %v2395_v16, %v2394_v12  ;;  %6810 = vst [vmem:[#allocation8_spill] sm:$0xff] %v6254_v53 }
 0x26f   : > { %v2482_v47 = vpack.c.bf16 %v2393_v57, %v2392_v25  ;;  %v4943_v23 = vpop.f32.mrb[144].mxu1 }
 0x270   : > { %v2134_v29 = vadd.f32 %v4943_v23, %v6128_v60  ;;  %v2125_v43 = vpop.f32.mrb[145].mxu1 }
 0x271   : > { %v2126_v62 = vadd.f32 %v6128_v60, %v2125_v43  ;;  %v4944_v61 = vpop.f32.mrb[146].mxu1  ;;  %5081 = vmatprep.mubr.bf16.mxu0 %v2482_v47 }
 0x272   : > { %v2137_v6 = vadd.f32 %v4944_v61, %v6128_v60  ;;  %v2128_v49 = vpop.f32.mrb[147].mxu1  ;;  %5082 = vmatmul.mubr.bf16.gmra.mrb[140].mxu0 %v2483_v52  ;;  %v2398_v54 = vmax.f32 %v2134_v29, 0.0 }
 0x273   : > { %v2129_v24 = vadd.f32 %v6128_v60, %v2128_v49  ;;  %v2396_v19 = vmax.f32 %v2126_v62, 0.0  ;;  %v6260_v62 = vpop.permute.xlu1 %3457  ;;  %v6262_v49 = vpop.permute.xlu0 %3469 }
 0x274   : > { %v2399_v55 = vmax.f32 %v2137_v6, 0.0  ;;  %6811 = vst [vmem:[#allocation9_spill] sm:$0xff] %v6260_v62  ;;  %6812 = vst [vmem:[#allocation10_spill] sm:$0xff] %v6262_v49 }
 0x275   : > { %v2397_v22 = vmax.f32 %v2129_v24, 0.0 }
 0x276   : > { %v2485_v45 = vpack.c.bf16 %v2399_v55, %v2398_v54 }
 0x277   : > { %v2484_v3 = vpack.c.bf16 %v2397_v22, %v2396_v19  ;;  %v4947_v5 = vpop.f32.mrb[148].mxu1 }
 0x278   : > { %v2150_v12 = vadd.f32 %v4947_v5, %v6128_v60  ;;  %v2141_v16 = vpop.f32.mrb[149].mxu1 }
 0x279   : > { %v2142_v25 = vadd.f32 %v6128_v60, %v2141_v16  ;;  %v4948_v57 = vpop.f32.mrb[150].mxu1  ;;  %5085 = vmatprep.mubr.bf16.mxu0 %v2484_v3  ;;  %v6267_v16 = vpop.permute.xlu1 %3465 }
 0x27a   : > { %v2153_v52 = vadd.f32 %v4948_v57, %v6128_v60  ;;  %v2144_v47 = vpop.f32.mrb[151].mxu1  ;;  %5086 = vmatmul.mubr.bf16.gmra.mrb[144].mxu0 %v2485_v45  ;;  %v2402_v29 = vmax.f32 %v2150_v12, 0.0  ;;  %6813 = vst [vmem:[#allocation11_spill] sm:$0xff] %v6267_v16  ;;  %v6270_v57 = vpop.permute.xlu0 %3477 }
 0x27b   : > { %v2145_v23 = vadd.f32 %v6128_v60, %v2144_v47  ;;  %v2400_v61 = vmax.f32 %v2142_v25, 0.0  ;;  %6814 = vst [vmem:[#allocation12_spill] sm:$0xff] %v6270_v57 }
 0x27c   : > { %v2403_v43 = vmax.f32 %v2153_v52, 0.0 }
 0x27d   : > { %v2401_v6 = vmax.f32 %v2145_v23, 0.0 }
 0x27e   : > { %v2487_v24 = vpack.c.bf16 %v2403_v43, %v2402_v29  ;;  %v6276_v49 = vpop.permute.xlu0 %3488 }
 0x27f   : > { %v2486_v54 = vpack.c.bf16 %v2401_v6, %v2400_v61  ;;  %v4951_v55 = vpop.f32.mrb[152].mxu1  ;;  %6816 = vst [vmem:[#allocation14_spill] sm:$0xff] %v6276_v49 }
 0x280   : > { %v2166_v19 = vadd.f32 %v4951_v55, %v6128_v60  ;;  %v2157_v22 = vpop.f32.mrb[153].mxu1 }
 0x281   : > { %v2158_v3 = vadd.f32 %v6128_v60, %v2157_v22  ;;  %v4952_v5 = vpop.f32.mrb[154].mxu1  ;;  %5089 = vmatprep.mubr.bf16.mxu0 %v2486_v54  ;;  %v6273_v22 = vpop.permute.xlu1 %3473 }
 0x282   : > { %v2169_v45 = vadd.f32 %v4952_v5, %v6128_v60  ;;  %v2160_v12 = vpop.f32.mrb[155].mxu1  ;;  %5090 = vmatmul.mubr.bf16.gmra.mrb[148].mxu0 %v2487_v24  ;;  %v2406_v52 = vmax.f32 %v2166_v19, 0.0  ;;  %6815 = vst [vmem:[#allocation13_spill] sm:$0xff] %v6273_v22 }
 0x283   : > { %v2161_v25 = vadd.f32 %v6128_v60, %v2160_v12  ;;  %v2404_v23 = vmax.f32 %v2158_v3, 0.0 }
 0x284   : > { %v2407_v47 = vmax.f32 %v2169_v45, 0.0 }
 0x285   : > { %v2405_v29 = vmax.f32 %v2161_v25, 0.0 }
 0x286   : > { %v2489_v43 = vpack.c.bf16 %v2407_v47, %v2406_v52 }
 0x287   : > { %v2488_v61 = vpack.c.bf16 %v2405_v29, %v2404_v23  ;;  %v4955_v6 = vpop.f32.mrb[156].mxu1  ;;  %v6280_v29 = vpop.permute.xlu1 %3481 }
 0x288   : > { %v2182_v55 = vadd.f32 %v4955_v6, %v6128_v60  ;;  %v2173_v54 = vpop.f32.mrb[157].mxu1  ;;  %6817 = vst [vmem:[#allocation15_spill] sm:$0xff] %v6280_v29 }
 0x289   : > { %v2174_v24 = vadd.f32 %v6128_v60, %v2173_v54  ;;  %v4956_v5 = vpop.f32.mrb[158].mxu1  ;;  %5093 = vmatprep.mubr.bf16.mxu0 %v2488_v61  ;;  %v6282_v54 = vpop.permute.xlu0 %3496 }
 0x28a   : > { %v2185_v12 = vadd.f32 %v4956_v5, %v6128_v60  ;;  %v2176_v19 = vpop.f32.mrb[159].mxu1  ;;  %5094 = vmatmul.mubr.bf16.gmra.mrb[152].mxu0 %v2489_v43  ;;  %v2410_v45 = vmax.f32 %v2182_v55, 0.0  ;;  %6818 = vst [vmem:[#allocation16_spill] sm:$0xff] %v6282_v54 }
 0x28b   : > { %v2177_v3 = vadd.f32 %v6128_v60, %v2176_v19  ;;  %v2408_v52 = vmax.f32 %v2174_v24, 0.0 }
 0x28c   : > { %v2411_v25 = vmax.f32 %v2185_v12, 0.0 }
 0x28d   : > { %v2409_v47 = vmax.f32 %v2177_v3, 0.0  ;;  %v6288_v3 = vpop.permute.xlu1 %3492 }
 0x28e   : > { %v2491_v23 = vpack.c.bf16 %v2411_v25, %v2410_v45  ;;  %6819 = vst [vmem:[#allocation17_spill] sm:$0xff] %v6288_v3 }
 0x28f   : > { %v2490_v6 = vpack.c.bf16 %v2409_v47, %v2408_v52  ;;  %v4959_v57 = vpop.f32.mrb[160].mxu1  ;;  %v6290_v52 = vpop.permute.xlu0 %3504 }
 0x290   : > { %v2198_v61 = vadd.f32 %v4959_v57, %v6128_v60  ;;  %v2189_v49 = vpop.f32.mrb[161].mxu1  ;;  %6820 = vst [vmem:[#allocation18_spill] sm:$0xff] %v6290_v52 }
 0x291   : > { %v2190_v5 = vadd.f32 %v6128_v60, %v2189_v49  ;;  %v4960_v22 = vpop.f32.mrb[162].mxu1  ;;  %5097 = vmatprep.mubr.bf16.mxu0 %v2490_v6 }
 0x292   : > { %v2201_v43 = vadd.f32 %v4960_v22, %v6128_v60  ;;  %v2192_v55 = vpop.f32.mrb[163].mxu1  ;;  %5098 = vmatmul.mubr.bf16.gmra.mrb[156].mxu0 %v2491_v23  ;;  %v2414_v12 = vmax.f32 %v2198_v61, 0.0 }
 0x293   : > { %v2193_v24 = vadd.f32 %v6128_v60, %v2192_v55  ;;  %v2412_v45 = vmax.f32 %v2190_v5, 0.0  ;;  %v6298_v55 = vpop.permute.xlu0 %3512 }
 0x294   : > { %v2415_v19 = vmax.f32 %v2201_v43, 0.0  ;;  %v6295_v43 = vpop.permute.xlu1 %3500  ;;  %6822 = vst [vmem:[#allocation20_spill] sm:$0xff] %v6298_v55 }
 0x295   : > { %v2413_v25 = vmax.f32 %v2193_v24, 0.0  ;;  %6821 = vst [vmem:[#allocation19_spill] sm:$0xff] %v6295_v43 }
 0x296   : > { %v2493_v57 = vpack.c.bf16 %v2415_v19, %v2414_v12 }
 0x297   : > { %v2492_v47 = vpack.c.bf16 %v2413_v25, %v2412_v45  ;;  %v4963_v54 = vpop.f32.mrb[164].mxu1  ;;  %v6304_v43 = vpop.permute.xlu0 %3523 }
 0x298   : > { %v2214_v49 = vadd.f32 %v4963_v54, %v6128_v60  ;;  %v2205_v6 = vpop.f32.mrb[165].mxu1  ;;  %v6301_v3 = vpop.permute.xlu1 %3508  ;;  %6824 = vst [vmem:[#allocation22_spill] sm:$0xff] %v6304_v43 }
 0x299   : > { %v2206_v22 = vadd.f32 %v6128_v60, %v2205_v6  ;;  %v4964_v29 = vpop.f32.mrb[166].mxu1  ;;  %5101 = vmatprep.mubr.bf16.mxu0 %v2492_v47  ;;  %6823 = vst [vmem:[#allocation21_spill] sm:$0xff] %v6301_v3 }
 0x29a   : > { %v2217_v23 = vadd.f32 %v4964_v29, %v6128_v60  ;;  %v2208_v61 = vpop.f32.mrb[167].mxu1  ;;  %5102 = vmatmul.mubr.bf16.gmra.mrb[160].mxu0 %v2493_v57  ;;  %v2418_v24 = vmax.f32 %v2214_v49, 0.0 }
 0x29b   : > { %v2209_v5 = vadd.f32 %v6128_v60, %v2208_v61  ;;  %v2416_v19 = vmax.f32 %v2206_v22, 0.0 }
 0x29c   : > { %v2419_v12 = vmax.f32 %v2217_v23, 0.0 }
 0x29d   : > { %v2417_v45 = vmax.f32 %v2209_v5, 0.0 }
 0x29e   : > { %v2495_v54 = vpack.c.bf16 %v2419_v12, %v2418_v24 }
 0x29f   : > { %v2494_v25 = vpack.c.bf16 %v2417_v45, %v2416_v19  ;;  %v4967_v52 = vpop.f32.mrb[168].mxu1  ;;  %v6308_v19 = vpop.permute.xlu1 %3516 }
 0x2a0   : > { %v2230_v6 = vadd.f32 %v4967_v52, %v6128_v60  ;;  %v2221_v47 = vpop.f32.mrb[169].mxu1  ;;  %6825 = vst [vmem:[#allocation23_spill] sm:$0xff] %v6308_v19 }
 0x2a1   : > { %v2222_v29 = vadd.f32 %v6128_v60, %v2221_v47  ;;  %v4968_v57 = vpop.f32.mrb[170].mxu1  ;;  %5105 = vmatprep.mubr.bf16.mxu0 %v2494_v25  ;;  %v6310_v47 = vpop.permute.xlu0 %3531 }
 0x2a2   : > { %v2233_v61 = vadd.f32 %v4968_v57, %v6128_v60  ;;  %v2224_v49 = vpop.f32.mrb[171].mxu1  ;;  %5106 = vmatmul.mubr.bf16.gmra.mrb[164].mxu0 %v2495_v54  ;;  %v2422_v23 = vmax.f32 %v2230_v6, 0.0  ;;  %6826 = vst [vmem:[#allocation24_spill] sm:$0xff] %v6310_v47 }
 0x2a3   : > { %v2225_v22 = vadd.f32 %v6128_v60, %v2224_v49  ;;  %v2420_v24 = vmax.f32 %v2222_v29, 0.0 }
 0x2a4   : > { %v2423_v5 = vmax.f32 %v2233_v61, 0.0  ;;  %v6319_v61 = vld [vmem:[%s6804_s5 + $0x2] ss:$0 sm:$0xff] }
 0x2a5   : > { %v2421_v12 = vmax.f32 %v2225_v22, 0.0 }
 0x2a6   : > { %v2497_v52 = vpack.c.bf16 %v2423_v5, %v2422_v23  ;;  %v6321_v23 = vpop.permute.xlu1 %3527 }
 0x2a7   : > { %v2496_v45 = vpack.c.bf16 %v2421_v12, %v2420_v24  ;;  %v4971_v55 = vpop.f32.mrb[172].mxu1  ;;  %6827 = vst [vmem:[#allocation25_spill] sm:$0xff] %v6321_v23  ;;  %v6323_v24 = vpop.permute.xlu0 %3539 }
 0x2a8   : > { %v2246_v25 = vadd.f32 %v4971_v55, %v6128_v60  ;;  %v2237_v43 = vpop.f32.mrb[173].mxu1  ;;  %6828 = vst [vmem:[#allocation26_spill] sm:$0xff] %v6323_v24 }
 0x2a9   : > { %v2238_v57 = vadd.f32 %v6128_v60, %v2237_v43  ;;  %v4972_v3 = vpop.f32.mrb[174].mxu1  ;;  %5109 = vmatprep.mubr.bf16.mxu0 %v2496_v45 }
 0x2aa   : > { %v2249_v54 = vadd.f32 %v4972_v3, %v6128_v60  ;;  %v2240_v6 = vpop.f32.mrb[175].mxu1  ;;  %5110 = vmatmul.mubr.bf16.gmra.mrb[168].mxu0 %v2497_v52  ;;  %v2426_v49 = vmax.f32 %v2246_v25, 0.0  ;;  %v6338_v53 = vpop.permute.xlu1 %3535 }
 0x2ab   : > { %v2241_v29 = vadd.f32 %v6128_v60, %v2240_v6  ;;  %v2424_v55 = vmax.f32 %v2238_v57, 0.0  ;;  %6829 = vst [vmem:[#allocation27_spill] sm:$0xff] %v6338_v53 }
 0x2ac   : > { %v2427_v22 = vmax.f32 %v2249_v54, 0.0 }
 0x2ad   : > { %v2425_v5 = vmax.f32 %v2241_v29, 0.0  ;;  %v5007_v43 = vpop.f32.mrb[64].mxu0 }
 0x2ae   : > { %v2499_v12 = vpack.c.bf16 %v2427_v22, %v2426_v49  ;;  %v2619_v3 = vadd.f32 %v5007_v43, %v6319_v61  ;;  %v2610_v52 = vpop.f32.mrb[65].mxu0 }
 0x2af   : > { %v2498_v45 = vpack.c.bf16 %v2425_v5, %v2424_v55  ;;  %v2611_v6 = vadd.f32 %v6319_v61, %v2610_v52  ;;  %v4975_v47 = vpop.f32.mrb[176].mxu1  ;;  %v5008_v19 = vpop.f32.mrb[66].mxu0 }
 0x2b0   : > { %v2262_v16 = vadd.f32 %v4975_v47, %v6128_v60  ;;  %v2622_v25 = vadd.f32 %v5008_v19, %v6319_v61  ;;  %v2253_v54 = vpop.f32.mrb[177].mxu1  ;;  %v2613_v23 = vpop.f32.mrb[67].mxu0  ;;  %v3123_v22 = vmax.f32 %v2619_v3, 0.0  ;;  %v6335_v47 = vld [vmem:[%s6804_s5 + $0x1] ss:$0 sm:$0xff] }
 0x2b1   : > { %v3121_v57 = vmax.f32 %v2611_v6, 0.0  ;;  %v2254_v29 = vadd.f32 %v6128_v60, %v2253_v54  ;;  %v2614_v24 = vadd.f32 %v6319_v61, %v2613_v23  ;;  %v4976_v49 = vpop.f32.mrb[178].mxu1  ;;  %5113 = vmatprep.mubr.bf16.mxu0 %v2498_v45 }
 0x2b2   : > { %v2265_v55 = vadd.f32 %v4976_v49, %v6128_v60  ;;  %v2256_v5 = vpop.f32.mrb[179].mxu1  ;;  %5114 = vmatmul.mubr.bf16.gmra.mrb[172].mxu0 %v2499_v12  ;;  %v2430_v52 = vmax.f32 %v2262_v16, 0.0  ;;  %v3124_v6 = vmax.f32 %v2622_v25, 0.0  ;;  %v3835_v49 = vmul.f32 %v5992_v48, %v3123_v22 }
 0x2b3   : > { %v3122_v43 = vmax.f32 %v2614_v24, 0.0  ;;  %v2257_v19 = vadd.f32 %v6335_v47, %v2256_v5  ;;  %v3833_v23 = vmul.f32 %v5977_v51, %v3121_v57  ;;  %v2428_v3 = vmax.f32 %v2254_v29, 0.0  ;;  %v6342_v24 = vpop.permute.xlu0 %3547 }
 0x2b4   : > { %v2431_v54 = vmax.f32 %v2265_v55, 0.0  ;;  %v3836_v51 = vmul.f32 %v6012_v4, %v3124_v6 }
 0x2b5   : > { %v3834_v60 = vmul.f32 %v5994_v14, %v3122_v43  ;;  %v2429_v45 = vmax.f32 %v2257_v19, 0.0  ;;  %v5011_v12 = vpop.f32.mrb[68].mxu0 }
 0x2b6   : > { %v2501_v62 = vpack.c.bf16 %v2431_v54, %v2430_v52  ;;  %v2626_v32 = vpop.f32.mrb[69].mxu0  ;;  %v2635_v16 = vadd.f32 %v5011_v12, %v6319_v61 }
 0x2b7   : > { %v3963_v20 = vmax.f32 %v3833_v23, %v3834_v60  ;;  %v2500_v5 = vpack.c.bf16 %v2429_v45, %v2428_v3  ;;  %v2627_v25 = vadd.f32 %v6319_v61, %v2626_v32  ;;  %v4979_v55 = vpop.f32.mrb[180].mxu1  ;;  %v5012_v53 = vpop.f32.mrb[70].mxu0 }
 0x2b8   : > { %v2278_v14 = vadd.f32 %v6335_v47, %v4979_v55  ;;  %v2269_v57 = vpop.f32.mrb[181].mxu1  ;;  %v2629_v29 = vpop.f32.mrb[71].mxu0  ;;  %v2638_v48 = vadd.f32 %v5012_v53, %v6319_v61  ;;  %v3127_v3 = vmax.f32 %v2635_v16, 0.0 }
 0x2b9   : > { %v3964_v43 = vmax.f32 %v3963_v20, %v3835_v49  ;;  %v3125_v19 = vmax.f32 %v2627_v25, 0.0  ;;  %v2630_v22 = vadd.f32 %v6319_v61, %v2629_v29  ;;  %v4980_v52 = vpop.f32.mrb[182].mxu1  ;;  %5117 = vmatprep.mubr.bf16.mxu0 %v2500_v5  ;;  %v2270_v54 = vadd.f32 %v6335_v47, %v2269_v57  ;;  %v6355_v53 = vpop.permute.xlu1 %3543 }
 0x2ba   : > { %v2281_v32 = vadd.f32 %v6335_v47, %v4980_v52  ;;  %v2272_v23 = vpop.f32.mrb[183].mxu1  ;;  %5118 = vmatmul.mubr.bf16.gmra.mrb[176].mxu0 %v2501_v62  ;;  %v2434_v45 = vmax.f32 %v2278_v14, 0.0  ;;  %v3128_v25 = vmax.f32 %v2638_v48, 0.0  ;;  %v6358_v57 = vpop.permute.xlu0 %3558 }
 0x2bb   : > { %v3837_v4 = vmul.f32 %v6008_v27, %v3125_v19  ;;  %v3965_v6 = vmax.f32 %v3964_v43, %v3836_v51  ;;  %v3126_v60 = vmax.f32 %v2630_v22, 0.0  ;;  %v2273_v12 = vadd.f32 %v6335_v47, %v2272_v23 }
 0x2bc   : > { %v2435_v20 = vmax.f32 %v2281_v32, 0.0  ;;  %v2432_v29 = vmax.f32 %v2270_v54, 0.0  ;;  %v3839_v27 = vmul.f32 %v6025_v1, %v3127_v3  ;;  %v3840_v54 = vmul.f32 %v6042_v58, %v3128_v25 }
 0x2bd   : > { %v3966_v49 = vmax.f32 %v3965_v6, %v3837_v4  ;;  %v3838_v5 = vmul.f32 %v6028_v28, %v3126_v60  ;;  %v5015_v55 = vpop.f32.mrb[72].mxu0  ;;  %v2433_v16 = vmax.f32 %v2273_v12, 0.0  ;;  %v6370_v25 = vpop.permute.xlu1 %3551 }
 0x2be   : > { %v2503_v62 = vpack.c.bf16 %v2435_v20, %v2434_v45  ;;  %v2642_v52 = vpop.f32.mrb[73].mxu0  ;;  %v2651_v14 = vadd.f32 %v5015_v55, %v6319_v61 }
 0x2bf   : > { %v3967_v51 = vmax.f32 %v3966_v49, %v3838_v5  ;;  %v2643_v43 = vadd.f32 %v6319_v61, %v2642_v52  ;;  %v4983_v19 = vpop.f32.mrb[184].mxu1  ;;  %v5016_v22 = vpop.f32.mrb[74].mxu0  ;;  %v2502_v32 = vpack.c.bf16 %v2433_v16, %v2432_v29 }
 0x2c0   : > { %v2294_v48 = vadd.f32 %v6335_v47, %v4983_v19  ;;  %v2654_v28 = vadd.f32 %v5016_v22, %v6319_v61  ;;  %v2285_v23 = vpop.f32.mrb[185].mxu1  ;;  %v2645_v4 = vpop.f32.mrb[75].mxu0  ;;  %v3131_v5 = vmax.f32 %v2651_v14, 0.0 }
 0x2c1   : > { %v3968_v6 = vmax.f32 %v3967_v51, %v3839_v27  ;;  %v3129_v60 = vmax.f32 %v2643_v43, 0.0  ;;  %v2646_v1 = vadd.f32 %v6319_v61, %v2645_v4  ;;  %v4984_v3 = vpop.f32.mrb[186].mxu1  ;;  %v2286_v45 = vadd.f32 %v6335_v47, %v2285_v23  ;;  %5121 = vmatprep.mubr.bf16.mxu0 %v2502_v32  ;;  %v6374_v19 = vpop.permute.xlu0 %3566 }
 0x2c2   : > { %v2297_v20 = vadd.f32 %v6335_v47, %v4984_v3  ;;  %v2288_v12 = vpop.f32.mrb[187].mxu1  ;;  %5122 = vmatmul.mubr.bf16.gmra.mrb[180].mxu0 %v2503_v62  ;;  %v2438_v29 = vmax.f32 %v2294_v48, 0.0  ;;  %v3132_v16 = vmax.f32 %v2654_v28, 0.0  ;;  %v3843_v62 = vmul.f32 %v6048_v15, %v3131_v5 }
 0x2c3   : > { %v3969_v49 = vmax.f32 %v3968_v6, %v3840_v54  ;;  %v3130_v55 = vmax.f32 %v2646_v1, 0.0  ;;  %v2289_v58 = vadd.f32 %v6335_v47, %v2288_v12  ;;  %v3841_v27 = vmul.f32 %v6039_v13, %v3129_v60 }
 0x2c4   : > { %v2439_v52 = vmax.f32 %v2297_v20, 0.0  ;;  %v2436_v22 = vmax.f32 %v2286_v45, 0.0  ;;  %v3844_v6 = vmul.f32 %v6060_v11, %v3132_v16 }
 0x2c5   : > { %v3842_v51 = vmul.f32 %v6050_v39, %v3130_v55  ;;  %v5019_v43 = vpop.f32.mrb[76].mxu0  ;;  %v2437_v23 = vmax.f32 %v2289_v58, 0.0  ;;  %v6385_v58 = vpop.permute.xlu0 %3574 }
 0x2c6   : > { %v2505_v32 = vpack.c.bf16 %v2439_v52, %v2438_v29  ;;  %v2658_v14 = vpop.f32.mrb[77].mxu0  ;;  %v2667_v13 = vadd.f32 %v5019_v43, %v6319_v61  ;;  %v3970_v52 = vrot.slane %v3969_v49, 4 }
 0x2c7   : > { %v3976_v48 = vmax.f32 %v3841_v27, %v3842_v51  ;;  %v2659_v28 = vadd.f32 %v6319_v61, %v2658_v14  ;;  %v4987_v4 = vpop.f32.mrb[188].mxu1  ;;  %v5020_v54 = vpop.f32.mrb[78].mxu0  ;;  %v2504_v1 = vpack.c.bf16 %v2437_v23, %v2436_v22 }
 0x2c8   : > { %v2301_v39 = vpop.f32.mrb[189].mxu1  ;;  %v2661_v60 = vpop.f32.mrb[79].mxu0  ;;  %v2310_v45 = vadd.f32 %v6335_v47, %v4987_v4  ;;  %v2670_v12 = vadd.f32 %v5020_v54, %v6319_v61  ;;  %v3135_v27 = vmax.f32 %v2667_v13, 0.0 }
 0x2c9   : > { %v3977_v3 = vmax.f32 %v3976_v48, %v3843_v62  ;;  %v3133_v20 = vmax.f32 %v2659_v28, 0.0  ;;  %v4988_v55 = vpop.f32.mrb[190].mxu1  ;;  %v2302_v15 = vadd.f32 %v6335_v47, %v2301_v39  ;;  %v2662_v5 = vadd.f32 %v6319_v61, %v2661_v60  ;;  %5125 = vmatprep.mubr.bf16.mxu0 %v2504_v1  ;;  %v6389_v23 = vpop.permute.xlu1 %3562 }
 0x2ca   : > { %v2304_v29 = vpop.f32.mrb[191].mxu1  ;;  %5126 = vmatmul.mubr.bf16.gmra.mrb[184].mxu0 %v2505_v32  ;;  %v2313_v43 = vadd.f32 %v6335_v47, %v4988_v55  ;;  %v2442_v62 = vmax.f32 %v2310_v45, 0.0  ;;  %v3136_v48 = vmax.f32 %v2670_v12, 0.0  ;;  %v3971_v1 = vmax.f32 %v3969_v49, %v3970_v52 }
 0x2cb   : > { %v3845_v11 = vmul.f32 %v6057_v37, %v3133_v20  ;;  %v3978_v16 = vmax.f32 %v3977_v3, %v3844_v6  ;;  %v3134_v51 = vmax.f32 %v2662_v5, 0.0  ;;  %v2305_v22 = vadd.f32 %v6335_v47, %v2304_v29  ;;  %v6397_v5 = vpop.permute.xlu0 %3582 }
 0x2cc   : > { %v2440_v4 = vmax.f32 %v2302_v15, 0.0  ;;  %v2443_v37 = vmax.f32 %v2313_v43, 0.0  ;;  %v3847_v47 = vmul.f32 %v6064_v59, %v3135_v27  ;;  %v3848_v49 = vmul.f32 %v6076_v63, %v3136_v48 }
 0x2cd   : > { %v3979_v14 = vmax.f32 %v3978_v16, %v3845_v11  ;;  %v5023_v28 = vpop.f32.mrb[80].mxu0  ;;  %v3846_v54 = vmul.f32 %v6067_v41, %v3134_v51  ;;  %v2441_v6 = vmax.f32 %v2305_v22, 0.0  ;;  %v6400_v52 = vpop.permute.xlu1 %3570  ;;  %v3972_v59 = vrot.slane %v3971_v1, 2 }
 0x2ce   : > { %v2674_v32 = vpop.f32.mrb[81].mxu0  ;;  %v2683_v13 = vadd.f32 %v5023_v28, %v6319_v61  ;;  %v2507_v20 = vpack.c.bf16 %v2443_v37, %v2442_v62 }
 0x2cf   : > { %v2675_v39 = vadd.f32 %v6319_v61, %v2674_v32  ;;  %v5024_v60 = vpop.f32.mrb[82].mxu0  ;;  %v3980_v3 = vmax.f32 %v3979_v14, %v3846_v54  ;;  %v2506_v55 = vpack.c.bf16 %v2441_v6, %v2440_v4  ;;  %v6407_v6 = vpop.permute.xlu0 %3593  ;;  %v3973_v32 = vmax.f32 %v3971_v1, %v3972_v59 }
 0x2d0   : > { %v2677_v45 = vpop.f32.mrb[83].mxu0  ;;  %v2686_v15 = vadd.f32 %v5024_v60, %v6319_v61  ;;  %v3139_v11 = vmax.f32 %v2683_v13, 0.0 }
 0x2d1   : > { %v3137_v12 = vmax.f32 %v2675_v39, 0.0  ;;  %v2678_v41 = vadd.f32 %v6319_v61, %v2677_v45  ;;  %v3981_v29 = vmax.f32 %v3980_v3, %v3847_v47  ;;  %5129 = vmatprep.mubr.bf16.mxu0 %v2506_v55  ;;  %v6410_v60 = vpop.permute.xlu1 %3578 }
 0x2d2   : > { %5130 = vmatmul.mubr.bf16.gmra.mrb[188].mxu0 %v2507_v20  ;;  %v3140_v51 = vmax.f32 %v2686_v15, 0.0  ;;  %v3851_v4 = vmul.f32 %v6082_v44, %v3139_v11 }
 0x2d3   : > { %v3138_v16 = vmax.f32 %v2678_v41, 0.0  ;;  %v3982_v27 = vmax.f32 %v3981_v29, %v3848_v49  ;;  %v3849_v43 = vmul.f32 %v6073_v8, %v3137_v12  ;;  %v3974_v41 = vrot.slane %v3973_v32, 1 }
 0x2d4   : > { %v3852_v39 = vmul.f32 %v6094_v34, %v3140_v51 }
 0x2d5   : > { %v3850_v22 = vmul.f32 %v6084_v46, %v3138_v16  ;;  %v5027_v14 = vpop.f32.mrb[84].mxu0  ;;  %v3983_v62 = vrot.slane %v3982_v27, 4  ;;  %v6416_v16 = vpop.permute.xlu0 %3601 }
 0x2d6   : > { %v2690_v28 = vpop.f32.mrb[85].mxu0  ;;  %v2699_v48 = vadd.f32 %v5027_v14, %v6319_v61  ;;  %v6418_v51 = vpop.permute.xlu1 %3586 }
 0x2d7   : > { %v3989_v63 = vmax.f32 %v3849_v43, %v3850_v22  ;;  %v2691_v54 = vadd.f32 %v6319_v61, %v2690_v28  ;;  %v5028_v37 = vpop.f32.mrb[86].mxu0  ;;  %v3984_v13 = vmax.f32 %v3982_v27, %v3983_v62  ;;  %v3975_v28 = vmax.f32 %v3973_v32, %v3974_v41 }
 0x2d8   : > { %v2693_v8 = vpop.f32.mrb[87].mxu0  ;;  %v2702_v3 = vadd.f32 %v5028_v37, %v6319_v61  ;;  %v3143_v55 = vmax.f32 %v2699_v48, 0.0 }
 0x2d9   : > { %v3990_v46 = vmax.f32 %v3989_v63, %v3851_v4  ;;  %v3141_v47 = vmax.f32 %v2691_v54, 0.0  ;;  %v2694_v44 = vadd.f32 %v6319_v61, %v2693_v8  ;;  %v3985_v20 = vrot.slane %v3984_v13, 2 }
 0x2da   : > { %v3144_v29 = vmax.f32 %v2702_v3, 0.0  ;;  %v3855_v43 = vmul.f32 %v6098_v21, %v3143_v55 }
 0x2db   : > { %v3853_v45 = vmul.f32 %v6091_v42, %v3141_v47  ;;  %v3991_v12 = vmax.f32 %v3990_v46, %v3852_v39  ;;  %v3142_v15 = vmax.f32 %v2694_v44, 0.0  ;;  %v3986_v1 = vmax.f32 %v3984_v13, %v3985_v20  ;;  %v6427_v47 = vpop.permute.xlu0 %3609  ;;  %v6429_v44 = vpop.permute.xlu1 %3597 }
 0x2dc   : > { %v3856_v48 = vmul.f32 %v6110_v18, %v3144_v29 }
 0x2dd   : > { %v3992_v49 = vmax.f32 %v3991_v12, %v3853_v45  ;;  %v3854_v34 = vmul.f32 %v6101_v40, %v3142_v15  ;;  %v5031_v11 = vpop.f32.mrb[88].mxu0  ;;  %v3987_v59 = vrot.slane %v3986_v1, 1 }
 0x2de   : > { %v2706_v27 = vpop.f32.mrb[89].mxu0  ;;  %v2715_v42 = vadd.f32 %v5031_v11, %v6319_v61 }
 0x2df   : > { %v3993_v22 = vmax.f32 %v3992_v49, %v3854_v34  ;;  %v2707_v14 = vadd.f32 %v6319_v61, %v2706_v27  ;;  %v5032_v62 = vpop.f32.mrb[90].mxu0  ;;  %v3988_v4 = vmax.f32 %v3986_v1, %v3987_v59 }
 0x2e0   : > { %v2718_v40 = vadd.f32 %v5032_v62, %v6319_v61  ;;  %v2709_v63 = vpop.f32.mrb[91].mxu0  ;;  %v3147_v8 = vmax.f32 %v2715_v42, 0.0 }
 0x2e1   : > { %v3994_v54 = vmax.f32 %v3993_v22, %v3855_v43  ;;  %v3145_v37 = vmax.f32 %v2707_v14, 0.0  ;;  %v2710_v13 = vadd.f32 %v6319_v61, %v2709_v63  ;;  %v4188_v39 = vsel %vm4187_vm4, %v3988_v4, %v3975_v28  ;;  %v6439_v22 = vpop.permute.xlu0 %3617  ;;  %v6441_v14 = vpop.permute.xlu1 %3605 }
 0x2e2   : > { %v3148_v3 = vmax.f32 %v2718_v40, 0.0  ;;  %v3859_v41 = vmul.f32 %v6116_v9, %v3147_v8 }
 0x2e3   : > { %v3995_v21 = vmax.f32 %v3994_v54, %v3856_v48  ;;  %v3146_v46 = vmax.f32 %v2710_v13, 0.0  ;;  %v3857_v20 = vmul.f32 %v6107_v31, %v3145_v37 }
 0x2e4   : > { %v3860_v34 = vmul.f32 %v6133_v33, %v3148_v3 }
 0x2e5   : > { %v3996_v32 = vrot.slane %v3995_v21, 4  ;;  %v3858_v55 = vmul.f32 %v6118_v2, %v3146_v46  ;;  %v5035_v18 = vpop.f32.mrb[92].mxu0 }
 0x2e6   : > { %v2731_v45 = vadd.f32 %v5035_v18, %v6319_v61  ;;  %v2722_v12 = vpop.f32.mrb[93].mxu0 }
 0x2e7   : > { %v3997_v15 = vmax.f32 %v3995_v21, %v3996_v32  ;;  %v4002_v1 = vmax.f32 %v3857_v20, %v3858_v55  ;;  %v2723_v49 = vadd.f32 %v6319_v61, %v2722_v12  ;;  %v5036_v29 = vpop.f32.mrb[94].mxu0 }
 0x2e8   : > { %v2734_v11 = vadd.f32 %v5036_v29, %v6319_v61  ;;  %v2725_v59 = vpop.f32.mrb[95].mxu0  ;;  %v3151_v42 = vmax.f32 %v2731_v45, 0.0 }
 0x2e9   : > { %v3998_v27 = vrot.slane %v3997_v15, 2  ;;  %v4003_v31 = vmax.f32 %v4002_v1, %v3859_v41  ;;  %v3149_v43 = vmax.f32 %v2723_v49, 0.0  ;;  %v2726_v2 = vadd.f32 %v6319_v61, %v2725_v59 }
 0x2ea   : > { %v3152_v40 = vmax.f32 %v2734_v11, 0.0  ;;  %v3863_v37 = vmul.f32 %v6216_v36, %v3151_v42 }
 0x2eb   : > { %v3999_v9 = vmax.f32 %v3997_v15, %v3998_v27  ;;  %v3861_v62 = vmul.f32 %v6130_v56, %v3149_v43  ;;  %v4004_v28 = vmax.f32 %v4003_v31, %v3860_v34  ;;  %v3150_v4 = vmax.f32 %v2726_v2, 0.0  ;;  %v6448_v56 = vpop.permute.xlu0 %3632 }
 0x2ec   : > { %v3864_v20 = vmul.f32 %v6224_v38, %v3152_v40 }
 0x2ed   : > { %v4000_v33 = vrot.slane %v3999_v9, 1  ;;  %v4005_v63 = vmax.f32 %v4004_v28, %v3861_v62  ;;  %v3862_v48 = vmul.f32 %v6141_v35, %v3150_v4  ;;  %v5039_v54 = vpop.f32.mrb[96].mxu0  ;;  %v6452_v35 = vpop.permute.xlu1 %3613 }
 0x2ee   : > { %v2738_v13 = vpop.f32.mrb[97].mxu0  ;;  %v2747_v46 = vadd.f32 %v5039_v54, %v6319_v61 }
 0x2ef   : > { %v4001_v21 = vmax.f32 %v3999_v9, %v4000_v33  ;;  %v4006_v8 = vmax.f32 %v4005_v63, %v3862_v48  ;;  %v2739_v3 = vadd.f32 %v6319_v61, %v2738_v13  ;;  %v5040_v32 = vpop.f32.mrb[98].mxu0  ;;  %v6458_v27 = vpop.permute.xlu0 %3667 }
 0x2f0   : > { %v2750_v55 = vadd.f32 %v5040_v32, %v6319_v61  ;;  %v2741_v18 = vpop.f32.mrb[99].mxu0  ;;  %v3155_v1 = vmax.f32 %v2747_v46, 0.0 }
 0x2f1   : > { %v4190_v45 = vsel %vm4189_vm5, %v4001_v21, %v4188_v39  ;;  %v4007_v36 = vmax.f32 %v4006_v8, %v3863_v37  ;;  %v3153_v12 = vmax.f32 %v2739_v3, 0.0  ;;  %v2742_v15 = vadd.f32 %v6319_v61, %v2741_v18  ;;  %v6461_v39 = vpop.permute.xlu1 %3628 }
 0x2f2   : > { %v3156_v29 = vmax.f32 %v2750_v55, 0.0  ;;  %v3867_v42 = vmul.f32 %v6226_v17, %v3155_v1 }
 0x2f3   : > { %v4008_v41 = vmax.f32 %v4007_v36, %v3864_v20  ;;  %v3154_v49 = vmax.f32 %v2742_v15, 0.0  ;;  %v3865_v11 = vmul.f32 %v6220_v10, %v3153_v12  ;;  %v6469_v8 = vpop.permute.xlu0 %3698 }
 0x2f4   : > { %v3868_v4 = vmul.f32 %v6239_v7, %v3156_v29 }
 0x2f5   : > { %v4009_v34 = vrot.slane %v4008_v41, 4  ;;  %v3866_v38 = vmul.f32 %v6232_v0, %v3154_v49  ;;  %v5043_v59 = vpop.f32.mrb[100].mxu0  ;;  %v6471_v3 = vpop.permute.xlu1 %3663  ;;  %v6830_v49 = vld [vmem:[#allocation7_spill] sm:$0xff] }
 0x2f6   : > { %v2763_v31 = vadd.f32 %v5043_v59, %v6319_v61  ;;  %v2754_v43 = vpop.f32.mrb[101].mxu0 }
 0x2f7   : > { %v4010_v2 = vmax.f32 %v4008_v41, %v4009_v34  ;;  %v4015_v9 = vmax.f32 %v3865_v11, %v3866_v38  ;;  %v2755_v62 = vadd.f32 %v6319_v61, %v2754_v43  ;;  %v5044_v28 = vpop.f32.mrb[102].mxu0 }
 0x2f8   : > { %v2766_v10 = vadd.f32 %v5044_v28, %v6319_v61  ;;  %v2757_v0 = vpop.f32.mrb[103].mxu0  ;;  %v3159_v54 = vmax.f32 %v2763_v31, 0.0 }
 0x2f9   : > { %v4011_v40 = vrot.slane %v4010_v2, 2  ;;  %v4016_v33 = vmax.f32 %v4015_v9, %v3867_v42  ;;  %v3157_v63 = vmax.f32 %v2755_v62, 0.0  ;;  %v2758_v48 = vadd.f32 %v6319_v61, %v2757_v0  ;;  %v6483_v43 = vpop.permute.xlu1 %3636  ;;  %v6832_v0 = vld [vmem:[#allocation9_spill] sm:$0xff] }
 0x2fa   : > { %v3160_v46 = vmax.f32 %v2766_v10, 0.0  ;;  %v3871_v18 = vmul.f32 %v6242_v26, %v3159_v54  ;;  %v6481_v26 = vpop.permute.xlu0 %3671  ;;  %v6833_v54 = vld [vmem:[#allocation8_spill] sm:$0xff] }
 0x2fb   : > { %v4012_v37 = vmax.f32 %v4010_v2, %v4011_v40  ;;  %v3869_v13 = vmul.f32 %v6234_v50, %v3157_v63  ;;  %v4017_v21 = vmax.f32 %v4016_v33, %v3868_v4  ;;  %v3158_v17 = vmax.f32 %v2758_v48, 0.0  ;;  %v6831_v4 = vld [vmem:[#allocation6_spill] sm:$0xff] }
 0x2fc   : > { %v3872_v29 = vmul.f32 %v6830_v49, %v3160_v46  ;;  %v6835_v49 = vld [vmem:[#allocation10_spill] sm:$0xff] }
 0x2fd   : > { %v4013_v7 = vrot.slane %v4012_v37, 1  ;;  %v4018_v32 = vmax.f32 %v4017_v21, %v3869_v13  ;;  %v3870_v20 = vmul.f32 %v6245_v30, %v3158_v17  ;;  %v5047_v55 = vpop.f32.mrb[104].mxu0 }
 0x2fe   : > { %v2770_v36 = vpop.f32.mrb[105].mxu0  ;;  %v2779_v50 = vadd.f32 %v5047_v55, %v6319_v61  ;;  %v6490_v46 = vpop.permute.xlu0 %3737 }
 0x2ff   : > { %v4014_v12 = vmax.f32 %v4012_v37, %v4013_v7  ;;  %v4019_v15 = vmax.f32 %v4018_v32, %v3870_v20  ;;  %v2771_v41 = vadd.f32 %v6319_v61, %v2770_v36  ;;  %v5048_v1 = vpop.f32.mrb[106].mxu0  ;;  %v6834_v7 = vld [vmem:[#allocation11_spill] sm:$0xff] }
 0x300   : > { %v2782_v34 = vadd.f32 %v5048_v1, %v6319_v61  ;;  %v2773_v11 = vpop.f32.mrb[107].mxu0  ;;  %v3163_v42 = vmax.f32 %v2779_v50, 0.0 }
 0x301   : > { %v4192_v38 = vsel %vm4191_vm6, %v4014_v12, %v4190_v45  ;;  %v4020_v30 = vmax.f32 %v4019_v15, %v3871_v18  ;;  %v3161_v59 = vmax.f32 %v2771_v41, 0.0  ;;  %v2774_v31 = vadd.f32 %v6319_v61, %v2773_v11  ;;  %v6494_v18 = vpop.permute.xlu1 %3702 }
 0x302   : > { %v3164_v62 = vmax.f32 %v2782_v34, 0.0  ;;  %v3875_v37 = vmul.f32 %v6833_v54, %v3163_v42  ;;  %v6838_v54 = vld [vmem:[#allocation15_spill] sm:$0xff] }
 0x303   : > { %v4021_v2 = vmax.f32 %v4020_v30, %v3872_v29  ;;  %v3162_v9 = vmax.f32 %v2774_v31, 0.0  ;;  %v3873_v10 = vmul.f32 %v6831_v4, %v3161_v59 }
 0x304   : > { %v3876_v32 = vmul.f32 %v6834_v7, %v3164_v62  ;;  %v6499_v62 = vpop.permute.xlu0 %3706 }
 0x305   : > { %v4022_v28 = vrot.slane %v4021_v2, 4  ;;  %v3874_v40 = vmul.f32 %v6832_v0, %v3162_v9  ;;  %v5051_v33 = vpop.f32.mrb[108].mxu0  ;;  %v6502_v0 = vpop.permute.xlu1 %3733 }
 0x306   : > { %v2795_v45 = vadd.f32 %v5051_v33, %v6319_v61  ;;  %v2786_v63 = vpop.f32.mrb[109].mxu0 }
 0x307   : > { %v4023_v48 = vmax.f32 %v4021_v2, %v4022_v28  ;;  %v4028_v13 = vmax.f32 %v3873_v10, %v3874_v40  ;;  %v2787_v21 = vadd.f32 %v6319_v61, %v2786_v63  ;;  %v5052_v17 = vpop.f32.mrb[110].mxu0  ;;  %v6836_v2 = vld [vmem:[#allocation13_spill] sm:$0xff]  ;;  %v6837_v28 = vld [vmem:[#allocation12_spill] sm:$0xff] }
 0x308   : > { %v2798_v20 = vadd.f32 %v5052_v17, %v6319_v61  ;;  %v2789_v55 = vpop.f32.mrb[111].mxu0  ;;  %v3167_v41 = vmax.f32 %v2795_v45, 0.0 }
 0x309   : > { %v4024_v36 = vrot.slane %v4023_v48, 2  ;;  %v4029_v12 = vmax.f32 %v4028_v13, %v3875_v37  ;;  %v3165_v15 = vmax.f32 %v2787_v21, 0.0  ;;  %v2790_v50 = vadd.f32 %v6319_v61, %v2789_v55 }
 0x30a   : > { %v3168_v30 = vmax.f32 %v2798_v20, 0.0  ;;  %v3879_v4 = vmul.f32 %v6837_v28, %v3167_v41  ;;  %v6512_v41 = vpop.permute.xlu1 %3640 }
 0x30b   : > { %v4025_v1 = vmax.f32 %v4023_v48, %v4024_v36  ;;  %v3877_v29 = vmul.f32 %v6835_v49, %v3165_v15  ;;  %v4030_v34 = vmax.f32 %v4029_v12, %v3876_v32  ;;  %v3166_v11 = vmax.f32 %v2790_v50, 0.0  ;;  %v6510_v15 = vpop.permute.xlu0 %3772  ;;  %v6839_v49 = vld [vmem:[#allocation14_spill] sm:$0xff] }
 0x30c   : > { %v3880_v37 = vmul.f32 %v6838_v54, %v3168_v30 }
 0x30d   : > { %v4026_v59 = vrot.slane %v4025_v1, 1  ;;  %v4031_v31 = vmax.f32 %v4030_v34, %v3877_v29  ;;  %v3878_v42 = vmul.f32 %v6836_v2, %v3166_v11  ;;  %v5055_v9 = vpop.f32.mrb[112].mxu0  ;;  %v6840_v34 = vld [vmem:[#allocation17_spill] sm:$0xff]  ;;  %v6841_v2 = vld [vmem:[#allocation16_spill] sm:$0xff] }
 0x30e   : > { %v2802_v10 = vpop.f32.mrb[113].mxu0  ;;  %v2811_v45 = vadd.f32 %v5055_v9, %v6319_v61 }
 0x30f   : > { %v4027_v40 = vmax.f32 %v4025_v1, %v4026_v59  ;;  %v4032_v33 = vmax.f32 %v4031_v31, %v3878_v42  ;;  %v2803_v63 = vadd.f32 %v6319_v61, %v2802_v10  ;;  %v5056_v48 = vpop.f32.mrb[114].mxu0  ;;  %v6842_v10 = vld [vmem:[#allocation19_spill] sm:$0xff] }
 0x310   : > { %v2814_v13 = vadd.f32 %v5056_v48, %v6319_v61  ;;  %v2805_v21 = vpop.f32.mrb[115].mxu0  ;;  %v3171_v36 = vmax.f32 %v2811_v45, 0.0 }
 0x311   : > { %v4194_v17 = vsel %vm4193_vm7, %v4027_v40, %v4192_v38  ;;  %v4033_v7 = vmax.f32 %v4032_v33, %v3879_v4  ;;  %v3169_v32 = vmax.f32 %v2803_v63, 0.0  ;;  %v2806_v20 = vadd.f32 %v6319_v61, %v2805_v21 }
 0x312   : > { %v3172_v50 = vmax.f32 %v2814_v13, 0.0  ;;  %v3883_v42 = vmul.f32 %v6841_v2, %v3171_v36  ;;  %v6522_v13 = vpop.permute.xlu0 %3741 }
 0x313   : > { %v4034_v55 = vmax.f32 %v4033_v7, %v3880_v37  ;;  %v3170_v12 = vmax.f32 %v2806_v20, 0.0  ;;  %v3881_v29 = vmul.f32 %v6839_v49, %v3169_v32  ;;  %v6524_v7 = vpop.permute.xlu1 %3768  ;;  %v6843_v20 = vld [vmem:[#allocation18_spill] sm:$0xff] }
 0x314   : > { %v3884_v40 = vmul.f32 %v6842_v10, %v3172_v50  ;;  %v6846_v10 = vld [vmem:[#allocation23_spill] sm:$0xff] }
 0x315   : > { %v4035_v1 = vrot.slane %v4034_v55, 4  ;;  %v3882_v11 = vmul.f32 %v6840_v34, %v3170_v12  ;;  %v5059_v30 = vpop.f32.mrb[116].mxu0 }
 0x316   : > { %v2827_v38 = vadd.f32 %v5059_v30, %v6319_v61  ;;  %v2818_v59 = vpop.f32.mrb[117].mxu0  ;;  %v6845_v30 = vld [vmem:[#allocation20_spill] sm:$0xff] }
 0x317   : > { %v4036_v31 = vmax.f32 %v4034_v55, %v4035_v1  ;;  %v4041_v9 = vmax.f32 %v3881_v29, %v3882_v11  ;;  %v2819_v28 = vadd.f32 %v6319_v61, %v2818_v59  ;;  %v5060_v4 = vpop.f32.mrb[118].mxu0  ;;  %v6844_v29 = vld [vmem:[#allocation21_spill] sm:$0xff] }
 0x318   : > { %v2830_v33 = vadd.f32 %v5060_v4, %v6319_v61  ;;  %v2821_v45 = vpop.f32.mrb[119].mxu0  ;;  %v3175_v21 = vmax.f32 %v2827_v38, 0.0  ;;  %v6531_v4 = vpop.permute.xlu0 %3807 }
 0x319   : > { %v4037_v63 = vrot.slane %v4036_v31, 2  ;;  %v4042_v48 = vmax.f32 %v4041_v9, %v3883_v42  ;;  %v3173_v54 = vmax.f32 %v2819_v28, 0.0  ;;  %v2822_v37 = vadd.f32 %v6319_v61, %v2821_v45 }
 0x31a   : > { %v3176_v1 = vmax.f32 %v2830_v33, 0.0  ;;  %v3887_v59 = vmul.f32 %v6845_v30, %v3175_v21 }
 0x31b   : > { %v4038_v32 = vmax.f32 %v4036_v31, %v4037_v63  ;;  %v3885_v55 = vmul.f32 %v6843_v20, %v3173_v54  ;;  %v4043_v36 = vmax.f32 %v4042_v48, %v3884_v40  ;;  %v3174_v12 = vmax.f32 %v2822_v37, 0.0  ;;  %v6535_v63 = vpop.permute.xlu1 %3675 }
 0x31c   : > { %v3888_v40 = vmul.f32 %v6846_v10, %v3176_v1  ;;  %v6850_v10 = vld [vmem:[#allocation27_spill] sm:$0xff] }
 0x31d   : > { %v4039_v50 = vrot.slane %v4038_v32, 1  ;;  %v4044_v49 = vmax.f32 %v4043_v36, %v3885_v55  ;;  %v3886_v34 = vmul.f32 %v6844_v29, %v3174_v12  ;;  %v5063_v11 = vpop.f32.mrb[120].mxu0  ;;  %v6848_v29 = vld [vmem:[#allocation25_spill] sm:$0xff] }
 0x31e   : > { %v2834_v2 = vpop.f32.mrb[121].mxu0  ;;  %v2843_v38 = vadd.f32 %v5063_v11, %v6319_v61  ;;  %v6541_v11 = vpop.permute.xlu0 %3710 }
 0x31f   : > { %v4040_v42 = vmax.f32 %v4038_v32, %v4039_v50  ;;  %v4045_v9 = vmax.f32 %v4044_v49, %v3886_v34  ;;  %v2835_v31 = vadd.f32 %v6319_v61, %v2834_v2  ;;  %v5064_v28 = vpop.f32.mrb[122].mxu0  ;;  %v6847_v50 = vld [vmem:[#allocation22_spill] sm:$0xff] }
 0x320   : > { %v2846_v33 = vadd.f32 %v5064_v28, %v6319_v61  ;;  %v2837_v45 = vpop.f32.mrb[123].mxu0  ;;  %v3179_v20 = vmax.f32 %v2843_v38, 0.0 }
 0x321   : > { %v4196_v48 = vsel %vm4195_vm8, %v4040_v42, %v4194_v17  ;;  %v4046_v54 = vmax.f32 %v4045_v9, %v3887_v59  ;;  %v3177_v37 = vmax.f32 %v2835_v31, 0.0  ;;  %v2838_v21 = vadd.f32 %v6319_v61, %v2837_v45  ;;  %v6544_v17 = vpop.permute.xlu1 %3803  ;;  %v6849_v42 = vld [vmem:[#allocation24_spill] sm:$0xff] }
 0x322   : > { %v3180_v36 = vmax.f32 %v2846_v33, 0.0  ;;  %v3891_v9 = vmul.f32 %v6849_v42, %v3179_v20 }
 0x323   : > { %v4047_v32 = vmax.f32 %v4046_v54, %v3888_v40  ;;  %v3178_v55 = vmax.f32 %v2838_v21, 0.0  ;;  %v3889_v49 = vmul.f32 %v6847_v50, %v3177_v37 }
 0x324   : > { %v3892_v40 = vmul.f32 %v6850_v10, %v3180_v36 }
 0x325   : > { %v4048_v12 = vrot.slane %v4047_v32, 4  ;;  %v3890_v1 = vmul.f32 %v6848_v29, %v3178_v55  ;;  %v5067_v34 = vpop.f32.mrb[124].mxu0 }
 0x326   : > { %v2859_v30 = vadd.f32 %v5067_v34, %v6319_v61  ;;  %v2850_v2 = vpop.f32.mrb[125].mxu0  ;;  %v6851_v34 = vld [vmem:[#allocation26_spill] sm:$0xff] }
 0x327   : > { %v4049_v59 = vmax.f32 %v4047_v32, %v4048_v12  ;;  %v4054_v31 = vmax.f32 %v3889_v49, %v3890_v1  ;;  %v2851_v38 = vadd.f32 %v6319_v61, %v2850_v2  ;;  %v5068_v28 = vpop.f32.mrb[126].mxu0  ;;  %v6552_v49 = vpop.permute.xlu0 %3679 }
 0x328   : > { %v2862_v33 = vadd.f32 %v5068_v28, %v6319_v61  ;;  %v2853_v45 = vpop.f32.mrb[127].mxu0  ;;  %v3183_v50 = vmax.f32 %v2859_v30, 0.0  ;;  %v6554_v2 = vpop.permute.xlu1 %3644 }
 0x329   : > { %v4050_v54 = vrot.slane %v4049_v59, 2  ;;  %v4055_v37 = vmax.f32 %v4054_v31, %v3891_v9  ;;  %v3181_v21 = vmax.f32 %v2851_v38, 0.0  ;;  %v2854_v55 = vadd.f32 %v6319_v61, %v2853_v45 }
 0x32a   : > { %v3184_v1 = vmax.f32 %v2862_v33, 0.0  ;;  %v3895_v9 = vmul.f32 %v6342_v24, %v3183_v50 }
 0x32b   : > { %v4051_v29 = vmax.f32 %v4049_v59, %v4050_v54  ;;  %v3893_v32 = vmul.f32 %v6851_v34, %v3181_v21  ;;  %v4056_v12 = vmax.f32 %v4055_v37, %v3892_v40  ;;  %v3182_v20 = vmax.f32 %v2854_v55, 0.0  ;;  %v6564_v24 = vpop.permute.xlu0 %3811 }
 0x32c   : > { %v3896_v33 = vmul.f32 %v6370_v25, %v3184_v1  ;;  %v6566_v50 = vpop.permute.xlu1 %3776 }
 0x32d   : > { %v4052_v36 = vrot.slane %v4051_v29, 1  ;;  %v4057_v42 = vmax.f32 %v4056_v12, %v3893_v32  ;;  %v3894_v28 = vmul.f32 %v6355_v53, %v3182_v20  ;;  %v5071_v10 = vpop.f32.mrb[128].mxu0 }
 0x32e   : > { %v2866_v31 = vpop.f32.mrb[129].mxu0  ;;  %v2875_v38 = vadd.f32 %v5071_v10, %v6319_v61 }
 0x32f   : > { %v4053_v30 = vmax.f32 %v4051_v29, %v4052_v36  ;;  %v4058_v59 = vmax.f32 %v4057_v42, %v3894_v28  ;;  %v2867_v40 = vadd.f32 %v6319_v61, %v2866_v31  ;;  %v5072_v45 = vpop.f32.mrb[130].mxu0 }
 0x330   : > { %v2878_v54 = vadd.f32 %v5072_v45, %v6319_v61  ;;  %v2869_v37 = vpop.f32.mrb[131].mxu0  ;;  %v3187_v32 = vmax.f32 %v2875_v38, 0.0 }
 0x331   : > { %v4198_v21 = vsel %vm4197_vm9, %v4053_v30, %v4196_v48  ;;  %v4059_v53 = vmax.f32 %v4058_v59, %v3895_v9  ;;  %v3185_v55 = vmax.f32 %v2867_v40, 0.0  ;;  %v2870_v34 = vadd.f32 %v6319_v61, %v2869_v37  ;;  %v6573_v40 = vpop.permute.xlu0 %3714 }
 0x332   : > { %v3188_v20 = vmax.f32 %v2878_v54, 0.0  ;;  %v3899_v9 = vmul.f32 %v6374_v19, %v3187_v32  ;;  %v6582_v19 = vld [vmem:[%s6804_s5 + $0x2] ss:$0 sm:$0xff] }
 0x333   : > { %v4060_v29 = vmax.f32 %v4059_v53, %v3896_v33  ;;  %v3186_v12 = vmax.f32 %v2870_v34, 0.0  ;;  %v3897_v25 = vmul.f32 %v6358_v57, %v3185_v55  ;;  %v6577_v33 = vpop.permute.xlu1 %3745 }
 0x334   : > { %v3900_v38 = vmul.f32 %v6400_v52, %v3188_v20 }
 0x335   : > { %v4061_v36 = vrot.slane %v4060_v29, 4  ;;  %v3898_v1 = vmul.f32 %v6389_v23, %v3186_v12  ;;  %v5075_v42 = vpop.f32.mrb[132].mxu0 }
 0x336   : > { %v2891_v48 = vadd.f32 %v5075_v42, %v6319_v61  ;;  %v2882_v28 = vpop.f32.mrb[133].mxu0 }
 0x337   : > { %v4062_v10 = vmax.f32 %v4060_v29, %v4061_v36  ;;  %v4067_v31 = vmax.f32 %v3897_v25, %v3898_v1  ;;  %v2883_v30 = vadd.f32 %v6319_v61, %v2882_v28  ;;  %v5076_v59 = vpop.f32.mrb[134].mxu0  ;;  %v6587_v1 = vpop.permute.xlu0 %3683 }
 0x338   : > { %v2894_v45 = vadd.f32 %v5076_v59, %v6319_v61  ;;  %v2885_v57 = vpop.f32.mrb[135].mxu0  ;;  %v3191_v55 = vmax.f32 %v2891_v48, 0.0  ;;  %v6590_v48 = vpop.permute.xlu1 %3648 }
 0x339   : > { %v4063_v23 = vrot.slane %v4062_v10, 2  ;;  %v4068_v54 = vmax.f32 %v4067_v31, %v3899_v9  ;;  %v3189_v37 = vmax.f32 %v2883_v30, 0.0  ;;  %v2886_v53 = vadd.f32 %v6582_v19, %v2885_v57 }
 0x33a   : > { %v3192_v61 = vmax.f32 %v2894_v45, 0.0  ;;  %v3903_v42 = vmul.f32 %v6397_v5, %v3191_v55 }
 0x33b   : > { %v4064_v34 = vmax.f32 %v4062_v10, %v4063_v23  ;;  %v3901_v29 = vmul.f32 %v6385_v58, %v3189_v37  ;;  %v4069_v52 = vmax.f32 %v4068_v54, %v3900_v38  ;;  %v3190_v32 = vmax.f32 %v2886_v53, 0.0  ;;  %v6602_v54 = vld [vmem:[%s6804_s5 + $0x3] ss:$0 sm:$0xff] }
 0x33d   : > { %v4065_v12 = vrot.slane %v4064_v34, 1  ;;  %v4070_v20 = vmax.f32 %v4069_v52, %v3901_v29  ;;  %v3902_v36 = vmul.f32 %v6410_v60, %v3190_v32  ;;  %v5079_v25 = vpop.f32.mrb[136].mxu0  ;;  %v3904_v60 = vmul.f32 %v6418_v51, %v3192_v61  ;;  %v6611_v29 = vpop.permute.xlu0 %3815 }
 0x33e   : > { %v2898_v28 = vpop.f32.mrb[137].mxu0  ;;  %v2907_v9 = vadd.f32 %v6582_v19, %v5079_v25  ;;  %v6614_v32 = vpop.permute.xlu1 %3780 }
 0x33f   : > { %v4066_v10 = vmax.f32 %v4064_v34, %v4065_v12  ;;  %v4071_v58 = vmax.f32 %v4070_v20, %v3902_v36  ;;  %v2899_v31 = vadd.f32 %v6582_v19, %v2898_v28  ;;  %v5080_v30 = vpop.f32.mrb[138].mxu0  ;;  %v6609_v34 = vld [vmem:[%s6804_s5 + $0x4] ss:$0 sm:$0xff] }
 0x340   : > { %v2910_v59 = vadd.f32 %v6582_v19, %v5080_v30  ;;  %v2901_v38 = vpop.f32.mrb[139].mxu0  ;;  %v3195_v55 = vmax.f32 %v2907_v9, 0.0 }
 0x341   : > { %v4072_v45 = vmax.f32 %v4071_v58, %v3903_v42  ;;  %v3193_v5 = vmax.f32 %v2899_v31, 0.0  ;;  %v2902_v57 = vadd.f32 %v6582_v19, %v2901_v38  ;;  %v4200_v23 = vsel %vm4199_vm10, %v4066_v10, %v4198_v21 }
 0x342   : > { %v4210_v37 = vmax.f32 %v4200_v23, 0.0  ;;  %v3196_v52 = vmax.f32 %v2910_v59, 0.0  ;;  %v3907_v42 = vmul.f32 %v6416_v16, %v3195_v55  ;;  %v6628_v16 = vpop.permute.xlu0 %3718 }
 0x343   : > { %v4073_v53 = vmax.f32 %v4072_v45, %v3904_v60  ;;  %v3194_v51 = vmax.f32 %v2902_v57, 0.0  ;;  %v3905_v61 = vmul.f32 %v6407_v6, %v3193_v5  ;;  %v6630_v45 = vpop.permute.xlu1 %3749 }
 0x344   : > { %v4225_v21 = vmul.f32 %v6602_v54, %v4210_v37  ;;  %v3908_v31 = vmul.f32 %v6441_v14, %v3196_v52 }
 0x345   : > { %v3906_v12 = vmul.f32 %v6429_v44, %v3194_v51  ;;  %v5083_v20 = vpop.f32.mrb[140].mxu0  ;;  %v4074_v38 = vrot.slane %v4073_v53, 4 }
 0x346   : > { %v2914_v36 = vpop.f32.mrb[141].mxu0  ;;  %v4231_v25 = vadd.f32 %v6609_v34, %v4225_v21  ;;  %v2923_v10 = vadd.f32 %v6582_v19, %v5083_v20 }
 0x347   : > { %v4080_v28 = vmax.f32 %v3905_v61, %v3906_v12  ;;  %v2915_v58 = vadd.f32 %v6582_v19, %v2914_v36  ;;  %v5084_v9 = vpop.f32.mrb[142].mxu0  ;;  %v4075_v21 = vmax.f32 %v4073_v53, %v4074_v38 }
 0x348   : > { %v2917_v30 = vpop.f32.mrb[143].mxu0  ;;  %4233 = vst [vmem:[%s6623_s17] sm:$0xff] %v4231_v25  ;;  %v2926_v60 = vadd.f32 %v6582_v19, %v5084_v9  ;;  %v3199_v5 = vmax.f32 %v2923_v10, 0.0 }
 0x349   : > { %v4081_v6 = vmax.f32 %v4080_v28, %v3907_v42  ;;  %v3197_v44 = vmax.f32 %v2915_v58, 0.0  ;;  %v2918_v59 = vadd.f32 %v6582_v19, %v2917_v30  ;;  %v3622_v28 = vpop.permute.xlu0 %3621  ;;  %v3653_v58 = vpop.permute.xlu1 %3652  ;;  %v4076_v53 = vrot.slane %v4075_v21, 2 }
 0x34a   : > { %v3200_v55 = vmax.f32 %v2926_v60, 0.0  ;;  %v3911_v12 = vmul.f32 %v6439_v22, %v3199_v5 }
 0x34b   : > { %v3909_v57 = vmul.f32 %v6427_v47, %v3197_v44  ;;  %v4082_v14 = vmax.f32 %v4081_v6, %v3908_v31  ;;  %v3198_v23 = vmax.f32 %v2918_v59, 0.0 }
 0x34c   : > { %v3912_v9 = vmul.f32 %v3622_v28, %v3200_v55 }
 0x34d   : > { %v4083_v37 = vmax.f32 %v4082_v14, %v3909_v57  ;;  %v3910_v51 = vmul.f32 %v6452_v35, %v3198_v23  ;;  %v5087_v52 = vpop.f32.mrb[144].mxu0  ;;  %v4077_v14 = vmax.f32 %v4075_v21, %v4076_v53  ;;  %v6642_v55 = vpop.permute.xlu1 %3784 }
 0x34e   : > { %v2930_v61 = vpop.f32.mrb[145].mxu0  ;;  %v2939_v36 = vadd.f32 %v6582_v19, %v5087_v52 }
 0x34f   : > { %v4084_v20 = vmax.f32 %v4083_v37, %v3910_v51  ;;  %v2931_v25 = vadd.f32 %v6582_v19, %v2930_v61  ;;  %v5088_v42 = vpop.f32.mrb[146].mxu0 }
 0x350   : > { %v2942_v47 = vadd.f32 %v6582_v19, %v5088_v42  ;;  %v2933_v10 = vpop.f32.mrb[147].mxu0  ;;  %v3203_v44 = vmax.f32 %v2939_v36, 0.0 }
 0x351   : > { %v4085_v31 = vmax.f32 %v4084_v20, %v3911_v12  ;;  %v3201_v30 = vmax.f32 %v2931_v25, 0.0  ;;  %v2934_v35 = vadd.f32 %v6582_v19, %v2933_v10  ;;  %v4078_v10 = vrot.slane %v4077_v14, 1 }
 0x352   : > { %v3204_v60 = vmax.f32 %v2942_v47, 0.0  ;;  %v3915_v52 = vmul.f32 %v6483_v43, %v3203_v44 }
 0x353   : > { %v4086_v6 = vmax.f32 %v4085_v31, %v3912_v9  ;;  %v3202_v22 = vmax.f32 %v2934_v35, 0.0  ;;  %v3913_v38 = vmul.f32 %v6461_v39, %v3201_v30 }
 0x354   : > { %v3916_v36 = vmul.f32 %v6512_v41, %v3204_v60 }
 0x355   : > { %v4087_v59 = vrot.slane %v4086_v6, 4  ;;  %v3914_v5 = vmul.f32 %v6448_v56, %v3202_v22  ;;  %v5091_v57 = vpop.f32.mrb[148].mxu0  ;;  %v6648_v56 = vpop.permute.xlu0 %3753 }
 0x356   : > { %v2955_v23 = vadd.f32 %v6582_v19, %v5091_v57  ;;  %v2946_v37 = vpop.f32.mrb[149].mxu0 }
 0x357   : > { %v4088_v51 = vmax.f32 %v4086_v6, %v4087_v59  ;;  %v4093_v61 = vmax.f32 %v3913_v38, %v3914_v5  ;;  %v2947_v12 = vadd.f32 %v6582_v19, %v2946_v37  ;;  %v5092_v20 = vpop.f32.mrb[150].mxu0  ;;  %v3688_v6 = vpop.permute.xlu1 %3687  ;;  %v4079_v59 = vmax.f32 %v4077_v14, %v4078_v10 }
 0x358   : > { %v2958_v39 = vadd.f32 %v6582_v19, %v5092_v20  ;;  %v2949_v25 = vpop.f32.mrb[151].mxu0  ;;  %v3207_v9 = vmax.f32 %v2955_v23, 0.0 }
 0x359   : > { %v4089_v21 = vrot.slane %v4088_v51, 2  ;;  %v4094_v42 = vmax.f32 %v4093_v61, %v3915_v52  ;;  %v3205_v28 = vmax.f32 %v2947_v12, 0.0  ;;  %v2950_v47 = vadd.f32 %v6582_v19, %v2949_v25  ;;  %v3657_v57 = vpop.permute.xlu0 %3656 }
 0x35a   : > { %v3208_v53 = vmax.f32 %v2958_v39, 0.0  ;;  %v3919_v52 = vmul.f32 %v3653_v58, %v3207_v9 }
 0x35b   : > { %v4090_v31 = vmax.f32 %v4088_v51, %v4089_v21  ;;  %v3917_v43 = vmul.f32 %v6554_v2, %v3205_v28  ;;  %v4095_v30 = vmax.f32 %v4094_v42, %v3916_v36  ;;  %v3206_v35 = vmax.f32 %v2950_v47, 0.0  ;;  %v6659_v42 = vpop.permute.xlu1 %3819 }
 0x35c   : > { %v3920_v61 = vmul.f32 %v3657_v57, %v3208_v53 }
 0x35d   : > { %v4091_v41 = vrot.slane %v4090_v31, 1  ;;  %v4096_v44 = vmax.f32 %v4095_v30, %v3917_v43  ;;  %v3918_v22 = vmul.f32 %v6590_v48, %v3206_v35  ;;  %v5095_v60 = vpop.f32.mrb[152].mxu0 }
 0x35e   : > { %v2971_v38 = vadd.f32 %v6582_v19, %v5095_v60  ;;  %v2962_v5 = vpop.f32.mrb[153].mxu0 }
 0x35f   : > { %v4092_v37 = vmax.f32 %v4090_v31, %v4091_v41  ;;  %v4097_v23 = vmax.f32 %v4096_v44, %v3918_v22  ;;  %v2963_v51 = vadd.f32 %v6582_v19, %v2962_v5  ;;  %v5096_v2 = vpop.f32.mrb[154].mxu0 }
 0x360   : > { %v3211_v12 = vmax.f32 %v2971_v38, 0.0  ;;  %v2974_v20 = vadd.f32 %v6582_v19, %v5096_v2  ;;  %v2965_v36 = vpop.f32.mrb[155].mxu0  ;;  %v6667_v38 = vpop.permute.xlu1 %3722 }
 0x361   : > { %v4201_v39 = vsel %vm4187_vm4, %v4092_v37, %v4079_v59  ;;  %v4098_v48 = vmax.f32 %v4097_v23, %v3919_v52  ;;  %v3209_v25 = vmax.f32 %v2963_v51, 0.0  ;;  %v2966_v14 = vadd.f32 %v6582_v19, %v2965_v36 }
 0x362   : > { %v3923_v21 = vmul.f32 %v6481_v26, %v3211_v12  ;;  %v3212_v47 = vmax.f32 %v2974_v20, 0.0 }
 0x363   : > { %v4099_v58 = vmax.f32 %v4098_v48, %v3920_v61  ;;  %v3210_v28 = vmax.f32 %v2966_v14, 0.0  ;;  %v3921_v9 = vmul.f32 %v6471_v3, %v3209_v25 }
 0x364   : > { %v3924_v26 = vmul.f32 %v6535_v63, %v3212_v47  ;;  %v3692_v14 = vpop.permute.xlu1 %3691 }
 0x365   : > { %v4100_v10 = vrot.slane %v4099_v58, 4  ;;  %v3922_v31 = vmul.f32 %v6458_v27, %v3210_v28  ;;  %v5099_v43 = vpop.f32.mrb[156].mxu0 }
 0x366   : > { %v2987_v30 = vadd.f32 %v6582_v19, %v5099_v43  ;;  %v2978_v35 = vpop.f32.mrb[157].mxu0 }
 0x367   : > { %v4101_v53 = vmax.f32 %v4099_v58, %v4100_v10  ;;  %v4106_v41 = vmax.f32 %v3921_v9, %v3922_v31  ;;  %v2979_v44 = vadd.f32 %v6582_v19, %v2978_v35  ;;  %v5100_v22 = vpop.f32.mrb[158].mxu0 }
 0x368   : > { %v2990_v60 = vadd.f32 %v6582_v19, %v5100_v22  ;;  %v2981_v59 = vpop.f32.mrb[159].mxu0  ;;  %v3215_v37 = vmax.f32 %v2987_v30, 0.0 }
 0x369   : > { %v4102_v5 = vrot.slane %v4101_v53, 2  ;;  %v4107_v3 = vmax.f32 %v4106_v41, %v3923_v21  ;;  %v3213_v57 = vmax.f32 %v2979_v44, 0.0  ;;  %v2982_v27 = vadd.f32 %v6582_v19, %v2981_v59 }
 0x36a   : > { %v3216_v61 = vmax.f32 %v2990_v60, 0.0  ;;  %v3927_v48 = vmul.f32 %v3688_v6, %v3215_v37  ;;  %v6677_v6 = vpop.permute.xlu0 %3788 }
 0x36b   : > { %v4103_v52 = vmax.f32 %v4101_v53, %v4102_v5  ;;  %v3925_v23 = vmul.f32 %v6552_v49, %v3213_v57  ;;  %v4108_v51 = vmax.f32 %v4107_v3, %v3924_v26  ;;  %v3214_v2 = vmax.f32 %v2982_v27, 0.0 }
 0x36c   : > { %v3928_v9 = vmul.f32 %v3692_v14, %v3216_v61 }
 0x36d   : > { %v4104_v12 = vrot.slane %v4103_v52, 1  ;;  %v4109_v20 = vmax.f32 %v4108_v51, %v3925_v23  ;;  %v3926_v63 = vmul.f32 %v6587_v1, %v3214_v2  ;;  %v5103_v36 = vpop.f32.mrb[160].mxu0 }
 0x36e   : > { %v2994_v25 = vpop.f32.mrb[161].mxu0  ;;  %v3003_v28 = vadd.f32 %v6582_v19, %v5103_v36 }
 0x36f   : > { %v4105_v58 = vmax.f32 %v4103_v52, %v4104_v12  ;;  %v4110_v21 = vmax.f32 %v4109_v20, %v3926_v63  ;;  %v2995_v47 = vadd.f32 %v6582_v19, %v2994_v25  ;;  %v5104_v10 = vpop.f32.mrb[162].mxu0  ;;  %v3758_v12 = vpop.permute.xlu0 %3757 }
 0x370   : > { %v3006_v49 = vadd.f32 %v6582_v19, %v5104_v10  ;;  %v2997_v31 = vpop.f32.mrb[163].mxu0  ;;  %v3219_v41 = vmax.f32 %v3003_v28, 0.0 }
 0x371   : > { %v4202_v43 = vsel %vm4189_vm5, %v4105_v58, %v4201_v39  ;;  %v4111_v30 = vmax.f32 %v4110_v21, %v3927_v48  ;;  %v3217_v35 = vmax.f32 %v2995_v47, 0.0  ;;  %v2998_v1 = vadd.f32 %v6582_v19, %v2997_v31 }
 0x372   : > { %v3220_v22 = vmax.f32 %v3006_v49, 0.0  ;;  %v3931_v27 = vmul.f32 %v6499_v62, %v3219_v41 }
 0x373   : > { %v4112_v53 = vmax.f32 %v4111_v30, %v3928_v9  ;;  %v3218_v44 = vmax.f32 %v2998_v1, 0.0  ;;  %v3929_v60 = vmul.f32 %v6469_v8, %v3217_v35  ;;  %v3727_v49 = vpop.permute.xlu0 %3726 }
 0x374   : > { %v3932_v51 = vmul.f32 %v6541_v11, %v3220_v22 }
 0x375   : > { %v4113_v26 = vrot.slane %v4112_v53, 4  ;;  %v3930_v59 = vmul.f32 %v6494_v18, %v3218_v44  ;;  %v5107_v5 = vpop.f32.mrb[164].mxu0 }
 0x376   : > { %v3019_v3 = vadd.f32 %v6582_v19, %v5107_v5  ;;  %v3010_v57 = vpop.f32.mrb[165].mxu0 }
 0x377   : > { %v4114_v39 = vmax.f32 %v4112_v53, %v4113_v26  ;;  %v4119_v37 = vmax.f32 %v3929_v60, %v3930_v59  ;;  %v3011_v52 = vadd.f32 %v6582_v19, %v3010_v57  ;;  %v5108_v23 = vpop.f32.mrb[166].mxu0 }
 0x378   : > { %v3022_v2 = vadd.f32 %v6582_v19, %v5108_v23  ;;  %v3013_v61 = vpop.f32.mrb[167].mxu0  ;;  %v3223_v36 = vmax.f32 %v3019_v3, 0.0 }
 0x379   : > { %v4115_v8 = vrot.slane %v4114_v39, 2  ;;  %v4120_v20 = vmax.f32 %v4119_v37, %v3931_v27  ;;  %v3221_v18 = vmax.f32 %v3011_v52, 0.0  ;;  %v3014_v63 = vadd.f32 %v6582_v19, %v3013_v61 }
 0x37a   : > { %v3224_v58 = vmax.f32 %v3022_v2, 0.0  ;;  %v3935_v10 = vmul.f32 %v6667_v38, %v3223_v36 }
 0x37b   : > { %v4116_v48 = vmax.f32 %v4114_v39, %v4115_v8  ;;  %v3933_v25 = vmul.f32 %v6573_v40, %v3221_v18  ;;  %v4121_v62 = vmax.f32 %v4120_v20, %v3932_v51  ;;  %v3222_v14 = vmax.f32 %v3014_v63, 0.0 }
 0x37c   : > { %v3936_v40 = vmul.f32 %v3727_v49, %v3224_v58  ;;  %v3762_v49 = vpop.permute.xlu0 %3761 }
 0x37d   : > { %v4117_v21 = vrot.slane %v4116_v48, 1  ;;  %v4122_v28 = vmax.f32 %v4121_v62, %v3933_v25  ;;  %v3934_v11 = vmul.f32 %v6628_v16, %v3222_v14  ;;  %v5111_v47 = vpop.f32.mrb[168].mxu0 }
 0x37e   : > { %v3026_v9 = vpop.f32.mrb[169].mxu0  ;;  %v3035_v35 = vadd.f32 %v6582_v19, %v5111_v47 }
 0x37f   : > { %v4118_v31 = vmax.f32 %v4116_v48, %v4117_v21  ;;  %v4123_v30 = vmax.f32 %v4122_v28, %v3934_v11  ;;  %v3027_v1 = vadd.f32 %v6582_v19, %v3026_v9  ;;  %v5112_v53 = vpop.f32.mrb[170].mxu0 }
 0x380   : > { %v3038_v41 = vadd.f32 %v6582_v19, %v5112_v53  ;;  %v3029_v44 = vpop.f32.mrb[171].mxu0  ;;  %v3227_v59 = vmax.f32 %v3035_v35, 0.0 }
 0x381   : > { %v4203_v22 = vsel %vm4191_vm6, %v4118_v31, %v4202_v43  ;;  %v4124_v26 = vmax.f32 %v4123_v30, %v3935_v10  ;;  %v3225_v16 = vmax.f32 %v3027_v1, 0.0  ;;  %v3030_v60 = vadd.f32 %v6582_v19, %v3029_v44 }
 0x382   : > { %v3228_v57 = vmax.f32 %v3038_v41, 0.0  ;;  %v3939_v43 = vmul.f32 %v6522_v13, %v3227_v59 }
 0x383   : > { %v4125_v38 = vmax.f32 %v4124_v26, %v3936_v40  ;;  %v3937_v5 = vmul.f32 %v6502_v0, %v3225_v16  ;;  %v3226_v3 = vmax.f32 %v3030_v60, 0.0 }
 0x384   : > { %v3940_v20 = vmul.f32 %v6577_v33, %v3228_v57 }
 0x385   : > { %v4126_v39 = vrot.slane %v4125_v38, 4  ;;  %v3938_v27 = vmul.f32 %v6490_v46, %v3226_v3  ;;  %v5115_v37 = vpop.f32.mrb[172].mxu0 }
 0x386   : > { %v3051_v52 = vadd.f32 %v6582_v19, %v5115_v37  ;;  %v3042_v23 = vpop.f32.mrb[173].mxu0 }
 0x387   : > { %v4127_v51 = vmax.f32 %v4125_v38, %v4126_v39  ;;  %v4132_v2 = vmax.f32 %v3937_v5, %v3938_v27  ;;  %v3043_v61 = vadd.f32 %v6582_v19, %v3042_v23  ;;  %v5116_v8 = vpop.f32.mrb[174].mxu0 }
 0x388   : > { %v3054_v0 = vadd.f32 %v6582_v19, %v5116_v8  ;;  %v3045_v18 = vpop.f32.mrb[175].mxu0  ;;  %v3231_v25 = vmax.f32 %v3051_v52, 0.0 }
 0x389   : > { %v4128_v63 = vrot.slane %v4127_v51, 2  ;;  %v4133_v36 = vmax.f32 %v4132_v2, %v3939_v43  ;;  %v3229_v48 = vmax.f32 %v3043_v61, 0.0  ;;  %v3046_v46 = vadd.f32 %v6582_v19, %v3045_v18  ;;  %v6715_v2 = vpop.permute.xlu1 %3823 }
 0x38a   : > { %v3232_v21 = vmax.f32 %v3054_v0, 0.0  ;;  %v3943_v10 = vmul.f32 %v3758_v12, %v3231_v25 }
 0x38b   : > { %v4129_v62 = vmax.f32 %v4127_v51, %v4128_v63  ;;  %v3941_v14 = vmul.f32 %v6630_v45, %v3229_v48  ;;  %v4134_v58 = vmax.f32 %v4133_v36, %v3940_v20  ;;  %v3230_v13 = vmax.f32 %v3046_v46, 0.0 }
 0x38c   : > { %v3944_v40 = vmul.f32 %v3762_v49, %v3232_v21  ;;  %v3797_v49 = vpop.permute.xlu0 %3796 }
 0x38d   : > { %v4130_v28 = vrot.slane %v4129_v62, 1  ;;  %v4135_v11 = vmax.f32 %v4134_v58, %v3941_v14  ;;  %v3942_v47 = vmul.f32 %v6648_v56, %v3230_v13  ;;  %v5119_v33 = vpop.f32.mrb[176].mxu0 }
 0x38e   : > { %v3058_v9 = vpop.f32.mrb[177].mxu0  ;;  %v3067_v35 = vadd.f32 %v6582_v19, %v5119_v33 }
 0x38f   : > { %v4131_v31 = vmax.f32 %v4129_v62, %v4130_v28  ;;  %v4136_v30 = vmax.f32 %v4135_v11, %v3942_v47  ;;  %v3059_v1 = vadd.f32 %v6582_v19, %v3058_v9  ;;  %v5120_v53 = vpop.f32.mrb[178].mxu0 }
 0x390   : > { %v3070_v45 = vadd.f32 %v6582_v19, %v5120_v53  ;;  %v3061_v41 = vpop.f32.mrb[179].mxu0  ;;  %v3235_v60 = vmax.f32 %v3067_v35, 0.0 }
 0x391   : > { %v4204_v44 = vsel %vm4193_vm7, %v4131_v31, %v4203_v22  ;;  %v4137_v26 = vmax.f32 %v4136_v30, %v3943_v10  ;;  %v3233_v16 = vmax.f32 %v3059_v1, 0.0  ;;  %v3062_v56 = vadd.f32 %v6582_v19, %v3061_v41 }
 0x392   : > { %v3236_v3 = vmax.f32 %v3070_v45, 0.0  ;;  %v3947_v37 = vmul.f32 %v6566_v50, %v3235_v60 }
 0x393   : > { %v4138_v12 = vmax.f32 %v4137_v26, %v3944_v40  ;;  %v3234_v38 = vmax.f32 %v3062_v56, 0.0  ;;  %v3945_v5 = vmul.f32 %v6524_v7, %v3233_v16 }
 0x394   : > { %v3948_v8 = vmul.f32 %v6614_v32, %v3236_v3  ;;  %v3793_v32 = vpop.permute.xlu1 %3792 }
 0x395   : > { %v4139_v59 = vrot.slane %v4138_v12, 4  ;;  %v3946_v57 = vmul.f32 %v6510_v15, %v3234_v38  ;;  %v5123_v39 = vpop.f32.mrb[180].mxu0 }
 0x396   : > { %v3074_v23 = vpop.f32.mrb[181].mxu0  ;;  %v3083_v22 = vadd.f32 %v6582_v19, %v5123_v39 }
 0x397   : > { %v4140_v27 = vmax.f32 %v4138_v12, %v4139_v59  ;;  %v4145_v52 = vmax.f32 %v3945_v5, %v3946_v57  ;;  %v3075_v51 = vadd.f32 %v6582_v19, %v3074_v23  ;;  %v5124_v43 = vpop.f32.mrb[182].mxu0 }
 0x398   : > { %v3077_v20 = vpop.f32.mrb[183].mxu0  ;;  %v3086_v15 = vadd.f32 %v6582_v19, %v5124_v43  ;;  %v3239_v36 = vmax.f32 %v3083_v22, 0.0 }
 0x399   : > { %v4141_v61 = vrot.slane %v4140_v27, 2  ;;  %v4146_v7 = vmax.f32 %v4145_v52, %v3947_v37  ;;  %v3237_v0 = vmax.f32 %v3075_v51, 0.0  ;;  %v3078_v18 = vadd.f32 %v6582_v19, %v3077_v20  ;;  %v3828_v51 = vpop.permute.xlu1 %3827 }
 0x39a   : > { %v3240_v14 = vmax.f32 %v3086_v15, 0.0  ;;  %v3951_v11 = vmul.f32 %v3793_v32, %v3239_v36 }
 0x39b   : > { %v4142_v50 = vmax.f32 %v4140_v27, %v4141_v61  ;;  %v4147_v63 = vmax.f32 %v4146_v7, %v3948_v8  ;;  %v3949_v48 = vmul.f32 %v6642_v55, %v3237_v0  ;;  %v3238_v46 = vmax.f32 %v3078_v18, 0.0 }
 0x39c   : > { %v3952_v35 = vmul.f32 %v3797_v49, %v3240_v14 }
 0x39d   : > { %v4143_v25 = vrot.slane %v4142_v50, 1  ;;  %v4148_v62 = vmax.f32 %v4147_v63, %v3949_v48  ;;  %v3950_v58 = vmul.f32 %v6677_v6, %v3238_v46  ;;  %v5127_v13 = vpop.f32.mrb[184].mxu0  ;;  %v3832_v36 = vpop.permute.xlu1 %3831 }
 0x39e   : > { %v3090_v28 = vpop.f32.mrb[185].mxu0  ;;  %v3099_v33 = vadd.f32 %v6582_v19, %v5127_v13 }
 0x39f   : > { %v4144_v21 = vmax.f32 %v4142_v50, %v4143_v25  ;;  %v4149_v47 = vmax.f32 %v4148_v62, %v3950_v58  ;;  %v3091_v10 = vadd.f32 %v6582_v19, %v3090_v28  ;;  %v5128_v9 = vpop.f32.mrb[186].mxu0 }
 0x3a0   : > { %v3102_v31 = vadd.f32 %v6582_v19, %v5128_v9  ;;  %v3093_v30 = vpop.f32.mrb[187].mxu0  ;;  %v3243_v45 = vmax.f32 %v3099_v33, 0.0 }
 0x3a1   : > { %v4205_v55 = vsel %vm4195_vm8, %v4144_v21, %v4204_v44  ;;  %v4150_v1 = vmax.f32 %v4149_v47, %v3951_v11  ;;  %v3241_v6 = vmax.f32 %v3091_v10, 0.0  ;;  %v3094_v53 = vadd.f32 %v6582_v19, %v3093_v30 }
 0x3a2   : > { %v3244_v26 = vmax.f32 %v3102_v31, 0.0  ;;  %v3955_v5 = vmul.f32 %v6564_v24, %v3243_v45 }
 0x3a3   : > { %v4151_v40 = vmax.f32 %v4150_v1, %v3952_v35  ;;  %v3242_v41 = vmax.f32 %v3094_v53, 0.0  ;;  %v3953_v56 = vmul.f32 %v6544_v17, %v3241_v6 }
 0x3a4   : > { %v3956_v27 = vmul.f32 %v6611_v29, %v3244_v26 }
 0x3a5   : > { %v4152_v16 = vrot.slane %v4151_v40, 4  ;;  %v3954_v12 = vmul.f32 %v6531_v4, %v3242_v41  ;;  %v5131_v60 = vpop.f32.mrb[188].mxu0 }
 0x3a6   : > { %v3115_v44 = vadd.f32 %v6582_v19, %v5131_v60  ;;  %v3106_v38 = vpop.f32.mrb[189].mxu0 }
 0x3a7   : > { %v4153_v59 = vmax.f32 %v4151_v40, %v4152_v16  ;;  %v4158_v3 = vmax.f32 %v3953_v56, %v3954_v12  ;;  %v3107_v57 = vadd.f32 %v6582_v19, %v3106_v38  ;;  %v5132_v39 = vpop.f32.mrb[190].mxu0 }
 0x3a8   : > { %v3118_v37 = vadd.f32 %v6582_v19, %v5132_v39  ;;  %v3109_v52 = vpop.f32.mrb[191].mxu0  ;;  %v3247_v43 = vmax.f32 %v3115_v44, 0.0 }
 0x3a9   : > { %v4154_v23 = vrot.slane %v4153_v59, 2  ;;  %v4159_v17 = vmax.f32 %v4158_v3, %v3955_v5  ;;  %v3245_v22 = vmax.f32 %v3107_v57, 0.0  ;;  %v3110_v4 = vadd.f32 %v6582_v19, %v3109_v52 }
 0x3aa   : > { %v3248_v15 = vmax.f32 %v3118_v37, 0.0  ;;  %v3959_v50 = vmul.f32 %v3828_v51, %v3247_v43 }
 0x3ab   : > { %v4155_v61 = vmax.f32 %v4153_v59, %v4154_v23  ;;  %v3957_v8 = vmul.f32 %v6659_v42, %v3245_v22  ;;  %v4160_v24 = vmax.f32 %v4159_v17, %v3956_v27  ;;  %v3246_v7 = vmax.f32 %v3110_v4, 0.0 }
 0x3ac   : > { %v3960_v48 = vmul.f32 %v3832_v36, %v3248_v15 }
 0x3ad   : > { %v4156_v20 = vrot.slane %v4155_v61, 1  ;;  %v4161_v0 = vmax.f32 %v4160_v24, %v3957_v8  ;;  %v3958_v29 = vmul.f32 %v6715_v2, %v3246_v7 }
 0x3af   : > { %v4157_v18 = vmax.f32 %v4155_v61, %v4156_v20  ;;  %v4162_v63 = vmax.f32 %v4161_v0, %v3958_v29 }
 0x3b1   : > { %v4206_v19 = vsel %vm4197_vm9, %v4157_v18, %v4205_v55  ;;  %v4163_v46 = vmax.f32 %v4162_v63, %v3959_v50 }
 0x3b3   : > { %v4164_v25 = vmax.f32 %v4163_v46, %v3960_v48 }
 0x3b5   : > { %v4165_v42 = vrot.slane %v4164_v25, 4 }
 0x3b7   : > { %v4166_v62 = vmax.f32 %v4164_v25, %v4165_v42 }
 0x3b9   : > { %v4167_v14 = vrot.slane %v4166_v62, 2 }
 0x3bb   : > { %v4168_v58 = vmax.f32 %v4166_v62, %v4167_v14 }
 0x3bd   : > { %v4169_v13 = vrot.slane %v4168_v58, 1 }
 0x3bf   : > { %v4170_v2 = vmax.f32 %v4168_v58, %v4169_v13 }
 0x3c1   : > { %v4207_v32 = vsel %vm4199_vm10, %v4170_v2, %v4206_v19 }
 0x3c2   : > { %v4211_v21 = vmax.f32 %v4207_v32, 0.0 }
 0x3c4   : > { %v4226_v28 = vmul.f32 %v6602_v54, %v4211_v21 }
 0x3c6   : > { %v4232_v11 = vadd.f32 %v6609_v34, %v4226_v28 }
 0x3c8   : > { %4234 = vst [vmem:[%s6623_s17 + $0x8] sm:$0xff] %v4232_v11 }
 0x3c9   : > { %5293 = shalt.err (!%p5290_p6)
}
 0x3ca   : > { %s5294_s19 = scalar_lea.hbm %s6745_s30, 256  ;;  %s5298_s16 = scalar_lea.hbm %s6805_s6, 1024 }
 0x3cb   : > { %p5295_p7 = scmp.ne.s32.totalorder %s6745_s30, %s5294_s19  ;;  %p5299_p11 = scmp.lt.u32.totalorder %s6745_s30, %s6805_s6 }
 0x3cc   : > { %p5300_p12 = scmp.lt.u32.totalorder %s5298_s16, %s5294_s19  ;;  %p5302_p0 = scmp.lt.u32.totalorder %s5294_s19, %s6745_s30 }
 0x3cd   : > { %p5296_p9 = pnand %p5295_p7, %p5440_p4 }
 0x3ce   : > { %p5301_p13 = por %p5300_p12, %p5299_p11 }
 0x3cf   : > { %p5297_p10 = pneg %p5296_p9 }
 0x3d0   : > { %p5303_p1 = por %p5302_p0, %p5301_p13 }
 0x3d2   : > { %p5304_p2 = pnand %p5303_p1, %p5297_p10 }
 0x3d4   : > { %5307 = shalt.err (!%p5304_p2)
}
 0x3d5   : > { %s5363_s27 = smov 128   ;;  %s5364_s28 = smov 8  }
 0x3d6   : > { %5137 = dma.vmem_to_hbm [thread:$0]  (%p5440_p4), %s6747_s20, 256, %s6745_s30, %s6753_s8, %s5363_s27, %s5363_s27, %s5364_s28  }
 0x3d7 PF: > { %p5143_p3 = scmp.ge.s32.totalorder %s5358_s26, 2  ;;  %s4264_s24 = sand.u32 1, %s5338_s21  }
 0x3d8   : > { %s4265_s11 = scalar_lea.sflag [#allocation4], %s4264_s24 }
 0x3d9   : > { %p5140_p5 = pnand %p5143_p3, %p5447_p8 }
 0x3db   : > { %5333 = dma.done.wait (!%p5140_p5), %s4265_s11, 256  }
 0x3dc   : > { %5335 = vsyncadd (!%p5140_p5), %s4265_s11, 4294967040  ;;  %s19_s26 = sadd.s32 1, %s5358_s26   ;;  %s6852_s21 = smov %s5342_s22 }
 0x3dd   : > { %p16_p6 = scmp.ge.s32.totalorder %s19_s26, 6   ;;  %s6853_s22 = smov %s5346_s23 }
 0x3de   : > { %s6854_s23 = smov %s5453_s10  ;;  %s6855_s24 = smov %s5354_s25 }
 0x3df   : > { %s6856_s25 = smov %s6858_s29  ;;  %18 = sbr.rel (!%p16_p6) target bundleno = 4 (0x4), region = 90 }
 0x3e6   :  { %4270 = vsyncpa [#allocation4], 1 }
 0x3e7   :  { %4272 = vsyncpa [#allocation4 + $0x1], 1 }

</bundles_post_ra>
